<compile_context>
chip_gen: v5e
topology: v5e:2x2
jax: 0.10.0
libtpu: 0.0.40
codegen_flags: <defaults>
</compile_context>

<pallas_src>
import functools

import jax
import jax.numpy as jnp
from jax.experimental import pallas as pl
from jax.experimental.pallas import tpu as pltpu

LANE = 128
_VMEM_LIMIT = 32 * 1024 * 1024  # within default scoped-VMEM on v5e/v6e/v7x


def _round_up(x, m):
    return ((x + m - 1) // m) * m


def _pick_tile(dim, candidates=(512, 384, 256, 128)):
    for c in candidates:
        if dim % c == 0:
            return c
    return dim


# ---------------------------------------------------------------------------
# conv1: 1x1 conv (+ fused BN bias) + LeakyReLU(0.1) as a tiled matmul
# ---------------------------------------------------------------------------
def _mm_bias_lrelu_kernel(x_ref, w_ref, b_ref, o_ref, acc_ref):
    k = pl.program_id(2)

    @pl.when(k == 0)
    def _():
        acc_ref[...] = jnp.zeros_like(acc_ref)

    acc_ref[...] += jnp.dot(x_ref[...], w_ref[...],
                            preferred_element_type=jnp.float32)

    @pl.when(k == pl.num_programs(2) - 1)
    def _():
        y = acc_ref[...] + b_ref[...]          # (tm,tn) + (1,tn)
        y = jnp.where(y > 0, y, 0.1 * y)       # LeakyReLU(0.1)
        o_ref[...] = y.astype(o_ref.dtype)


def _matmul_bias_lrelu(x, w, b, *, tm, tn, tk, out_dtype=jnp.bfloat16):
    M, K = x.shape
    _, N = w.shape
    grid = (M // tm, N // tn, K // tk)
    return pl.pallas_call(
        _mm_bias_lrelu_kernel,
        out_shape=jax.ShapeDtypeStruct((M, N), out_dtype),
        grid_spec=pltpu.PrefetchScalarGridSpec(
            num_scalar_prefetch=0,
            grid=grid,
            in_specs=[
                pl.BlockSpec((tm, tk), lambda i, j, k: (i, k)),
                pl.BlockSpec((tk, tn), lambda i, j, k: (k, j)),
                pl.BlockSpec((1, tn), lambda i, j, k: (0, j)),
            ],
            out_specs=pl.BlockSpec((tm, tn), lambda i, j, k: (i, j)),
            scratch_shapes=[pltpu.VMEM((tm, tn), jnp.float32)],
        ),
        compiler_params=pltpu.CompilerParams(
            dimension_semantics=("parallel", "parallel", "arbitrary"),
            vmem_limit_bytes=_VMEM_LIMIT,
        ),
    )(x, w, b)


# ---------------------------------------------------------------------------
# conv2: 3x3 conv (+ fused BN bias) + LeakyReLU(0.1) + residual add
# 9 shifted-matmul taps accumulated inside the kernel (no HBM im2col).
# ---------------------------------------------------------------------------
def _conv3x3_res_kernel(ycur_ref, ynxt_ref, w_ref, b_ref, res_ref, o_ref,
                        ybuf_ref, *, tap_offsets, tm):
    # Stage current block + next block (halo) as one contiguous buffer so the
    # constant-offset tap slices never leave VMEM.
    ybuf_ref[0:tm, :] = ycur_ref[0].astype(jnp.float32)
    ybuf_ref[tm:2 * tm, :] = ynxt_ref[0].astype(jnp.float32)

    acc = jnp.zeros(o_ref.shape[1:], jnp.float32)
    for t, off in enumerate(tap_offsets):            # static unroll: 9 taps
        lhs = ybuf_ref[off:off + tm, :].astype(jnp.bfloat16)
        acc = acc + jnp.dot(lhs, w_ref[t], preferred_element_type=jnp.float32)

    y = acc + b_ref[...]                             # (tm,tn) + (1,tn)
    y = jnp.where(y > 0, y, 0.1 * y)                 # LeakyReLU(0.1)
    o_ref[0] = (y + res_ref[0]).astype(o_ref.dtype)  # residual add (f32)


def _conv3x3_bias_lrelu_residual(y1pf, w2f, b2, res_flat, *, tm, tn, taps):
    Nb, p_rows, cp = y1pf.shape
    _, m_out, n_p = res_flat.shape
    assert p_rows == m_out + tm
    grid = (Nb, m_out // tm, n_p // tn)
    kernel = functools.partial(_conv3x3_res_kernel, tap_offsets=taps, tm=tm)
    return pl.pallas_call(
        kernel,
        out_shape=jax.ShapeDtypeStruct((Nb, m_out, n_p), jnp.float32),
        grid_spec=pltpu.PrefetchScalarGridSpec(
            num_scalar_prefetch=0,
            grid=grid,
            in_specs=[
                pl.BlockSpec((1, tm, cp), lambda b, i, j: (b, i, 0)),      # cur
                pl.BlockSpec((1, tm, cp), lambda b, i, j: (b, i + 1, 0)),  # halo
                pl.BlockSpec((9, cp, tn), lambda b, i, j: (0, 0, j)),      # w2
                pl.BlockSpec((1, tn), lambda b, i, j: (0, j)),             # bias
                pl.BlockSpec((1, tm, tn), lambda b, i, j: (b, i, j)),      # res
            ],
            out_specs=pl.BlockSpec((1, tm, tn), lambda b, i, j: (b, i, j)),
            scratch_shapes=[pltpu.VMEM((2 * tm, cp), jnp.float32)],
        ),
        compiler_params=pltpu.CompilerParams(
            dimension_semantics=("parallel", "parallel", "arbitrary"),
            vmem_limit_bytes=_VMEM_LIMIT,
        ),
    )(y1pf, y1pf, w2f, b2, res_flat)


# ---------------------------------------------------------------------------
# ResLayer forward
# ---------------------------------------------------------------------------
def res_layer_forward(x_nhwc, params):
    """x_nhwc: (N, H, W, Cin) float32.  Returns x + conv2(conv1(x))."""
    Nb, H, W, Cin = x_nhwc.shape
    mid = params["w1"].shape[1]
    Cout = params["w2"].shape[3]
    assert Cout == Cin  # ResLayer residual requires Cin == Cout

    eps = 1e-5
    s1 = params["g1"] / jnp.sqrt(params["v1"] + eps)
    b1 = params["bt1"] - params["m1"] * s1
    s2 = params["g2"] / jnp.sqrt(params["v2"] + eps)
    b2 = params["bt2"] - params["m2"] * s2

    cin_p = _round_up(Cin, LANE)
    cmid_p = _round_up(mid, LANE)
    cout_p = _round_up(Cout, LANE)

    # Fold BN scale into conv weights; zero-pad channels to lane-dense 128.
    w1f = params["w1"] * s1[None, :]
    w1f = jnp.pad(w1f, ((0, cin_p - Cin), (0, cmid_p - mid))).astype(jnp.bfloat16)
    b1p = jnp.pad(b1, (0, cmid_p - mid)).reshape(1, cmid_p).astype(jnp.float32)

    w2f = params["w2"] * s2[None, None, None, :]
    w2f = jnp.pad(w2f, ((0, 0), (0, 0), (0, cmid_p - mid), (0, cout_p - Cout)))
    w2f = w2f.reshape(9, cmid_p, cout_p).astype(jnp.bfloat16)
    b2p = jnp.pad(b2, (0, cout_p - Cout)).reshape(1, cout_p).astype(jnp.float32)

    # ---- conv1: 1x1 conv as tiled matmul over (N*H*W, Cin_p) ----
    xc = jnp.pad(x_nhwc, ((0, 0), (0, 0), (0, 0), (0, cin_p - Cin)))
    m1 = Nb * H * W
    tm1 = min(512, _round_up(m1, 8))
    m1p = _round_up(m1, tm1)
    x2d = jnp.pad(xc.reshape(m1, cin_p), ((0, m1p - m1), (0, 0)))
    y1_2d = _matmul_bias_lrelu(x2d.astype(jnp.bfloat16), w1f, b1p,
                               tm=tm1, tn=_pick_tile(cmid_p, (256, 128)),
                               tk=_pick_tile(cin_p))
    y1 = y1_2d[:m1].reshape(Nb, H, W, cmid_p)            # bf16

    # ---- conv2: zero-padded flattened layout; taps reduced in-kernel ----
    # Flat row h*(W+2)+w of the padded image; tap (dy,dx) == shift dy*(W+2)+dx.
    # TODO(synk): fuse conv1 into the conv2 kernel (compute y1 row bands + halo
    # directly in VMEM) to also remove the y1 round-trip through HBM.
    wp = W + 2
    taps = tuple(dy * wp + dx for dy in range(3) for dx in range(3))
    tm2 = max(256, _round_up(2 * wp + 3, 8))
    m_flat = H * wp
    m_out = _round_up(m_flat, tm2)
    p_rows = m_out + tm2

    y1p = jnp.pad(y1, ((0, 0), (1, 1), (1, 1), (0, 0)))  # (Nb, H+2, W+2, Cmid_p)
    y1pf = y1p.reshape(Nb, (H + 2) * wp, cmid_p)
    y1pf = jnp.pad(y1pf, ((0, 0), (0, p_rows - (H + 2) * wp), (0, 0)))

    # Residual (== x, Cin == Cout) in the same flattened layout, kept f32.
    res = jnp.pad(xc, ((0, 0), (0, 0), (0, 2), (0, 0)))  # (Nb, H, W+2, Cin_p)
    res = res.reshape(Nb, m_flat, cin_p)
    res = jnp.pad(res, ((0, 0), (0, m_out - m_flat), (0, 0))).astype(jnp.float32)

    out_flat = _conv3x3_bias_lrelu_residual(
        y1pf, w2f, b2p, res, tm=tm2, tn=_pick_tile(cout_p, (256, 128)), taps=taps)
    out = out_flat[:, :m_flat, :].reshape(Nb, H, wp, cout_p)
    return out[:, :, :W, :Cout]


# ---------------------------------------------------------------------------
# Parameters & plain-JAX reference (eval-mode BN, LeakyReLU(0.1))
# ---------------------------------------------------------------------------
def make_params(key, in_channels):
    mid = in_channels // 2
    ks = jax.random.split(key, 10)
    return {
        "w1": 0.2 * jax.random.normal(ks[0], (in_channels, mid), jnp.float32),
        "g1": 1.0 + 0.1 * jax.random.normal(ks[1], (mid,), jnp.float32),
        "bt1": 0.1 * jax.random.normal(ks[2], (mid,), jnp.float32),
        "m1": 0.1 * jax.random.normal(ks[3], (mid,), jnp.float32),
        "v1": 0.5 + jnp.abs(jax.random.normal(ks[4], (mid,), jnp.float32)),
        "w2": 0.2 * jax.random.normal(ks[5], (3, 3, mid, in_channels), jnp.float32),
        "g2": 1.0 + 0.1 * jax.random.normal(ks[6], (in_channels,), jnp.float32),
        "bt2": 0.1 * jax.random.normal(ks[7], (in_channels,), jnp.float32),
        "m2": 0.1 * jax.random.normal(ks[8], (in_channels,), jnp.float32),
        "v2": 0.5 + jnp.abs(jax.random.normal(ks[9], (in_channels,), jnp.float32)),
    }


def reference_forward(x_nhwc, params):
    eps = 1e-5
    y = jnp.einsum("nhwc,ck->nhwk", x_nhwc, params["w1"])
    y = (y - params["m1"]) / jnp.sqrt(params["v1"] + eps) * params["g1"] + params["bt1"]
    y = jnp.where(y > 0, y, 0.1 * y)
    y = jax.lax.conv_general_dilated(
        y, params["w2"], window_strides=(1, 1), padding="SAME",
        dimension_numbers=("NHWC", "HWIO", "NHWC"))
    y = (y - params["m2"]) / jnp.sqrt(params["v2"] + eps) * params["g2"] + params["bt2"]
    y = jnp.where(y > 0, y, 0.1 * y)
    return x_nhwc + y


if __name__ == "__main__":
    key = jax.random.PRNGKey(0)
    k_x, k_p = jax.random.split(key)

    Nb, Cin, H, W = 2, 4, 16, 16          # ResLayer(in_channels=4) -> mid=2
    x_nchw = jax.random.normal(k_x, (Nb, Cin, H, W), jnp.float32)
    x_nhwc = jnp.transpose(x_nchw, (0, 2, 3, 1))   # kernels run channels-last

    params = make_params(k_p, Cin)

    fwd = jax.jit(res_layer_forward)
    out = jax.block_until_ready(fwd(x_nhwc, params))

    ref = reference_forward(x_nhwc, params)
    assert out.shape == (Nb, H, W, Cin)
    max_err = float(jnp.max(jnp.abs(out - ref)))
    assert jnp.allclose(out, ref, atol=2e-2, rtol=2e-2), f"mismatch: {max_err}"

    print("KERNEL_OK")
</pallas_src>

<mosaic_0001>
module attributes {stable_mosaic.version = 11 : i64} {
  func.func @_mm_bias_lrelu_kernel(%arg0: i32, %arg1: i32, %arg2: i32, %arg3: memref<512x128xbf16, #tpu.memory_space<vmem>>, %arg4: memref<128x128xbf16, #tpu.memory_space<vmem>>, %arg5: memref<1x128xf32, #tpu.memory_space<vmem>>, %arg6: memref<512x128xbf16, #tpu.memory_space<vmem>>, %arg7: memref<512x128xf32, #tpu.memory_space<vmem>>) attributes {dimension_semantics = [#tpu.dimension_semantics<parallel>, #tpu.dimension_semantics<parallel>, #tpu.dimension_semantics<arbitrary>], iteration_bounds = array<i64: 1, 1, 1>, scalar_prefetch = 0 : i64, scratch_operands = 1 : i64, tpu.core_type = #tpu.core_type<tc>, window_params = [{transform_indices = @transform_0, window_bounds = array<i64: 512, 128>}, {transform_indices = @transform_1, window_bounds = array<i64: 128, 128>}, {transform_indices = @transform_2, window_bounds = array<i64: 1, 128>}, {transform_indices = @transform_3, window_bounds = array<i64: 512, 128>}]} {
    %c0_i32 = arith.constant 0 : i32
    %0 = arith.cmpi eq, %arg2, %c0_i32 : i32
    %1 = arith.extui %0 : i1 to i32
    %c0_i32_0 = arith.constant 0 : i32
    %2 = arith.cmpi ne, %1, %c0_i32_0 : i32
    scf.if %2 {
      %cst_10 = arith.constant 0.000000e+00 : f32
      %12 = vector.broadcast %cst_10 : f32 to vector<512x128xf32>
      %c0_11 = arith.constant 0 : index
      %c0_12 = arith.constant 0 : index
      %13 = vector.load %arg7[%c0_11, %c0_12] : memref<512x128xf32, #tpu.memory_space<vmem>>, vector<512x128xf32>
      tpu.vector_store %arg7[%c0_11, %c0_12], %12 {strides = array<i32>} : memref<512x128xf32, #tpu.memory_space<vmem>>, vector<512x128xf32>,
    } else {
    }
    %c0 = arith.constant 0 : index
    %c0_1 = arith.constant 0 : index
    %3 = vector.load %arg7[%c0, %c0_1] : memref<512x128xf32, #tpu.memory_space<vmem>>, vector<512x128xf32>
    %c0_2 = arith.constant 0 : index
    %c0_3 = arith.constant 0 : index
    %4 = vector.load %arg3[%c0_2, %c0_3] : memref<512x128xbf16, #tpu.memory_space<vmem>>, vector<512x128xbf16>
    %c0_4 = arith.constant 0 : index
    %c0_5 = arith.constant 0 : index
    %5 = vector.load %arg4[%c0_4, %c0_5] : memref<128x128xbf16, #tpu.memory_space<vmem>>, vector<128x128xbf16>
    %cst = arith.constant dense<0.000000e+00> : vector<512x128xf32>
    %6 = tpu.matmul %4, %5, %cst {dimension_numbers = #tpu.dot_dimension_numbers<[1], [0], [0], [1], [0, 0, 1, 1], [], []>} : vector<512x128xbf16>, vector<128x128xbf16>, vector<512x128xf32> -> vector<512x128xf32>
    %7 = arith.addf %3, %6 : vector<512x128xf32>
    %c0_6 = arith.constant 0 : index
    %c0_7 = arith.constant 0 : index
    %8 = vector.load %arg7[%c0_6, %c0_7] : memref<512x128xf32, #tpu.memory_space<vmem>>, vector<512x128xf32>
    tpu.vector_store %arg7[%c0_6, %c0_7], %7 {strides = array<i32>} : memref<512x128xf32, #tpu.memory_space<vmem>>, vector<512x128xf32>,
    %c0_i32_8 = arith.constant 0 : i32
    %9 = arith.cmpi eq, %arg2, %c0_i32_8 : i32
    %10 = arith.extui %9 : i1 to i32
    %c0_i32_9 = arith.constant 0 : i32
    %11 = arith.cmpi ne, %10, %c0_i32_9 : i32
    scf.if %11 {
      %c0_10 = arith.constant 0 : index
      %c0_11 = arith.constant 0 : index
      %12 = vector.load %arg7[%c0_10, %c0_11] : memref<512x128xf32, #tpu.memory_space<vmem>>, vector<512x128xf32>
      %c0_12 = arith.constant 0 : index
      %c0_13 = arith.constant 0 : index
      %13 = vector.load %arg5[%c0_12, %c0_13] : memref<1x128xf32, #tpu.memory_space<vmem>>, vector<1x128xf32>
      %14 = vector.broadcast %13 : vector<1x128xf32> to vector<512x128xf32>
      %15 = arith.addf %12, %14 : vector<512x128xf32>
      %cst_14 = arith.constant 0.000000e+00 : f32
      %16 = vector.broadcast %cst_14 : f32 to vector<512x128xf32>
      %17 = arith.cmpf ogt, %15, %16 : vector<512x128xf32>
      %cst_15 = arith.constant 1.000000e-01 : f32
      %18 = vector.broadcast %cst_15 : f32 to vector<512x128xf32>
      %19 = arith.mulf %18, %15 : vector<512x128xf32>
      %20 = arith.select %17, %15, %19 : vector<512x128xi1>, vector<512x128xf32>
      %21 = arith.truncf %20 : vector<512x128xf32> to vector<512x128xbf16>
      %c0_16 = arith.constant 0 : index
      %c0_17 = arith.constant 0 : index
      %22 = vector.load %arg6[%c0_16, %c0_17] : memref<512x128xbf16, #tpu.memory_space<vmem>>, vector<512x128xbf16>
      tpu.vector_store %arg6[%c0_16, %c0_17], %21 {strides = array<i32>} : memref<512x128xbf16, #tpu.memory_space<vmem>>, vector<512x128xbf16>,
    } else {
    }
    return
  }
  func.func @transform_0(%arg0: i32, %arg1: i32, %arg2: i32) -> (i32, i32) {
    %c0_i32 = arith.constant 0 : i32
    return %arg0, %arg2 : i32, i32
  }
  func.func @transform_1(%arg0: i32, %arg1: i32, %arg2: i32) -> (i32, i32) {
    %c0_i32 = arith.constant 0 : i32
    return %arg2, %arg1 : i32, i32
  }
  func.func @transform_2(%arg0: i32, %arg1: i32, %arg2: i32) -> (i32, i32) {
    %c0_i32 = arith.constant 0 : i32
    %c0_i32_0 = arith.constant 0 : i32
    return %c0_i32, %arg1 : i32, i32
  }
  func.func @transform_3(%arg0: i32, %arg1: i32, %arg2: i32) -> (i32, i32) {
    %c0_i32 = arith.constant 0 : i32
    return %arg0, %arg1 : i32, i32
  }
}

module attributes {stable_mosaic.version = 11 : i64} {
  func.func @_conv3x3_res_kernel(%arg0: i32, %arg1: i32, %arg2: i32, %arg3: memref<1x256x128xbf16, #tpu.memory_space<vmem>>, %arg4: memref<1x256x128xbf16, #tpu.memory_space<vmem>>, %arg5: memref<9x128x128xbf16, #tpu.memory_space<vmem>>, %arg6: memref<1x128xf32, #tpu.memory_space<vmem>>, %arg7: memref<1x256x128xf32, #tpu.memory_space<vmem>>, %arg8: memref<1x256x128xf32, #tpu.memory_space<vmem>>, %arg9: memref<512x128xf32, #tpu.memory_space<vmem>>) attributes {dimension_semantics = [#tpu.dimension_semantics<parallel>, #tpu.dimension_semantics<parallel>, #tpu.dimension_semantics<arbitrary>], iteration_bounds = array<i64: 2, 2, 1>, scalar_prefetch = 0 : i64, scratch_operands = 1 : i64, tpu.core_type = #tpu.core_type<tc>, window_params = [{transform_indices = @transform_0, window_bounds = array<i64: 1, 256, 128>}, {transform_indices = @transform_1, window_bounds = array<i64: 1, 256, 128>}, {transform_indices = @transform_2, window_bounds = array<i64: 9, 128, 128>}, {transform_indices = @transform_3, window_bounds = array<i64: 1, 128>}, {transform_indices = @transform_4, window_bounds = array<i64: 1, 256, 128>}, {transform_indices = @transform_5, window_bounds = array<i64: 1, 256, 128>}]} {
    %c0 = arith.constant 0 : index
    %c0_0 = arith.constant 0 : index
    %c0_1 = arith.constant 0 : index
    %0 = vector.load %arg3[%c0, %c0_0, %c0_1] : memref<1x256x128xbf16, #tpu.memory_space<vmem>>, vector<1x256x128xbf16>
    %1 = vector.shape_cast %0 : vector<1x256x128xbf16> to vector<256x128xbf16>
    %2 = arith.extf %1 : vector<256x128xbf16> to vector<256x128xf32>
    %c0_2 = arith.constant 0 : index
    %c0_3 = arith.constant 0 : index
    %3 = vector.load %arg9[%c0_2, %c0_3] : memref<512x128xf32, #tpu.memory_space<vmem>>, vector<256x128xf32>
    tpu.vector_store %arg9[%c0_2, %c0_3], %2 {strides = array<i32>} : memref<512x128xf32, #tpu.memory_space<vmem>>, vector<256x128xf32>,
    %c0_4 = arith.constant 0 : index
    %c0_5 = arith.constant 0 : index
    %c0_6 = arith.constant 0 : index
    %4 = vector.load %arg4[%c0_4, %c0_5, %c0_6] : memref<1x256x128xbf16, #tpu.memory_space<vmem>>, vector<1x256x128xbf16>
    %5 = vector.shape_cast %4 : vector<1x256x128xbf16> to vector<256x128xbf16>
    %6 = arith.extf %5 : vector<256x128xbf16> to vector<256x128xf32>
    %c256 = arith.constant 256 : index
    %c0_7 = arith.constant 0 : index
    %7 = vector.load %arg9[%c256, %c0_7] : memref<512x128xf32, #tpu.memory_space<vmem>>, vector<256x128xf32>
    tpu.vector_store %arg9[%c256, %c0_7], %6 {strides = array<i32>} : memref<512x128xf32, #tpu.memory_space<vmem>>, vector<256x128xf32>,
    %cst = arith.constant 0.000000e+00 : f32
    %8 = vector.broadcast %cst : f32 to vector<256x128xf32>
    %c0_8 = arith.constant 0 : index
    %c0_9 = arith.constant 0 : index
    %9 = vector.load %arg9[%c0_8, %c0_9] : memref<512x128xf32, #tpu.memory_space<vmem>>, vector<256x128xf32>
    %10 = arith.truncf %9 : vector<256x128xf32> to vector<256x128xbf16>
    %c0_10 = arith.constant 0 : index
    %c0_11 = arith.constant 0 : index
    %c0_12 = arith.constant 0 : index
    %11 = vector.load %arg5[%c0_10, %c0_11, %c0_12] : memref<9x128x128xbf16, #tpu.memory_space<vmem>>, vector<1x128x128xbf16>
    %12 = vector.shape_cast %11 : vector<1x128x128xbf16> to vector<128x128xbf16>
    %cst_13 = arith.constant dense<0.000000e+00> : vector<256x128xf32>
    %13 = tpu.matmul %10, %12, %cst_13 {dimension_numbers = #tpu.dot_dimension_numbers<[1], [0], [0], [1], [0, 0, 1, 1], [], []>} : vector<256x128xbf16>, vector<128x128xbf16>, vector<256x128xf32> -> vector<256x128xf32>
    %14 = arith.addf %8, %13 : vector<256x128xf32>
    %c1 = arith.constant 1 : index
    %c0_14 = arith.constant 0 : index
    %15 = vector.load %arg9[%c1, %c0_14] : memref<512x128xf32, #tpu.memory_space<vmem>>, vector<256x128xf32>
    %16 = arith.truncf %15 : vector<256x128xf32> to vector<256x128xbf16>
    %c1_15 = arith.constant 1 : index
    %c0_16 = arith.constant 0 : index
    %c0_17 = arith.constant 0 : index
    %17 = vector.load %arg5[%c1_15, %c0_16, %c0_17] : memref<9x128x128xbf16, #tpu.memory_space<vmem>>, vector<1x128x128xbf16>
    %18 = vector.shape_cast %17 : vector<1x128x128xbf16> to vector<128x128xbf16>
    %cst_18 = arith.constant dense<0.000000e+00> : vector<256x128xf32>
    %19 = tpu.matmul %16, %18, %cst_18 {dimension_numbers = #tpu.dot_dimension_numbers<[1], [0], [0], [1], [0, 0, 1, 1], [], []>} : vector<256x128xbf16>, vector<128x128xbf16>, vector<256x128xf32> -> vector<256x128xf32>
    %20 = arith.addf %14, %19 : vector<256x128xf32>
    %c2 = arith.constant 2 : index
    %c0_19 = arith.constant 0 : index
    %21 = vector.load %arg9[%c2, %c0_19] : memref<512x128xf32, #tpu.memory_space<vmem>>, vector<256x128xf32>
    %22 = arith.truncf %21 : vector<256x128xf32> to vector<256x128xbf16>
    %c2_20 = arith.constant 2 : index
    %c0_21 = arith.constant 0 : index
    %c0_22 = arith.constant 0 : index
    %23 = vector.load %arg5[%c2_20, %c0_21, %c0_22] : memref<9x128x128xbf16, #tpu.memory_space<vmem>>, vector<1x128x128xbf16>
    %24 = vector.shape_cast %23 : vector<1x128x128xbf16> to vector<128x128xbf16>
    %cst_23 = arith.constant dense<0.000000e+00> : vector<256x128xf32>
    %25 = tpu.matmul %22, %24, %cst_23 {dimension_numbers = #tpu.dot_dimension_numbers<[1], [0], [0], [1], [0, 0, 1, 1], [], []>} : vector<256x128xbf16>, vector<128x128xbf16>, vector<256x128xf32> -> vector<256x128xf32>
    %26 = arith.addf %20, %25 : vector<256x128xf32>
    %c18 = arith.constant 18 : index
    %c0_24 = arith.constant 0 : index
    %27 = vector.load %arg9[%c18, %c0_24] : memref<512x128xf32, #tpu.memory_space<vmem>>, vector<256x128xf32>
    %28 = arith.truncf %27 : vector<256x128xf32> to vector<256x128xbf16>
    %c3 = arith.constant 3 : index
    %c0_25 = arith.constant 0 : index
    %c0_26 = arith.constant 0 : index
    %29 = vector.load %arg5[%c3, %c0_25, %c0_26] : memref<9x128x128xbf16, #tpu.memory_space<vmem>>, vector<1x128x128xbf16>
    %30 = vector.shape_cast %29 : vector<1x128x128xbf16> to vector<128x128xbf16>
    %cst_27 = arith.constant dense<0.000000e+00> : vector<256x128xf32>
    %31 = tpu.matmul %28, %30, %cst_27 {dimension_numbers = #tpu.dot_dimension_numbers<[1], [0], [0], [1], [0, 0, 1, 1], [], []>} : vector<256x128xbf16>, vector<128x128xbf16>, vector<256x128xf32> -> vector<256x128xf32>
    %32 = arith.addf %26, %31 : vector<256x128xf32>
    %c19 = arith.constant 19 : index
    %c0_28 = arith.constant 0 : index
    %33 = vector.load %arg9[%c19, %c0_28] : memref<512x128xf32, #tpu.memory_space<vmem>>, vector<256x128xf32>
    %34 = arith.truncf %33 : vector<256x128xf32> to vector<256x128xbf16>
    %c4 = arith.constant 4 : index
    %c0_29 = arith.constant 0 : index
    %c0_30 = arith.constant 0 : index
    %35 = vector.load %arg5[%c4, %c0_29, %c0_30] : memref<9x128x128xbf16, #tpu.memory_space<vmem>>, vector<1x128x128xbf16>
    %36 = vector.shape_cast %35 : vector<1x128x128xbf16> to vector<128x128xbf16>
    %cst_31 = arith.constant dense<0.000000e+00> : vector<256x128xf32>
    %37 = tpu.matmul %34, %36, %cst_31 {dimension_numbers = #tpu.dot_dimension_numbers<[1], [0], [0], [1], [0, 0, 1, 1], [], []>} : vector<256x128xbf16>, vector<128x128xbf16>, vector<256x128xf32> -> vector<256x128xf32>
    %38 = arith.addf %32, %37 : vector<256x128xf32>
    %c20 = arith.constant 20 : index
    %c0_32 = arith.constant 0 : index
    %39 = vector.load %arg9[%c20, %c0_32] : memref<512x128xf32, #tpu.memory_space<vmem>>, vector<256x128xf32>
    %40 = arith.truncf %39 : vector<256x128xf32> to vector<256x128xbf16>
    %c5 = arith.constant 5 : index
    %c0_33 = arith.constant 0 : index
    %c0_34 = arith.constant 0 : index
    %41 = vector.load %arg5[%c5, %c0_33, %c0_34] : memref<9x128x128xbf16, #tpu.memory_space<vmem>>, vector<1x128x128xbf16>
    %42 = vector.shape_cast %41 : vector<1x128x128xbf16> to vector<128x128xbf16>
    %cst_35 = arith.constant dense<0.000000e+00> : vector<256x128xf32>
    %43 = tpu.matmul %40, %42, %cst_35 {dimension_numbers = #tpu.dot_dimension_numbers<[1], [0], [0], [1], [0, 0, 1, 1], [], []>} : vector<256x128xbf16>, vector<128x128xbf16>, vector<256x128xf32> -> vector<256x128xf32>
    %44 = arith.addf %38, %43 : vector<256x128xf32>
    %c36 = arith.constant 36 : index
    %c0_36 = arith.constant 0 : index
    %45 = vector.load %arg9[%c36, %c0_36] : memref<512x128xf32, #tpu.memory_space<vmem>>, vector<256x128xf32>
    %46 = arith.truncf %45 : vector<256x128xf32> to vector<256x128xbf16>
    %c6 = arith.constant 6 : index
    %c0_37 = arith.constant 0 : index
    %c0_38 = arith.constant 0 : index
    %47 = vector.load %arg5[%c6, %c0_37, %c0_38] : memref<9x128x128xbf16, #tpu.memory_space<vmem>>, vector<1x128x128xbf16>
    %48 = vector.shape_cast %47 : vector<1x128x128xbf16> to vector<128x128xbf16>
    %cst_39 = arith.constant dense<0.000000e+00> : vector<256x128xf32>
    %49 = tpu.matmul %46, %48, %cst_39 {dimension_numbers = #tpu.dot_dimension_numbers<[1], [0], [0], [1], [0, 0, 1, 1], [], []>} : vector<256x128xbf16>, vector<128x128xbf16>, vector<256x128xf32> -> vector<256x128xf32>
    %50 = arith.addf %44, %49 : vector<256x128xf32>
    %c37 = arith.constant 37 : index
    %c0_40 = arith.constant 0 : index
    %51 = vector.load %arg9[%c37, %c0_40] : memref<512x128xf32, #tpu.memory_space<vmem>>, vector<256x128xf32>
    %52 = arith.truncf %51 : vector<256x128xf32> to vector<256x128xbf16>
    %c7 = arith.constant 7 : index
    %c0_41 = arith.constant 0 : index
    %c0_42 = arith.constant 0 : index
    %53 = vector.load %arg5[%c7, %c0_41, %c0_42] : memref<9x128x128xbf16, #tpu.memory_space<vmem>>, vector<1x128x128xbf16>
    %54 = vector.shape_cast %53 : vector<1x128x128xbf16> to vector<128x128xbf16>
    %cst_43 = arith.constant dense<0.000000e+00> : vector<256x128xf32>
    %55 = tpu.matmul %52, %54, %cst_43 {dimension_numbers = #tpu.dot_dimension_numbers<[1], [0], [0], [1], [0, 0, 1, 1], [], []>} : vector<256x128xbf16>, vector<128x128xbf16>, vector<256x128xf32> -> vector<256x128xf32>
    %56 = arith.addf %50, %55 : vector<256x128xf32>
    %c38 = arith.constant 38 : index
    %c0_44 = arith.constant 0 : index
    %57 = vector.load %arg9[%c38, %c0_44] : memref<512x128xf32, #tpu.memory_space<vmem>>, vector<256x128xf32>
    %58 = arith.truncf %57 : vector<256x128xf32> to vector<256x128xbf16>
    %c8 = arith.constant 8 : index
    %c0_45 = arith.constant 0 : index
    %c0_46 = arith.constant 0 : index
    %59 = vector.load %arg5[%c8, %c0_45, %c0_46] : memref<9x128x128xbf16, #tpu.memory_space<vmem>>, vector<1x128x128xbf16>
    %60 = vector.shape_cast %59 : vector<1x128x128xbf16> to vector<128x128xbf16>
    %cst_47 = arith.constant dense<0.000000e+00> : vector<256x128xf32>
    %61 = tpu.matmul %58, %60, %cst_47 {dimension_numbers = #tpu.dot_dimension_numbers<[1], [0], [0], [1], [0, 0, 1, 1], [], []>} : vector<256x128xbf16>, vector<128x128xbf16>, vector<256x128xf32> -> vector<256x128xf32>
    %62 = arith.addf %56, %61 : vector<256x128xf32>
    %c0_48 = arith.constant 0 : index
    %c0_49 = arith.constant 0 : index
    %63 = vector.load %arg6[%c0_48, %c0_49] : memref<1x128xf32, #tpu.memory_space<vmem>>, vector<1x128xf32>
    %64 = vector.broadcast %63 : vector<1x128xf32> to vector<256x128xf32>
    %65 = arith.addf %62, %64 : vector<256x128xf32>
    %cst_50 = arith.constant 0.000000e+00 : f32
    %66 = vector.broadcast %cst_50 : f32 to vector<256x128xf32>
    %67 = arith.cmpf ogt, %65, %66 : vector<256x128xf32>
    %cst_51 = arith.constant 1.000000e-01 : f32
    %68 = vector.broadcast %cst_51 : f32 to vector<256x128xf32>
    %69 = arith.mulf %68, %65 : vector<256x128xf32>
    %70 = arith.select %67, %65, %69 : vector<256x128xi1>, vector<256x128xf32>
    %c0_52 = arith.constant 0 : index
    %c0_53 = arith.constant 0 : index
    %c0_54 = arith.constant 0 : index
    %71 = vector.load %arg7[%c0_52, %c0_53, %c0_54] : memref<1x256x128xf32, #tpu.memory_space<vmem>>, vector<1x256x128xf32>
    %72 = vector.shape_cast %71 : vector<1x256x128xf32> to vector<256x128xf32>
    %73 = arith.addf %70, %72 : vector<256x128xf32>
    %c0_55 = arith.constant 0 : index
    %c0_56 = arith.constant 0 : index
    %c0_57 = arith.constant 0 : index
    %74 = vector.load %arg8[%c0_55, %c0_56, %c0_57] : memref<1x256x128xf32, #tpu.memory_space<vmem>>, vector<1x256x128xf32>
    %75 = vector.shape_cast %74 : vector<1x256x128xf32> to vector<256x128xf32>
    %76 = vector.shape_cast %73 : vector<256x128xf32> to vector<1x256x128xf32>
    tpu.vector_store %arg8[%c0_55, %c0_56, %c0_57], %76 {strides = array<i32>} : memref<1x256x128xf32, #tpu.memory_space<vmem>>, vector<1x256x128xf32>,
    return
  }
  func.func @transform_0(%arg0: i32, %arg1: i32, %arg2: i32) -> (i32, i32, i32) {
    %c0_i32 = arith.constant 0 : i32
    %c0_i32_0 = arith.constant 0 : i32
    return %arg0, %arg1, %c0_i32 : i32, i32, i32
  }
  func.func @transform_1(%arg0: i32, %arg1: i32, %arg2: i32) -> (i32, i32, i32) {
    %c1_i32 = arith.constant 1 : i32
    %0 = arith.addi %arg1, %c1_i32 : i32
    %c0_i32 = arith.constant 0 : i32
    %c0_i32_0 = arith.constant 0 : i32
    return %arg0, %0, %c0_i32 : i32, i32, i32
  }
  func.func @transform_2(%arg0: i32, %arg1: i32, %arg2: i32) -> (i32, i32, i32) {
    %c0_i32 = arith.constant 0 : i32
    %c0_i32_0 = arith.constant 0 : i32
    %c0_i32_1 = arith.constant 0 : i32
    return %c0_i32, %c0_i32_0, %arg2 : i32, i32, i32
  }
  func.func @transform_3(%arg0: i32, %arg1: i32, %arg2: i32) -> (i32, i32) {
    %c0_i32 = arith.constant 0 : i32
    %c0_i32_0 = arith.constant 0 : i32
    return %c0_i32, %arg2 : i32, i32
  }
  func.func @transform_4(%arg0: i32, %arg1: i32, %arg2: i32) -> (i32, i32, i32) {
    %c0_i32 = arith.constant 0 : i32
    return %arg0, %arg1, %arg2 : i32, i32, i32
  }
  func.func @transform_5(%arg0: i32, %arg1: i32, %arg2: i32) -> (i32, i32, i32) {
    %c0_i32 = arith.constant 0 : i32
    return %arg0, %arg1, %arg2 : i32, i32, i32
  }
}

</mosaic_0001>

<bundles_post_ra>
// kernel: res_layer_forward.2
= control target key start
LH: loop header
LB: loop body
LE: loop exit
PB: predicated region body
PF: predicated region fallthrough
CT: control target
= control target key end

     0   :  { %s1943_s1 = inlined_call_operand.vmem [shape: bf16[128,128], index: 1, kind: input, shape index: {}]   ;;  %s1944_s2 = inlined_call_operand.vmem [shape: f32[1,128], index: 2, kind: input, shape index: {}]   ;;  %s1945_s0 = inlined_call_operand.vmem [shape: bf16[512,128], index: 0, kind: input, shape index: {}]   ;;  %s1946_s3 = inlined_call_operand.vmem [shape: bf16[512,128], index: 3, kind: output, shape index: {}]  }
   0x1   :  { %v1421_v0 = vld [vmem:[%s1943_s1 + $0x38] sm:$0xff]  ;;  %v1420_v1 = vld [vmem:[%s1943_s1 + $0x30] sm:$0xff]  ;;  %v1419_v2 = vld [vmem:[%s1943_s1 + $0x28] sm:$0xff] }
   0x2   :  { %466 = vmatpush.bf16.msra.mxu0 %v1421_v0  ;;  %1613 = vmatpush.bf16.msra.mxu1 %v1421_v0  ;;  %v1418_v3 = vld [vmem:[%s1943_s1 + $0x20] sm:$0xff]  ;;  %v1417_v4 = vld [vmem:[%s1943_s1 + $0x18] sm:$0xff]  ;;  %v1416_v5 = vld [vmem:[%s1943_s1 + $0x10] sm:$0xff] }
   0x3   :  { %1614 = vmatpush.bf16.msra.mxu2 %v1421_v0  ;;  %1615 = vmatpush.bf16.msra.mxu3 %v1421_v0  ;;  %v1415_v6 = vld [vmem:[%s1943_s1 + $0x8] sm:$0xff]  ;;  %v1414_v7 = vld [vmem:[%s1943_s1] sm:$0xff]  ;;  %v1384_v16 = vld [vmem:[%s1945_s0 + $0x10] sm:$0xff] }
   0x4   :  { %v1382_v8 = vld [vmem:[%s1945_s0] sm:$0xff]  ;;  %v1383_v12 = vld [vmem:[%s1945_s0 + $0x8] sm:$0xff]  ;;  %v1392_v17 = vld [vmem:[%s1945_s0 + $0x50] sm:$0xff] }
   0x5   :  { %v1390_v9 = vld [vmem:[%s1945_s0 + $0x40] sm:$0xff]  ;;  %v1391_v13 = vld [vmem:[%s1945_s0 + $0x48] sm:$0xff]  ;;  %v1400_v18 = vld [vmem:[%s1945_s0 + $0x90] sm:$0xff] }
   0x6   :  { %467 = vmatpush.bf16.msra.mxu0 %v1420_v1  ;;  %1616 = vmatpush.bf16.msra.mxu1 %v1420_v1  ;;  %v1398_v10 = vld [vmem:[%s1945_s0 + $0x80] sm:$0xff]  ;;  %v1399_v14 = vld [vmem:[%s1945_s0 + $0x88] sm:$0xff]  ;;  %v1408_v19 = vld [vmem:[%s1945_s0 + $0xd0] sm:$0xff] }
   0x7   :  { %1617 = vmatpush.bf16.msra.mxu2 %v1420_v1  ;;  %1618 = vmatpush.bf16.msra.mxu3 %v1420_v1  ;;  %v1406_v11 = vld [vmem:[%s1945_s0 + $0xc0] sm:$0xff]  ;;  %v1407_v15 = vld [vmem:[%s1945_s0 + $0xc8] sm:$0xff]  ;;  %v1385_v20 = vld [vmem:[%s1945_s0 + $0x18] sm:$0xff] }
   0x8   :  { %v1393_v21 = vld [vmem:[%s1945_s0 + $0x58] sm:$0xff]  ;;  %v1386_v24 = vld [vmem:[%s1945_s0 + $0x20] sm:$0xff]  ;;  %v1387_v28 = vld [vmem:[%s1945_s0 + $0x28] sm:$0xff] }
   0x9   :  { %v1401_v22 = vld [vmem:[%s1945_s0 + $0x98] sm:$0xff]  ;;  %v1394_v25 = vld [vmem:[%s1945_s0 + $0x60] sm:$0xff]  ;;  %v1395_v29 = vld [vmem:[%s1945_s0 + $0x68] sm:$0xff] }
   0xa   :  { %468 = vmatpush.bf16.msra.mxu0 %v1419_v2  ;;  %1619 = vmatpush.bf16.msra.mxu1 %v1419_v2  ;;  %v1409_v23 = vld [vmem:[%s1945_s0 + $0xd8] sm:$0xff]  ;;  %v1402_v26 = vld [vmem:[%s1945_s0 + $0xa0] sm:$0xff]  ;;  %v1403_v30 = vld [vmem:[%s1945_s0 + $0xa8] sm:$0xff] }
   0xb   :  { %1620 = vmatpush.bf16.msra.mxu2 %v1419_v2  ;;  %1621 = vmatpush.bf16.msra.mxu3 %v1419_v2  ;;  %v1410_v27 = vld [vmem:[%s1945_s0 + $0xe0] sm:$0xff]  ;;  %v1411_v31 = vld [vmem:[%s1945_s0 + $0xe8] sm:$0xff]  ;;  %v1388_v32 = vld [vmem:[%s1945_s0 + $0x30] sm:$0xff] }
   0xc   :  { %v1396_v33 = vld [vmem:[%s1945_s0 + $0x70] sm:$0xff]  ;;  %v1389_v36 = vld [vmem:[%s1945_s0 + $0x38] sm:$0xff]  ;;  %v1781_v42 = vld [vmem:[%s1944_s2] ss:$0 sm:$0xff] }
   0xd   :  { %v1404_v34 = vld [vmem:[%s1945_s0 + $0xb0] sm:$0xff]  ;;  %v1397_v37 = vld [vmem:[%s1945_s0 + $0x78] sm:$0xff] }
   0xe   :  { %469 = vmatpush.bf16.msra.mxu0 %v1418_v3  ;;  %1622 = vmatpush.bf16.msra.mxu1 %v1418_v3  ;;  %v1412_v35 = vld [vmem:[%s1945_s0 + $0xf0] sm:$0xff]  ;;  %v1405_v38 = vld [vmem:[%s1945_s0 + $0xb8] sm:$0xff] }
   0xf   :  { %1623 = vmatpush.bf16.msra.mxu2 %v1418_v3  ;;  %1624 = vmatpush.bf16.msra.mxu3 %v1418_v3  ;;  %v1413_v39 = vld [vmem:[%s1945_s0 + $0xf8] sm:$0xff] }
  0x12   :  { %470 = vmatpush.bf16.msra.mxu0 %v1417_v4  ;;  %1625 = vmatpush.bf16.msra.mxu1 %v1417_v4 }
  0x13   :  { %1626 = vmatpush.bf16.msra.mxu2 %v1417_v4  ;;  %1627 = vmatpush.bf16.msra.mxu3 %v1417_v4 }
  0x16   :  { %471 = vmatpush.bf16.msra.mxu0 %v1416_v5  ;;  %1628 = vmatpush.bf16.msra.mxu1 %v1416_v5 }
  0x17   :  { %1629 = vmatpush.bf16.msra.mxu2 %v1416_v5  ;;  %1630 = vmatpush.bf16.msra.mxu3 %v1416_v5 }
  0x1a   :  { %472 = vmatpush.bf16.msra.mxu0 %v1415_v6  ;;  %1631 = vmatpush.bf16.msra.mxu1 %v1415_v6 }
  0x1b   :  { %1632 = vmatpush.bf16.msra.mxu2 %v1415_v6  ;;  %1633 = vmatpush.bf16.msra.mxu3 %v1415_v6 }
  0x1e   :  { %473 = vmatpush.bf16.msra.mxu0 %v1414_v7  ;;  %1634 = vmatpush.bf16.msra.mxu1 %v1414_v7 }
  0x1f   :  { %1635 = vmatpush.bf16.msra.mxu2 %v1414_v7  ;;  %1636 = vmatpush.bf16.msra.mxu3 %v1414_v7 }
  0x21   :  { %474 = vmatmul.bf16.vlgmr.msra.gmra.mxu0 %v1382_v8  ;;  %514 = vmatmul.bf16.vlgmr.msra.gmra.mxu1 %v1390_v9 }
  0x22   :  { %554 = vmatmul.bf16.vlgmr.msra.gmra.mxu2 %v1398_v10  ;;  %594 = vmatmul.bf16.vlgmr.msra.gmra.mxu3 %v1406_v11 }
  0x31   :  { %479 = vmatmul.bf16.gmra.mxu0 %v1383_v12  ;;  %519 = vmatmul.bf16.gmra.mxu1 %v1391_v13 }
  0x32   :  { %559 = vmatmul.bf16.gmra.mxu2 %v1399_v14  ;;  %599 = vmatmul.bf16.gmra.mxu3 %v1407_v15 }
  0x41   :  { %484 = vmatmul.bf16.gmra.mxu0 %v1384_v16  ;;  %524 = vmatmul.bf16.gmra.mxu1 %v1392_v17 }
  0x42   :  { %564 = vmatmul.bf16.gmra.mxu2 %v1400_v18  ;;  %604 = vmatmul.bf16.gmra.mxu3 %v1408_v19 }
  0x51   :  { %489 = vmatmul.bf16.gmra.mxu0 %v1385_v20  ;;  %529 = vmatmul.bf16.gmra.mxu1 %v1393_v21 }
  0x52   :  { %569 = vmatmul.bf16.gmra.mxu2 %v1401_v22  ;;  %609 = vmatmul.bf16.gmra.mxu3 %v1409_v23 }
  0x61   :  { %494 = vmatmul.bf16.gmra.mxu0 %v1386_v24  ;;  %534 = vmatmul.bf16.gmra.mxu1 %v1394_v25 }
  0x62   :  { %574 = vmatmul.bf16.gmra.mxu2 %v1402_v26  ;;  %614 = vmatmul.bf16.gmra.mxu3 %v1410_v27 }
  0x71   :  { %499 = vmatmul.bf16.gmra.mxu0 %v1387_v28  ;;  %539 = vmatmul.bf16.gmra.mxu1 %v1395_v29 }
  0x72   :  { %579 = vmatmul.bf16.gmra.mxu2 %v1403_v30  ;;  %619 = vmatmul.bf16.gmra.mxu3 %v1411_v31 }
  0x81   :  { %504 = vmatmul.bf16.gmra.mxu0 %v1388_v32  ;;  %544 = vmatmul.bf16.gmra.mxu1 %v1396_v33 }
  0x82   :  { %584 = vmatmul.bf16.gmra.mxu2 %v1404_v34  ;;  %624 = vmatmul.bf16.gmra.mxu3 %v1412_v35 }
  0x91   :  { %509 = vmatmul.bf16.gmra.mxu0 %v1389_v36  ;;  %549 = vmatmul.bf16.gmra.mxu1 %v1397_v37 }
  0x92   :  { %589 = vmatmul.bf16.gmra.mxu2 %v1405_v38  ;;  %629 = vmatmul.bf16.gmra.mxu3 %v1413_v39 }
  0x9e   :  { %v475_v40 = vpop.f32.mrf.mxu0  ;;  %v515_v41 = vpop.f32.mrf.mxu1 }
  0x9f   :  { %v834_v43 = vadd.f32 %v1781_v42, %v475_v40  ;;  %v850_v44 = vadd.f32 %v1781_v42, %v515_v41 }
  0xa1   :  { %v962_v49 = vmul.f32 0.1, %v834_v43  ;;  %v978_v50 = vmul.f32 0.1, %v850_v44  ;;  %vm898_vm0 = vcmp.gt.f32.partialorder %v834_v43, 0.0  ;;  %vm914_vm1 = vcmp.gt.f32.partialorder %v850_v44, 0.0 }
  0xa3   :  { %v1026_v57 = vsel %vm898_vm0, %v834_v43, %v962_v49  ;;  %v1042_v58 = vsel %vm914_vm1, %v850_v44, %v978_v50 }
  0xa5   :  { %v555_v45 = vpop.f32.mrf.mxu2  ;;  %v595_v46 = vpop.f32.mrf.mxu3 }
  0xa6   :  { %v477_v47 = vpop.f32.mrf.mxu0  ;;  %v517_v48 = vpop.f32.mrf.mxu1  ;;  %v866_v55 = vadd.f32 %v1781_v42, %v555_v45  ;;  %v882_v56 = vadd.f32 %v1781_v42, %v595_v46 }
  0xa7   :  { %v835_v51 = vadd.f32 %v1781_v42, %v477_v47  ;;  %v851_v52 = vadd.f32 %v1781_v42, %v517_v48 }
  0xa8   :  { %v994_v1 = vmul.f32 0.1, %v866_v55  ;;  %v1010_v2 = vmul.f32 0.1, %v882_v56  ;;  %vm930_vm4 = vcmp.gt.f32.partialorder %v866_v55, 0.0  ;;  %vm946_vm5 = vcmp.gt.f32.partialorder %v882_v56, 0.0 }
  0xa9   :  { %vm899_vm2 = vcmp.gt.f32.partialorder %v835_v51, 0.0  ;;  %v963_v53 = vmul.f32 0.1, %v835_v51  ;;  %vm915_vm3 = vcmp.gt.f32.partialorder %v851_v52, 0.0  ;;  %v979_v54 = vmul.f32 0.1, %v851_v52 }
  0xaa   :  { %v1058_v9 = vsel %vm930_vm4, %v866_v55, %v994_v1  ;;  %v1074_v10 = vsel %vm946_vm5, %v882_v56, %v1010_v2 }
  0xab   :  { %v1027_v59 = vsel %vm899_vm2, %v835_v51, %v963_v53  ;;  %v1043_v60 = vsel %vm915_vm3, %v851_v52, %v979_v54 }
  0xac   :  { %v1425_v61 = vpack.c.bf16 %v1027_v59, %v1026_v57  ;;  %v1465_v62 = vpack.c.bf16 %v1043_v60, %v1042_v58 }
  0xad   :  { %v557_v63 = vpop.f32.mrf.mxu2  ;;  %v597_v0 = vpop.f32.mrf.mxu3 }
  0xae   :  { %1426 = vst [vmem:[%s1946_s3] sm:$0xff] %v1425_v61   ;;  %v867_v3 = vadd.f32 %v1781_v42, %v557_v63  ;;  %v883_v4 = vadd.f32 %v1781_v42, %v597_v0  ;;  %v480_v5 = vpop.f32.mrf.mxu0  ;;  %v520_v6 = vpop.f32.mrf.mxu1 }
  0xaf   :  { %1589 = vst [vmem:[%s1946_s3 + $0x40] sm:$0xff] %v1465_v62   ;;  %v836_v15 = vadd.f32 %v1781_v42, %v480_v5  ;;  %v852_v16 = vadd.f32 %v1781_v42, %v520_v6 }
  0xb0   :  { %vm931_vm6 = vcmp.gt.f32.partialorder %v867_v3, 0.0  ;;  %v995_v7 = vmul.f32 0.1, %v867_v3  ;;  %vm947_vm7 = vcmp.gt.f32.partialorder %v883_v4, 0.0  ;;  %v1011_v8 = vmul.f32 0.1, %v883_v4 }
  0xb1   :  { %v964_v21 = vmul.f32 0.1, %v836_v15  ;;  %v980_v22 = vmul.f32 0.1, %v852_v16  ;;  %vm900_vm8 = vcmp.gt.f32.partialorder %v836_v15, 0.0  ;;  %vm916_vm9 = vcmp.gt.f32.partialorder %v852_v16, 0.0 }
  0xb2   :  { %v1059_v11 = vsel %vm931_vm6, %v867_v3, %v995_v7  ;;  %v1075_v12 = vsel %vm947_vm7, %v883_v4, %v1011_v8 }
  0xb3   :  { %v1505_v13 = vpack.c.bf16 %v1059_v11, %v1058_v9  ;;  %v1545_v14 = vpack.c.bf16 %v1075_v12, %v1074_v10  ;;  %v1028_v29 = vsel %vm900_vm8, %v836_v15, %v964_v21  ;;  %v1044_v30 = vsel %vm916_vm9, %v852_v16, %v980_v22 }
  0xb5   :  { %1597 = vst [vmem:[%s1946_s3 + $0x80] sm:$0xff] %v1505_v13   ;;  %v560_v17 = vpop.f32.mrf.mxu2  ;;  %v600_v18 = vpop.f32.mrf.mxu3 }
  0xb6   :  { %1605 = vst [vmem:[%s1946_s3 + $0xc0] sm:$0xff] %v1545_v14   ;;  %v482_v19 = vpop.f32.mrf.mxu0  ;;  %v522_v20 = vpop.f32.mrf.mxu1  ;;  %v868_v27 = vadd.f32 %v1781_v42, %v560_v17  ;;  %v884_v28 = vadd.f32 %v1781_v42, %v600_v18 }
  0xb7   :  { %v837_v23 = vadd.f32 %v1781_v42, %v482_v19  ;;  %v853_v24 = vadd.f32 %v1781_v42, %v522_v20 }
  0xb8   :  { %v996_v37 = vmul.f32 0.1, %v868_v27  ;;  %v1012_v38 = vmul.f32 0.1, %v884_v28  ;;  %vm932_vm12 = vcmp.gt.f32.partialorder %v868_v27, 0.0  ;;  %vm948_vm13 = vcmp.gt.f32.partialorder %v884_v28, 0.0 }
  0xb9   :  { %vm901_vm10 = vcmp.gt.f32.partialorder %v837_v23, 0.0  ;;  %v965_v25 = vmul.f32 0.1, %v837_v23  ;;  %vm917_vm11 = vcmp.gt.f32.partialorder %v853_v24, 0.0  ;;  %v981_v26 = vmul.f32 0.1, %v853_v24 }
  0xba   :  { %v1060_v46 = vsel %vm932_vm12, %v868_v27, %v996_v37  ;;  %v1076_v47 = vsel %vm948_vm13, %v884_v28, %v1012_v38 }
  0xbb   :  { %v1029_v31 = vsel %vm901_vm10, %v837_v23, %v965_v25  ;;  %v1045_v32 = vsel %vm917_vm11, %v853_v24, %v981_v26 }
  0xbc   :  { %v1430_v33 = vpack.c.bf16 %v1029_v31, %v1028_v29  ;;  %v1470_v34 = vpack.c.bf16 %v1045_v32, %v1044_v30 }
  0xbd   :  { %v562_v35 = vpop.f32.mrf.mxu2  ;;  %v602_v36 = vpop.f32.mrf.mxu3 }
  0xbe   :  { %1582 = vst [vmem:[%s1946_s3 + $0x8] sm:$0xff] %v1430_v33   ;;  %v869_v39 = vadd.f32 %v1781_v42, %v562_v35  ;;  %v885_v40 = vadd.f32 %v1781_v42, %v602_v36  ;;  %v485_v41 = vpop.f32.mrf.mxu0  ;;  %v525_v43 = vpop.f32.mrf.mxu1 }
  0xbf   :  { %1590 = vst [vmem:[%s1946_s3 + $0x48] sm:$0xff] %v1470_v34   ;;  %v838_v52 = vadd.f32 %v1781_v42, %v485_v41  ;;  %v854_v53 = vadd.f32 %v1781_v42, %v525_v43 }
  0xc0   :  { %vm933_vm14 = vcmp.gt.f32.partialorder %v869_v39, 0.0  ;;  %v997_v44 = vmul.f32 0.1, %v869_v39  ;;  %vm949_vm15 = vcmp.gt.f32.partialorder %v885_v40, 0.0  ;;  %v1013_v45 = vmul.f32 0.1, %v885_v40 }
  0xc1   :  { %v966_v58 = vmul.f32 0.1, %v838_v52  ;;  %v982_v59 = vmul.f32 0.1, %v854_v53  ;;  %vm902_vm0 = vcmp.gt.f32.partialorder %v838_v52, 0.0  ;;  %vm918_vm1 = vcmp.gt.f32.partialorder %v854_v53, 0.0 }
  0xc2   :  { %v1061_v48 = vsel %vm933_vm14, %v869_v39, %v997_v44  ;;  %v1077_v49 = vsel %vm949_vm15, %v885_v40, %v1013_v45 }
  0xc3   :  { %v1510_v50 = vpack.c.bf16 %v1061_v48, %v1060_v46  ;;  %v1550_v51 = vpack.c.bf16 %v1077_v49, %v1076_v47  ;;  %v1030_v2 = vsel %vm902_vm0, %v838_v52, %v966_v58  ;;  %v1046_v3 = vsel %vm918_vm1, %v854_v53, %v982_v59 }
  0xc5   :  { %1598 = vst [vmem:[%s1946_s3 + $0x88] sm:$0xff] %v1510_v50   ;;  %v565_v54 = vpop.f32.mrf.mxu2  ;;  %v605_v55 = vpop.f32.mrf.mxu3 }
  0xc6   :  { %1606 = vst [vmem:[%s1946_s3 + $0xc8] sm:$0xff] %v1550_v51   ;;  %v487_v56 = vpop.f32.mrf.mxu0  ;;  %v527_v57 = vpop.f32.mrf.mxu1  ;;  %v870_v0 = vadd.f32 %v1781_v42, %v565_v54  ;;  %v886_v1 = vadd.f32 %v1781_v42, %v605_v55 }
  0xc7   :  { %v839_v60 = vadd.f32 %v1781_v42, %v487_v56  ;;  %v855_v61 = vadd.f32 %v1781_v42, %v527_v57 }
  0xc8   :  { %v998_v10 = vmul.f32 0.1, %v870_v0  ;;  %v1014_v11 = vmul.f32 0.1, %v886_v1  ;;  %vm934_vm4 = vcmp.gt.f32.partialorder %v870_v0, 0.0  ;;  %vm950_vm5 = vcmp.gt.f32.partialorder %v886_v1, 0.0 }
  0xc9   :  { %vm903_vm2 = vcmp.gt.f32.partialorder %v839_v60, 0.0  ;;  %v967_v62 = vmul.f32 0.1, %v839_v60  ;;  %vm919_vm3 = vcmp.gt.f32.partialorder %v855_v61, 0.0  ;;  %v983_v63 = vmul.f32 0.1, %v855_v61 }
  0xca   :  { %v1062_v18 = vsel %vm934_vm4, %v870_v0, %v998_v10  ;;  %v1078_v19 = vsel %vm950_vm5, %v886_v1, %v1014_v11 }
  0xcb   :  { %v1031_v4 = vsel %vm903_vm2, %v839_v60, %v967_v62  ;;  %v1047_v5 = vsel %vm919_vm3, %v855_v61, %v983_v63 }
  0xcc   :  { %v1435_v6 = vpack.c.bf16 %v1031_v4, %v1030_v2  ;;  %v1475_v7 = vpack.c.bf16 %v1047_v5, %v1046_v3 }
  0xcd   :  { %v567_v8 = vpop.f32.mrf.mxu2  ;;  %v607_v9 = vpop.f32.mrf.mxu3 }
  0xce   :  { %1583 = vst [vmem:[%s1946_s3 + $0x10] sm:$0xff] %v1435_v6   ;;  %v871_v12 = vadd.f32 %v1781_v42, %v567_v8  ;;  %v887_v13 = vadd.f32 %v1781_v42, %v607_v9  ;;  %v490_v14 = vpop.f32.mrf.mxu0  ;;  %v530_v15 = vpop.f32.mrf.mxu1 }
  0xcf   :  { %1591 = vst [vmem:[%s1946_s3 + $0x50] sm:$0xff] %v1475_v7   ;;  %v840_v24 = vadd.f32 %v1781_v42, %v490_v14  ;;  %v856_v25 = vadd.f32 %v1781_v42, %v530_v15 }
  0xd0   :  { %vm935_vm6 = vcmp.gt.f32.partialorder %v871_v12, 0.0  ;;  %v999_v16 = vmul.f32 0.1, %v871_v12  ;;  %vm951_vm7 = vcmp.gt.f32.partialorder %v887_v13, 0.0  ;;  %v1015_v17 = vmul.f32 0.1, %v887_v13 }
  0xd1   :  { %v968_v30 = vmul.f32 0.1, %v840_v24  ;;  %v984_v31 = vmul.f32 0.1, %v856_v25  ;;  %vm904_vm8 = vcmp.gt.f32.partialorder %v840_v24, 0.0  ;;  %vm920_vm9 = vcmp.gt.f32.partialorder %v856_v25, 0.0 }
  0xd2   :  { %v1063_v20 = vsel %vm935_vm6, %v871_v12, %v999_v16  ;;  %v1079_v21 = vsel %vm951_vm7, %v887_v13, %v1015_v17 }
  0xd3   :  { %v1515_v22 = vpack.c.bf16 %v1063_v20, %v1062_v18  ;;  %v1555_v23 = vpack.c.bf16 %v1079_v21, %v1078_v19  ;;  %v1032_v38 = vsel %vm904_vm8, %v840_v24, %v968_v30  ;;  %v1048_v39 = vsel %vm920_vm9, %v856_v25, %v984_v31 }
  0xd5   :  { %1599 = vst [vmem:[%s1946_s3 + $0x90] sm:$0xff] %v1515_v22   ;;  %v570_v26 = vpop.f32.mrf.mxu2  ;;  %v610_v27 = vpop.f32.mrf.mxu3 }
  0xd6   :  { %1607 = vst [vmem:[%s1946_s3 + $0xd0] sm:$0xff] %v1555_v23   ;;  %v492_v28 = vpop.f32.mrf.mxu0  ;;  %v532_v29 = vpop.f32.mrf.mxu1  ;;  %v872_v36 = vadd.f32 %v1781_v42, %v570_v26  ;;  %v888_v37 = vadd.f32 %v1781_v42, %v610_v27 }
  0xd7   :  { %v841_v32 = vadd.f32 %v1781_v42, %v492_v28  ;;  %v857_v33 = vadd.f32 %v1781_v42, %v532_v29 }
  0xd8   :  { %v1000_v47 = vmul.f32 0.1, %v872_v36  ;;  %v1016_v48 = vmul.f32 0.1, %v888_v37  ;;  %vm936_vm12 = vcmp.gt.f32.partialorder %v872_v36, 0.0  ;;  %vm952_vm13 = vcmp.gt.f32.partialorder %v888_v37, 0.0 }
  0xd9   :  { %vm905_vm10 = vcmp.gt.f32.partialorder %v841_v32, 0.0  ;;  %v969_v34 = vmul.f32 0.1, %v841_v32  ;;  %vm921_vm11 = vcmp.gt.f32.partialorder %v857_v33, 0.0  ;;  %v985_v35 = vmul.f32 0.1, %v857_v33 }
  0xda   :  { %v1064_v55 = vsel %vm936_vm12, %v872_v36, %v1000_v47  ;;  %v1080_v56 = vsel %vm952_vm13, %v888_v37, %v1016_v48 }
  0xdb   :  { %v1033_v40 = vsel %vm905_vm10, %v841_v32, %v969_v34  ;;  %v1049_v41 = vsel %vm921_vm11, %v857_v33, %v985_v35 }
  0xdc   :  { %v1440_v43 = vpack.c.bf16 %v1033_v40, %v1032_v38  ;;  %v1480_v44 = vpack.c.bf16 %v1049_v41, %v1048_v39 }
  0xdd   :  { %v572_v45 = vpop.f32.mrf.mxu2  ;;  %v612_v46 = vpop.f32.mrf.mxu3 }
  0xde   :  { %1584 = vst [vmem:[%s1946_s3 + $0x18] sm:$0xff] %v1440_v43   ;;  %v873_v49 = vadd.f32 %v1781_v42, %v572_v45  ;;  %v889_v50 = vadd.f32 %v1781_v42, %v612_v46  ;;  %v495_v51 = vpop.f32.mrf.mxu0  ;;  %v535_v52 = vpop.f32.mrf.mxu1 }
  0xdf   :  { %1592 = vst [vmem:[%s1946_s3 + $0x58] sm:$0xff] %v1480_v44   ;;  %v842_v61 = vadd.f32 %v1781_v42, %v495_v51  ;;  %v858_v62 = vadd.f32 %v1781_v42, %v535_v52 }
  0xe0   :  { %vm937_vm14 = vcmp.gt.f32.partialorder %v873_v49, 0.0  ;;  %v1001_v53 = vmul.f32 0.1, %v873_v49  ;;  %vm953_vm15 = vcmp.gt.f32.partialorder %v889_v50, 0.0  ;;  %v1017_v54 = vmul.f32 0.1, %v889_v50 }
  0xe1   :  { %v970_v3 = vmul.f32 0.1, %v842_v61  ;;  %v986_v4 = vmul.f32 0.1, %v858_v62  ;;  %vm906_vm0 = vcmp.gt.f32.partialorder %v842_v61, 0.0  ;;  %vm922_vm1 = vcmp.gt.f32.partialorder %v858_v62, 0.0 }
  0xe2   :  { %v1065_v57 = vsel %vm937_vm14, %v873_v49, %v1001_v53  ;;  %v1081_v58 = vsel %vm953_vm15, %v889_v50, %v1017_v54 }
  0xe3   :  { %v1520_v59 = vpack.c.bf16 %v1065_v57, %v1064_v55  ;;  %v1560_v60 = vpack.c.bf16 %v1081_v58, %v1080_v56  ;;  %v1034_v11 = vsel %vm906_vm0, %v842_v61, %v970_v3  ;;  %v1050_v12 = vsel %vm922_vm1, %v858_v62, %v986_v4 }
  0xe5   :  { %1600 = vst [vmem:[%s1946_s3 + $0x98] sm:$0xff] %v1520_v59   ;;  %v575_v63 = vpop.f32.mrf.mxu2  ;;  %v615_v0 = vpop.f32.mrf.mxu3 }
  0xe6   :  { %1608 = vst [vmem:[%s1946_s3 + $0xd8] sm:$0xff] %v1560_v60   ;;  %v497_v1 = vpop.f32.mrf.mxu0  ;;  %v537_v2 = vpop.f32.mrf.mxu1  ;;  %v874_v9 = vadd.f32 %v1781_v42, %v575_v63  ;;  %v890_v10 = vadd.f32 %v1781_v42, %v615_v0 }
  0xe7   :  { %v843_v5 = vadd.f32 %v1781_v42, %v497_v1  ;;  %v859_v6 = vadd.f32 %v1781_v42, %v537_v2 }
  0xe8   :  { %v1002_v19 = vmul.f32 0.1, %v874_v9  ;;  %v1018_v20 = vmul.f32 0.1, %v890_v10  ;;  %vm938_vm4 = vcmp.gt.f32.partialorder %v874_v9, 0.0  ;;  %vm954_vm5 = vcmp.gt.f32.partialorder %v890_v10, 0.0 }
  0xe9   :  { %vm907_vm2 = vcmp.gt.f32.partialorder %v843_v5, 0.0  ;;  %v971_v7 = vmul.f32 0.1, %v843_v5  ;;  %vm923_vm3 = vcmp.gt.f32.partialorder %v859_v6, 0.0  ;;  %v987_v8 = vmul.f32 0.1, %v859_v6 }
  0xea   :  { %v1066_v27 = vsel %vm938_vm4, %v874_v9, %v1002_v19  ;;  %v1082_v28 = vsel %vm954_vm5, %v890_v10, %v1018_v20 }
  0xeb   :  { %v1035_v13 = vsel %vm907_vm2, %v843_v5, %v971_v7  ;;  %v1051_v14 = vsel %vm923_vm3, %v859_v6, %v987_v8 }
  0xec   :  { %v1445_v15 = vpack.c.bf16 %v1035_v13, %v1034_v11  ;;  %v1485_v16 = vpack.c.bf16 %v1051_v14, %v1050_v12 }
  0xed   :  { %v577_v17 = vpop.f32.mrf.mxu2  ;;  %v617_v18 = vpop.f32.mrf.mxu3 }
  0xee   :  { %1585 = vst [vmem:[%s1946_s3 + $0x20] sm:$0xff] %v1445_v15   ;;  %v875_v21 = vadd.f32 %v1781_v42, %v577_v17  ;;  %v891_v22 = vadd.f32 %v1781_v42, %v617_v18  ;;  %v500_v23 = vpop.f32.mrf.mxu0  ;;  %v540_v24 = vpop.f32.mrf.mxu1 }
  0xef   :  { %1593 = vst [vmem:[%s1946_s3 + $0x60] sm:$0xff] %v1485_v16   ;;  %v844_v33 = vadd.f32 %v1781_v42, %v500_v23  ;;  %v860_v34 = vadd.f32 %v1781_v42, %v540_v24 }
  0xf0   :  { %vm939_vm6 = vcmp.gt.f32.partialorder %v875_v21, 0.0  ;;  %v1003_v25 = vmul.f32 0.1, %v875_v21  ;;  %vm955_vm7 = vcmp.gt.f32.partialorder %v891_v22, 0.0  ;;  %v1019_v26 = vmul.f32 0.1, %v891_v22 }
  0xf1   :  { %v972_v39 = vmul.f32 0.1, %v844_v33  ;;  %v988_v40 = vmul.f32 0.1, %v860_v34  ;;  %vm908_vm8 = vcmp.gt.f32.partialorder %v844_v33, 0.0  ;;  %vm924_vm9 = vcmp.gt.f32.partialorder %v860_v34, 0.0 }
  0xf2   :  { %v1067_v29 = vsel %vm939_vm6, %v875_v21, %v1003_v25  ;;  %v1083_v30 = vsel %vm955_vm7, %v891_v22, %v1019_v26 }
  0xf3   :  { %v1525_v31 = vpack.c.bf16 %v1067_v29, %v1066_v27  ;;  %v1565_v32 = vpack.c.bf16 %v1083_v30, %v1082_v28  ;;  %v1036_v48 = vsel %vm908_vm8, %v844_v33, %v972_v39  ;;  %v1052_v49 = vsel %vm924_vm9, %v860_v34, %v988_v40 }
  0xf5   :  { %1601 = vst [vmem:[%s1946_s3 + $0xa0] sm:$0xff] %v1525_v31   ;;  %v580_v35 = vpop.f32.mrf.mxu2  ;;  %v620_v36 = vpop.f32.mrf.mxu3 }
  0xf6   :  { %1609 = vst [vmem:[%s1946_s3 + $0xe0] sm:$0xff] %v1565_v32   ;;  %v502_v37 = vpop.f32.mrf.mxu0  ;;  %v542_v38 = vpop.f32.mrf.mxu1  ;;  %v876_v46 = vadd.f32 %v1781_v42, %v580_v35  ;;  %v892_v47 = vadd.f32 %v1781_v42, %v620_v36 }
  0xf7   :  { %v845_v41 = vadd.f32 %v1781_v42, %v502_v37  ;;  %v861_v43 = vadd.f32 %v1781_v42, %v542_v38 }
  0xf8   :  { %v1004_v56 = vmul.f32 0.1, %v876_v46  ;;  %v1020_v57 = vmul.f32 0.1, %v892_v47  ;;  %vm940_vm12 = vcmp.gt.f32.partialorder %v876_v46, 0.0  ;;  %vm956_vm13 = vcmp.gt.f32.partialorder %v892_v47, 0.0 }
  0xf9   :  { %vm909_vm10 = vcmp.gt.f32.partialorder %v845_v41, 0.0  ;;  %v973_v44 = vmul.f32 0.1, %v845_v41  ;;  %vm925_vm11 = vcmp.gt.f32.partialorder %v861_v43, 0.0  ;;  %v989_v45 = vmul.f32 0.1, %v861_v43 }
  0xfa   :  { %v1068_v0 = vsel %vm940_vm12, %v876_v46, %v1004_v56  ;;  %v1084_v1 = vsel %vm956_vm13, %v892_v47, %v1020_v57 }
  0xfb   :  { %v1037_v50 = vsel %vm909_vm10, %v845_v41, %v973_v44  ;;  %v1053_v51 = vsel %vm925_vm11, %v861_v43, %v989_v45 }
  0xfc   :  { %v1450_v52 = vpack.c.bf16 %v1037_v50, %v1036_v48  ;;  %v1490_v53 = vpack.c.bf16 %v1053_v51, %v1052_v49 }
  0xfd   :  { %v582_v54 = vpop.f32.mrf.mxu2  ;;  %v622_v55 = vpop.f32.mrf.mxu3 }
  0xfe   :  { %1586 = vst [vmem:[%s1946_s3 + $0x28] sm:$0xff] %v1450_v52   ;;  %v877_v58 = vadd.f32 %v1781_v42, %v582_v54  ;;  %v893_v59 = vadd.f32 %v1781_v42, %v622_v55  ;;  %v505_v60 = vpop.f32.mrf.mxu0  ;;  %v545_v61 = vpop.f32.mrf.mxu1 }
  0xff   :  { %1594 = vst [vmem:[%s1946_s3 + $0x68] sm:$0xff] %v1490_v53   ;;  %v846_v6 = vadd.f32 %v1781_v42, %v505_v60  ;;  %v862_v7 = vadd.f32 %v1781_v42, %v545_v61 }
 0x100   :  { %vm941_vm14 = vcmp.gt.f32.partialorder %v877_v58, 0.0  ;;  %v1005_v62 = vmul.f32 0.1, %v877_v58  ;;  %vm957_vm15 = vcmp.gt.f32.partialorder %v893_v59, 0.0  ;;  %v1021_v63 = vmul.f32 0.1, %v893_v59 }
 0x101   :  { %v974_v12 = vmul.f32 0.1, %v846_v6  ;;  %v990_v13 = vmul.f32 0.1, %v862_v7  ;;  %vm910_vm0 = vcmp.gt.f32.partialorder %v846_v6, 0.0  ;;  %vm926_vm1 = vcmp.gt.f32.partialorder %v862_v7, 0.0 }
 0x102   :  { %v1069_v2 = vsel %vm941_vm14, %v877_v58, %v1005_v62  ;;  %v1085_v3 = vsel %vm957_vm15, %v893_v59, %v1021_v63 }
 0x103   :  { %v1530_v4 = vpack.c.bf16 %v1069_v2, %v1068_v0  ;;  %v1570_v5 = vpack.c.bf16 %v1085_v3, %v1084_v1  ;;  %v1038_v20 = vsel %vm910_vm0, %v846_v6, %v974_v12  ;;  %v1054_v21 = vsel %vm926_vm1, %v862_v7, %v990_v13 }
 0x105   :  { %1602 = vst [vmem:[%s1946_s3 + $0xa8] sm:$0xff] %v1530_v4   ;;  %v585_v8 = vpop.f32.mrf.mxu2  ;;  %v625_v9 = vpop.f32.mrf.mxu3 }
 0x106   :  { %1610 = vst [vmem:[%s1946_s3 + $0xe8] sm:$0xff] %v1570_v5   ;;  %v507_v10 = vpop.f32.mrf.mxu0  ;;  %v547_v11 = vpop.f32.mrf.mxu1  ;;  %v878_v18 = vadd.f32 %v1781_v42, %v585_v8  ;;  %v894_v19 = vadd.f32 %v1781_v42, %v625_v9 }
 0x107   :  { %v847_v14 = vadd.f32 %v1781_v42, %v507_v10  ;;  %v863_v15 = vadd.f32 %v1781_v42, %v547_v11 }
 0x108   :  { %v1006_v28 = vmul.f32 0.1, %v878_v18  ;;  %v1022_v29 = vmul.f32 0.1, %v894_v19  ;;  %vm942_vm4 = vcmp.gt.f32.partialorder %v878_v18, 0.0  ;;  %vm958_vm5 = vcmp.gt.f32.partialorder %v894_v19, 0.0 }
 0x109   :  { %vm911_vm2 = vcmp.gt.f32.partialorder %v847_v14, 0.0  ;;  %v975_v16 = vmul.f32 0.1, %v847_v14  ;;  %vm927_vm3 = vcmp.gt.f32.partialorder %v863_v15, 0.0  ;;  %v991_v17 = vmul.f32 0.1, %v863_v15 }
 0x10a   :  { %v1070_v36 = vsel %vm942_vm4, %v878_v18, %v1006_v28  ;;  %v1086_v37 = vsel %vm958_vm5, %v894_v19, %v1022_v29 }
 0x10b   :  { %v1039_v22 = vsel %vm911_vm2, %v847_v14, %v975_v16  ;;  %v1055_v23 = vsel %vm927_vm3, %v863_v15, %v991_v17 }
 0x10c   :  { %v1455_v24 = vpack.c.bf16 %v1039_v22, %v1038_v20  ;;  %v1495_v25 = vpack.c.bf16 %v1055_v23, %v1054_v21 }
 0x10d   :  { %v587_v26 = vpop.f32.mrf.mxu2  ;;  %v627_v27 = vpop.f32.mrf.mxu3 }
 0x10e   :  { %1587 = vst [vmem:[%s1946_s3 + $0x30] sm:$0xff] %v1455_v24   ;;  %v879_v30 = vadd.f32 %v1781_v42, %v587_v26  ;;  %v895_v31 = vadd.f32 %v1781_v42, %v627_v27  ;;  %v510_v32 = vpop.f32.mrf.mxu0  ;;  %v550_v33 = vpop.f32.mrf.mxu1 }
 0x10f   :  { %1595 = vst [vmem:[%s1946_s3 + $0x70] sm:$0xff] %v1495_v25   ;;  %v848_v43 = vadd.f32 %v1781_v42, %v510_v32  ;;  %v864_v44 = vadd.f32 %v1781_v42, %v550_v33 }
 0x110   :  { %vm943_vm6 = vcmp.gt.f32.partialorder %v879_v30, 0.0  ;;  %v1007_v34 = vmul.f32 0.1, %v879_v30  ;;  %vm959_vm7 = vcmp.gt.f32.partialorder %v895_v31, 0.0  ;;  %v1023_v35 = vmul.f32 0.1, %v895_v31 }
 0x111   :  { %v976_v49 = vmul.f32 0.1, %v848_v43  ;;  %v992_v50 = vmul.f32 0.1, %v864_v44  ;;  %vm912_vm8 = vcmp.gt.f32.partialorder %v848_v43, 0.0  ;;  %vm928_vm9 = vcmp.gt.f32.partialorder %v864_v44, 0.0 }
 0x112   :  { %v1071_v38 = vsel %vm943_vm6, %v879_v30, %v1007_v34  ;;  %v1087_v39 = vsel %vm959_vm7, %v895_v31, %v1023_v35 }
 0x113   :  { %v1535_v40 = vpack.c.bf16 %v1071_v38, %v1070_v36  ;;  %v1575_v41 = vpack.c.bf16 %v1087_v39, %v1086_v37  ;;  %v1040_v57 = vsel %vm912_vm8, %v848_v43, %v976_v49  ;;  %v1056_v58 = vsel %vm928_vm9, %v864_v44, %v992_v50 }
 0x115   :  { %1603 = vst [vmem:[%s1946_s3 + $0xb0] sm:$0xff] %v1535_v40   ;;  %v590_v45 = vpop.f32.mrf.mxu2  ;;  %v630_v46 = vpop.f32.mrf.mxu3 }
 0x116   :  { %1611 = vst [vmem:[%s1946_s3 + $0xf0] sm:$0xff] %v1575_v41   ;;  %v512_v47 = vpop.f32.mrf.mxu0  ;;  %v552_v48 = vpop.f32.mrf.mxu1  ;;  %v880_v55 = vadd.f32 %v1781_v42, %v590_v45  ;;  %v896_v56 = vadd.f32 %v1781_v42, %v630_v46 }
 0x117   :  { %v849_v51 = vadd.f32 %v1781_v42, %v512_v47  ;;  %v865_v52 = vadd.f32 %v1781_v42, %v552_v48 }
 0x118   :  { %v1008_v1 = vmul.f32 0.1, %v880_v55  ;;  %v1024_v2 = vmul.f32 0.1, %v896_v56  ;;  %vm944_vm12 = vcmp.gt.f32.partialorder %v880_v55, 0.0  ;;  %vm960_vm13 = vcmp.gt.f32.partialorder %v896_v56, 0.0 }
 0x119   :  { %vm913_vm10 = vcmp.gt.f32.partialorder %v849_v51, 0.0  ;;  %v977_v53 = vmul.f32 0.1, %v849_v51  ;;  %vm929_vm11 = vcmp.gt.f32.partialorder %v865_v52, 0.0  ;;  %v993_v54 = vmul.f32 0.1, %v865_v52 }
 0x11a   :  { %v1072_v7 = vsel %vm944_vm12, %v880_v55, %v1008_v1  ;;  %v1088_v8 = vsel %vm960_vm13, %v896_v56, %v1024_v2 }
 0x11b   :  { %v1041_v59 = vsel %vm913_vm10, %v849_v51, %v977_v53  ;;  %v1057_v60 = vsel %vm929_vm11, %v865_v52, %v993_v54 }
 0x11c   :  { %v1460_v61 = vpack.c.bf16 %v1041_v59, %v1040_v57  ;;  %v1500_v62 = vpack.c.bf16 %v1057_v60, %v1056_v58 }
 0x11d   :  { %v592_v63 = vpop.f32.mrf.mxu2  ;;  %v632_v0 = vpop.f32.mrf.mxu3 }
 0x11e   :  { %1588 = vst [vmem:[%s1946_s3 + $0x38] sm:$0xff] %v1460_v61   ;;  %v881_v3 = vadd.f32 %v1781_v42, %v592_v63  ;;  %v897_v4 = vadd.f32 %v1781_v42, %v632_v0 }
 0x11f   :  { %1596 = vst [vmem:[%s1946_s3 + $0x78] sm:$0xff] %v1500_v62  }
 0x120   :  { %vm945_vm14 = vcmp.gt.f32.partialorder %v881_v3, 0.0  ;;  %v1009_v5 = vmul.f32 0.1, %v881_v3  ;;  %vm961_vm15 = vcmp.gt.f32.partialorder %v897_v4, 0.0  ;;  %v1025_v6 = vmul.f32 0.1, %v897_v4 }
 0x122   :  { %v1073_v9 = vsel %vm945_vm14, %v881_v3, %v1009_v5  ;;  %v1089_v10 = vsel %vm961_vm15, %v897_v4, %v1025_v6 }
 0x123   :  { %v1540_v11 = vpack.c.bf16 %v1073_v9, %v1072_v7  ;;  %v1580_v12 = vpack.c.bf16 %v1089_v10, %v1088_v8 }
 0x125   :  { %1604 = vst [vmem:[%s1946_s3 + $0xb8] sm:$0xff] %v1540_v11  }
 0x126   :  { %1612 = vst [vmem:[%s1946_s3 + $0xf8] sm:$0xff] %v1580_v12  }

// kernel: res_layer_forward.3
= control target key start
LH: loop header
LB: loop body
LE: loop exit
PB: predicated region body
PF: predicated region fallthrough
CT: control target
= control target key end

     0   :  { %s3843_s18 = smov 0   ;;  %s3845_s19 = smov 0   ;;  %s4515_s0 = inlined_call_operand.vmem [shape: bf16[2,768,128], index: 0, kind: input, shape index: {}, may-alias: {0,1}]   ;;  %s4516_s1 = inlined_call_operand.vmem [shape: bf16[2,768,128], index: 1, kind: input, shape index: {}, may-alias: {0,1}]   ;;  %s4517_s2 = inlined_call_operand.vmem [shape: bf16[9,128,128], index: 2, kind: input, shape index: {}]   ;;  %s4518_s3 = inlined_call_operand.vmem [shape: f32[1,128], index: 3, kind: input, shape index: {}]   ;;  %s4519_s4 = inlined_call_operand.vmem [shape: f32[2,512,128], index: 4, kind: input, shape index: {}]   ;;  %s4520_s5 = inlined_call_operand.vmem [shape: f32[2,512,128], index: 5, kind: output, shape index: {}]  }
   0x1   :  { %s3847_s20 = smov 0   ;;  %s3849_s21 = smov 0  }
   0x2   :  { %s3851_s22 = smov 0  }
   0x3 LB: > { %s30_s23 = sadd.s32 1, %s3803_s20  ;;  %s34_s24 = sadd.s32 1, %s3807_s21  ;;  %s3811_s22 = sphi %s3851_s22, %s15_s22   ;;  %s3807_s21 = sphi %s3849_s21, %s4525_s21   ;;  %s3803_s20 = sphi %s3847_s20, %s4524_s20   ;;  %s3799_s19 = sphi %s3845_s19, %s4523_s19   ;;  %s3795_s18 = sphi %s3843_s18, %s4522_s18  }
   0x4   : > { %p32_p0 = scmp.ge.s32.totalorder %s30_s23, 2  ;;  %p3036_p1 = scmp.ge.s32.totalorder %s3811_s22, 1 }
   0x5   : > { %p277_p2 = scmp.lt.s32.totalorder %s3811_s22, 5 }
   0x6   : > { %s4527_s23 = smov (%p32_p0, %s30_s23), 0  ;;  %s4529_s24 = smov (!%p32_p0, %s34_s24), %s3807_s21 }
   0x7   : > { %p278_p3 = pnand %p3036_p1, %p277_p2  ;;  %p36_p4 = scmp.ge.s32.totalorder %s4529_s24, 2 }
   0x8   : > { %s3876_s27 = sshll.u32 (!%p278_p3), %s3795_s18, 5  ;;  %p346_p5 = scmp.lt.s32.totalorder (!%p278_p3), %s3799_s19, 1 }
   0x9   : > { %s4531_s24 = smov (%p36_p4, %s4529_s24), 0  ;;  %281 = sbr.rel (%p278_p3) target bundleno = 760 (0x2f8), region = 40 }
   0xa   : > { %p348_p6 = scmp.lt.s32.totalorder (!%p278_p3), %s3876_s27, 95  ;;  %p377_p7 = scmp.lt.s32.totalorder (!%p278_p3), %s3876_s27, 63 }
   0xe   : > { %v3482_v0 = vld [vmem:[%s4517_s2 + $0x78] sm:$0xff]  ;;  %v3481_v1 = vld [vmem:[%s4517_s2 + $0x70] sm:$0xff]  ;;  %s4533_s19 = smov (!%p346_p5, %s3799_s19), 1  ;;  %v3480_v2 = vld [vmem:[%s4517_s2 + $0x68] sm:$0xff] }
   0xf   : > { %3697 = vmatpush.bf16.msra.mxu1 %v3482_v0  ;;  %3698 = vmatpush.bf16.msra.mxu2 %v3482_v0  ;;  %s349_s30 = scalar_select %p348_p6, %s3876_s27, 95  ;;  %v3479_v6 = vld [vmem:[%s4517_s2 + $0x60] sm:$0xff]  ;;  %v3478_v16 = vld [vmem:[%s4517_s2 + $0x58] sm:$0xff]  ;;  %v3477_v23 = vld [vmem:[%s4517_s2 + $0x50] sm:$0xff] }
  0x10   : > { %3699 = vmatpush.bf16.msra.mxu3 %v3482_v0  ;;  %769 = vmatpush.bf16.msra.mxu0 %v3482_v0  ;;  %s3721_s6 = smul.u32 96, %s4533_s19  ;;  %s3042_s7 = sshll.u32 %s4533_s19, 6  ;;  %v3476_v30 = vld [vmem:[%s4517_s2 + $0x48] sm:$0xff]  ;;  %v3475_v36 = vld [vmem:[%s4517_s2 + $0x40] sm:$0xff]  ;;  %v3490_v47 = vld [vmem:[%s4517_s2 + $0xb8] sm:$0xff] }
  0x11   : > { %s378_s8 = scalar_select %p377_p7, %s3876_s27, 63  ;;  %v3498_v48 = vld [vmem:[%s4517_s2 + $0xf8] sm:$0xff]  ;;  %v3489_v63 = vld [vmem:[%s4517_s2 + $0xb0] sm:$0xff] }
  0x12   : > { %s351_s11 = sadd.s32 %s3721_s6, %s349_s30  ;;  %s3466_s30 = sadd.s32 32, %s3876_s27  ;;  %v3474_v60 = vld [vmem:[%s4517_s2 + $0x38] sm:$0xff]  ;;  %v3497_v0 = vld [vmem:[%s4517_s2 + $0xf0] sm:$0xff] }
  0x13   : > { %3700 = vmatpush.bf16.msra.mxu1 %v3481_v1  ;;  %3701 = vmatpush.bf16.msra.mxu2 %v3481_v1  ;;  %s3038_s12 = sshll.u32 %s351_s11, 2  ;;  %s3894_s13 = sadd.s32 %s3042_s7, %s378_s8  ;;  %v3506_v61 = vld [vmem:[%s4517_s2 + $0x138] sm:$0xff] }
  0x14   : > { %3702 = vmatpush.bf16.msra.mxu3 %v3481_v1  ;;  %770 = vmatpush.bf16.msra.mxu0 %v3481_v1  ;;  %s3899_s16 = scalar_lea.vmem %s4515_s0, %s3038_s12  ;;  %p3935_p8 = scmp.lt.s32.totalorder %s3466_s30, 95 }
  0x15   : > { %v3670_v3 = vld [vmem:[%s3899_s16 + $0x20] sm:$0xff]   ;;  %v3671_v4 = vld [vmem:[%s3899_s16 + $0x28] sm:$0xff]   ;;  %v3927_v25 = vld [vmem:[%s3899_s16 + $0x30] sm:$0xff]   ;;  %s3043_s29 = sshll.u32 %s3894_s13, 3 }
  0x16   : > { %v3674_v5 = vld [vmem:[%s3899_s16 + $0x40] sm:$0xff]   ;;  %v3557_v7 = vunpack.c.l.bf16 %v3670_v3  ;;  %v3558_v8 = vunpack.c.h.bf16 %v3670_v3  ;;  %v3561_v9 = vunpack.c.l.bf16 %v3671_v4  ;;  %v3908_v10 = vld [vmem:[%s3899_s16 + $0x48] sm:$0xff]   ;;  %v3562_v27 = vunpack.c.h.bf16 %v3671_v4  ;;  %v3932_v28 = vld [vmem:[%s3899_s16 + $0x50] sm:$0xff]   ;;  %s4535_s30 = smov (!%p3935_p8, %s3466_s30), 95  ;;  %s4365_s9 = scalar_lea.vmem %s4519_s4, %s3043_s29 }
  0x17   : > { %3703 = vmatpush.bf16.msra.mxu1 %v3480_v2  ;;  %3704 = vmatpush.bf16.msra.mxu2 %v3480_v2  ;;  %v3573_v11 = vunpack.c.l.bf16 %v3674_v5  ;;  %v3678_v12 = vld [vmem:[%s3899_s16 + $0x60] sm:$0xff]   ;;  %v3574_v13 = vunpack.c.h.bf16 %v3674_v5  ;;  %v3577_v14 = vunpack.c.l.bf16 %v3908_v10  ;;  %v3913_v15 = vld [vmem:[%s3899_s16 + $0x68] sm:$0xff]   ;;  %v3565_v29 = vunpack.c.l.bf16 %v3927_v25  ;;  %v3944_v32 = vld [vmem:[%s3899_s16 + $0x70] sm:$0xff]   ;;  %s3975_s17 = sadd.s32 %s3721_s6, %s4535_s30  ;;  %s4373_s11 = scalar_lea.vmem %s4520_s5, %s3043_s29 }
  0x18   : > { %3705 = vmatpush.bf16.msra.mxu3 %v3480_v2  ;;  %771 = vmatpush.bf16.msra.mxu0 %v3480_v2  ;;  %472 = vst [vmem:[#allocation2 + $0x40] sm:$0xff] %v3557_v7  ;;  %v3589_v17 = vunpack.c.l.bf16 %v3678_v12  ;;  %v3540_v18 = vld [vmem:[%s3899_s16] sm:$0xff]   ;;  %v3590_v19 = vunpack.c.h.bf16 %v3678_v12  ;;  %v3593_v20 = vunpack.c.l.bf16 %v3913_v15  ;;  %v3921_v21 = vld [vmem:[%s3899_s16 + $0x8] sm:$0xff]   ;;  %v3578_v31 = vunpack.c.h.bf16 %v3908_v10  ;;  %v3949_v35 = vld [vmem:[%s3899_s16 + $0x10] sm:$0xff]   ;;  %s3040_s7 = sshll.u32 %s3975_s17, 2 }
  0x19   : > { %473 = vst [vmem:[#allocation2 + $0x48] sm:$0xff] %v3558_v8  ;;  %v3541_v22 = vunpack.c.l.bf16 %v3540_v18  ;;  %v3542_v24 = vunpack.c.h.bf16 %v3540_v18  ;;  %v3545_v26 = vunpack.c.l.bf16 %v3921_v21  ;;  %v3581_v33 = vunpack.c.l.bf16 %v3932_v28  ;;  %v3959_v43 = vld [vmem:[%s3899_s16 + $0x38] sm:$0xff]   ;;  %v3473_v5 = vld [vmem:[%s4517_s2 + $0x30] sm:$0xff]  ;;  %s4007_s14 = scalar_lea.vmem %s4516_s1, %s3040_s7  ;;  %v3488_v8 = vld [vmem:[%s4517_s2 + $0xa8] sm:$0xff] }
  0x1a   : > { %474 = vst [vmem:[#allocation2 + $0x50] sm:$0xff] %v3561_v9  ;;  %v3594_v34 = vunpack.c.h.bf16 %v3913_v15  ;;  %v3597_v39 = vunpack.c.l.bf16 %v3944_v32  ;;  %v3546_v42 = vunpack.c.h.bf16 %v3921_v21  ;;  %v3549_v46 = vunpack.c.l.bf16 %v3949_v35  ;;  %v3970_v50 = vld [vmem:[%s3899_s16 + $0x58] sm:$0xff]   ;;  %v3496_v9 = vld [vmem:[%s4517_s2 + $0xe8] sm:$0xff]  ;;  %v3495_v18 = vld [vmem:[%s4517_s2 + $0xe0] sm:$0xff] }
  0x1b   : > { %3706 = vmatpush.bf16.msra.mxu1 %v3479_v6  ;;  %3707 = vmatpush.bf16.msra.mxu2 %v3479_v6  ;;  %480 = vst [vmem:[#allocation2 + $0x80] sm:$0xff] %v3573_v11  ;;  %v3566_v49 = vunpack.c.h.bf16 %v3927_v25  ;;  %v3569_v54 = vunpack.c.l.bf16 %v3959_v43  ;;  %v3582_v57 = vunpack.c.h.bf16 %v3932_v28  ;;  %v3681_v58 = vld [vmem:[%s3899_s16 + $0x78] sm:$0xff]   ;;  %v3585_v62 = vunpack.c.l.bf16 %v3970_v50  ;;  %v3504_v15 = vld [vmem:[%s4517_s2 + $0x128] sm:$0xff] }
  0x1c   : > { %3708 = vmatpush.bf16.msra.mxu3 %v3479_v6  ;;  %772 = vmatpush.bf16.msra.mxu0 %v3479_v6  ;;  %481 = vst [vmem:[#allocation2 + $0x88] sm:$0xff] %v3574_v13  ;;  %v3598_v1 = vunpack.c.h.bf16 %v3944_v32  ;;  %v3669_v2 = vld [vmem:[%s3899_s16 + $0x18] sm:$0xff]   ;;  %v3601_v3 = vunpack.c.l.bf16 %v3681_v58  ;;  %v3550_v4 = vunpack.c.h.bf16 %v3949_v35  ;;  %v3505_v6 = vld [vmem:[%s4517_s2 + $0x130] sm:$0xff]  ;;  %v3570_v10 = vunpack.c.h.bf16 %v3959_v43  ;;  %v3604_v13 = vld [vmem:[%s4007_s14] sm:$0xff]  }
  0x1d   : > { %482 = vst [vmem:[#allocation2 + $0x90] sm:$0xff] %v3577_v14  ;;  %v3553_v7 = vunpack.c.l.bf16 %v3669_v2  ;;  %v3586_v11 = vunpack.c.h.bf16 %v3970_v50  ;;  %v3602_v12 = vunpack.c.h.bf16 %v3681_v58  ;;  %v3472_v14 = vld [vmem:[%s4517_s2 + $0x28] sm:$0xff]  ;;  %v3494_v32 = vld [vmem:[%s4517_s2 + $0xd8] sm:$0xff] }
  0x1e   : > { %488 = vst [vmem:[#allocation2 + $0xc0] sm:$0xff] %v3589_v17  ;;  %v3487_v17 = vld [vmem:[%s4517_s2 + $0xa0] sm:$0xff]  ;;  %v3484_v43 = vld [vmem:[%s4517_s2 + $0x88] sm:$0xff] }
  0x1f   : > { %3709 = vmatpush.bf16.msra.mxu1 %v3478_v16  ;;  %3710 = vmatpush.bf16.msra.mxu2 %v3478_v16  ;;  %489 = vst [vmem:[#allocation2 + $0xc8] sm:$0xff] %v3590_v19  ;;  %v3554_v19 = vunpack.c.h.bf16 %v3669_v2  ;;  %v3522_v2 = vld [vmem:[%s4517_s2 + $0x1b8] sm:$0xff]  ;;  %v3524_v28 = vld [vmem:[%s4517_s2 + $0x1c8] sm:$0xff] }
  0x20   : > { %3711 = vmatpush.bf16.msra.mxu3 %v3478_v16  ;;  %773 = vmatpush.bf16.msra.mxu0 %v3478_v16  ;;  %490 = vst [vmem:[#allocation2 + $0xd0] sm:$0xff] %v3593_v20  ;;  %v664_v37 = vld [vmem:[#allocation2 + $0x41] sm:$0xff]  ;;  %v3605_v16 = vunpack.c.l.bf16 %v3604_v13 }
  0x21   : > { %464 = vst [vmem:[#allocation2] sm:$0xff] %v3541_v22  ;;  %v665_v38 = vld [vmem:[#allocation2 + $0x49] sm:$0xff] }
  0x22   : > { %465 = vst [vmem:[#allocation2 + $0x8] sm:$0xff] %v3542_v24  ;;  %v692_v51 = vpack.c.bf16 %v665_v38, %v664_v37  ;;  %v3470_v37 = vld [vmem:[%s4517_s2 + $0x18] sm:$0xff] }
  0x23   : > { %3712 = vmatpush.bf16.msra.mxu1 %v3477_v23  ;;  %3713 = vmatpush.bf16.msra.mxu2 %v3477_v23  ;;  %466 = vst [vmem:[#allocation2 + $0x10] sm:$0xff] %v3545_v26  ;;  %v672_v40 = vld [vmem:[#allocation2 + $0x81] sm:$0xff]  ;;  %v3502_v38 = vld [vmem:[%s4517_s2 + $0x118] sm:$0xff] }
  0x24   : > { %3714 = vmatpush.bf16.msra.mxu3 %v3477_v23  ;;  %774 = vmatpush.bf16.msra.mxu0 %v3477_v23  ;;  %475 = vst [vmem:[#allocation2 + $0x58] sm:$0xff] %v3562_v27  ;;  %v673_v41 = vld [vmem:[#allocation2 + $0x89] sm:$0xff]  ;;  %v3471_v23 = vld [vmem:[%s4517_s2 + $0x20] sm:$0xff] }
  0x25   : > { %476 = vst [vmem:[#allocation2 + $0x60] sm:$0xff] %v3565_v29  ;;  %v696_v52 = vpack.c.bf16 %v673_v41, %v672_v40  ;;  %v3503_v26 = vld [vmem:[%s4517_s2 + $0x120] sm:$0xff]  ;;  %v3493_v40 = vld [vmem:[%s4517_s2 + $0xd0] sm:$0xff]  ;;  %v3606_v41 = vunpack.c.h.bf16 %v3604_v13 }
  0x26   : > { %483 = vst [vmem:[#allocation2 + $0x98] sm:$0xff] %v3578_v31  ;;  %v680_v44 = vld [vmem:[#allocation2 + $0xc1] sm:$0xff]  ;;  %v3486_v31 = vld [vmem:[%s4517_s2 + $0x98] sm:$0xff] }
  0x27   : > { %3715 = vmatpush.bf16.msra.mxu1 %v3476_v30  ;;  %3716 = vmatpush.bf16.msra.mxu2 %v3476_v30  ;;  %v681_v45 = vld [vmem:[#allocation2 + $0xc9] sm:$0xff]  ;;  %484 = vst [vmem:[#allocation2 + $0xa0] sm:$0xff] %v3581_v33 }
  0x28   : > { %3717 = vmatpush.bf16.msra.mxu3 %v3476_v30  ;;  %775 = vmatpush.bf16.msra.mxu0 %v3476_v30  ;;  %491 = vst [vmem:[#allocation2 + $0xd8] sm:$0xff] %v3594_v34  ;;  %v700_v55 = vpack.c.bf16 %v681_v45, %v680_v44  ;;  %v3492_v44 = vld [vmem:[%s4517_s2 + $0xc8] sm:$0xff]  ;;  %v3501_v45 = vld [vmem:[%s4517_s2 + $0x110] sm:$0xff] }
  0x29   : > { %v656_v53 = vld [vmem:[#allocation2 + $0x1] sm:$0xff]  ;;  %492 = vst [vmem:[#allocation2 + $0xe0] sm:$0xff] %v3597_v39  ;;  %v3485_v39 = vld [vmem:[%s4517_s2 + $0x90] sm:$0xff] }
  0x2a   : > { %v657_v56 = vld [vmem:[#allocation2 + $0x9] sm:$0xff]  ;;  %467 = vst [vmem:[#allocation2 + $0x18] sm:$0xff] %v3546_v42 }
  0x2b   : > { %3718 = vmatpush.bf16.msra.mxu1 %v3475_v36  ;;  %3719 = vmatpush.bf16.msra.mxu2 %v3475_v36  ;;  %v688_v59 = vpack.c.bf16 %v657_v56, %v656_v53  ;;  %468 = vst [vmem:[#allocation2 + $0x20] sm:$0xff] %v3549_v46  ;;  %v666_v20 = vld [vmem:[#allocation2 + $0x51] sm:$0xff]  ;;  %v3468_v46 = vld [vmem:[%s4517_s2 + $0x8] sm:$0xff]  ;;  %v3491_v53 = vld [vmem:[%s4517_s2 + $0xc0] sm:$0xff] }
  0x2c   : > { %3720 = vmatpush.bf16.msra.mxu3 %v3475_v36  ;;  %776 = vmatpush.bf16.msra.mxu0 %v3475_v36  ;;  %477 = vst [vmem:[#allocation2 + $0x68] sm:$0xff] %v3566_v49  ;;  %v667_v21 = vld [vmem:[#allocation2 + $0x59] sm:$0xff]  ;;  %v3469_v42 = vld [vmem:[%s4517_s2 + $0x10] sm:$0xff] }
  0x2d   : > { %478 = vst [vmem:[#allocation2 + $0x70] sm:$0xff] %v3569_v54  ;;  %v674_v22 = vld [vmem:[#allocation2 + $0x91] sm:$0xff]  ;;  %v693_v33 = vpack.c.bf16 %v667_v21, %v666_v20  ;;  %v3500_v54 = vld [vmem:[%s4517_s2 + $0x108] sm:$0xff] }
  0x2e   : > { %797 = vmatmul.bf16.vlgmr.msra.gmra.mxu1 %v692_v51  ;;  %817 = vmatmul.bf16.vlgmr.msra.gmra.mxu2 %v696_v52  ;;  %485 = vst [vmem:[#allocation2 + $0xa8] sm:$0xff] %v3582_v57  ;;  %v675_v24 = vld [vmem:[#allocation2 + $0x99] sm:$0xff]  ;;  %v996_v20 = vld [vmem:[#allocation2 + $0xa] sm:$0xff] }
  0x2f   : > { %1108 = vmatpush.bf16.msrb.mxu2 %v3490_v47  ;;  %837 = vmatmul.bf16.vlgmr.msra.gmra.mxu3 %v700_v55  ;;  %486 = vst [vmem:[#allocation2 + $0xb0] sm:$0xff] %v3585_v62  ;;  %v682_v25 = vld [vmem:[#allocation2 + $0xd1] sm:$0xff]  ;;  %v697_v34 = vpack.c.bf16 %v675_v24, %v674_v22  ;;  %v3483_v52 = vld [vmem:[%s4517_s2 + $0x80] sm:$0xff] }
  0x30   : > { %1342 = vmatpush.bf16.msrb.mxu3 %v3498_v48  ;;  %777 = vmatmul.bf16.vlgmr.msra.gmra.mxu0 %v688_v59  ;;  %493 = vst [vmem:[#allocation2 + $0xe8] sm:$0xff] %v3598_v1  ;;  %v683_v27 = vld [vmem:[#allocation2 + $0xd9] sm:$0xff] }
  0x31   : > { %906 = vmatpush.bf16.msrb.mxu1 %v3474_v60  ;;  %1576 = vmatpush.bf16.msrb.mxu0 %v3506_v61  ;;  %494 = vst [vmem:[#allocation2 + $0xf0] sm:$0xff] %v3601_v3  ;;  %v658_v29 = vld [vmem:[#allocation2 + $0x11] sm:$0xff]  ;;  %v701_v35 = vpack.c.bf16 %v683_v27, %v682_v25  ;;  %v3467_v60 = vld [vmem:[%s4517_s2] sm:$0xff] }
  0x32   : > { %469 = vst [vmem:[#allocation2 + $0x28] sm:$0xff] %v3550_v4  ;;  %v659_v30 = vld [vmem:[#allocation2 + $0x19] sm:$0xff] }
  0x33   : > { %1109 = vmatpush.bf16.msrb.mxu2 %v3489_v63  ;;  %470 = vst [vmem:[#allocation2 + $0x30] sm:$0xff] %v3553_v7  ;;  %v689_v36 = vpack.c.bf16 %v659_v30, %v658_v29  ;;  %v668_v47 = vld [vmem:[#allocation2 + $0x61] sm:$0xff]  ;;  %v3530_v3 = vld [vmem:[%s4517_s2 + $0x1f8] sm:$0xff]  ;;  %v3521_v30 = vld [vmem:[%s4517_s2 + $0x1b0] sm:$0xff] }
  0x34   : > { %1343 = vmatpush.bf16.msrb.mxu3 %v3497_v0  ;;  %479 = vst [vmem:[#allocation2 + $0x78] sm:$0xff] %v3570_v10  ;;  %v669_v48 = vld [vmem:[#allocation2 + $0x69] sm:$0xff]  ;;  %v3499_v1 = vld [vmem:[%s4517_s2 + $0x100] sm:$0xff]  ;;  %v3514_v4 = vld [vmem:[%s4517_s2 + $0x178] sm:$0xff] }
  0x35   : > { %907 = vmatpush.bf16.msrb.mxu1 %v3473_v5  ;;  %1577 = vmatpush.bf16.msrb.mxu0 %v3505_v6  ;;  %487 = vst [vmem:[#allocation2 + $0xb8] sm:$0xff] %v3586_v11  ;;  %v676_v49 = vld [vmem:[#allocation2 + $0xa1] sm:$0xff]  ;;  %v694_v61 = vpack.c.bf16 %v669_v48, %v668_v47  ;;  %v3538_v5 = vld [vmem:[%s4517_s2 + $0x238] sm:$0xff] }
  0x36   : > { %495 = vst [vmem:[#allocation2 + $0xf8] sm:$0xff] %v3602_v12  ;;  %v677_v51 = vld [vmem:[#allocation2 + $0xa9] sm:$0xff]  ;;  %v1229_v21 = vld [vmem:[#allocation2 + $0x12] sm:$0xff]  ;;  %v1230_v22 = vld [vmem:[#allocation2 + $0x1a] sm:$0xff] }
  0x37   : > { %1110 = vmatpush.bf16.msrb.mxu2 %v3488_v8  ;;  %560 = vst [vmem:[#allocation2 + $0x100] sm:$0xff] %v3605_v16  ;;  %v684_v55 = vld [vmem:[#allocation2 + $0xe1] sm:$0xff]  ;;  %v698_v62 = vpack.c.bf16 %v677_v51, %v676_v49  ;;  %v1261_v27 = vpack.c.bf16 %v1230_v22, %v1229_v21 }
  0x38   : > { %1344 = vmatpush.bf16.msrb.mxu3 %v3496_v9  ;;  %471 = vst [vmem:[#allocation2 + $0x38] sm:$0xff] %v3554_v19  ;;  %v685_v56 = vld [vmem:[#allocation2 + $0xe9] sm:$0xff]  ;;  %v1464_v24 = vld [vmem:[#allocation2 + $0x1b] sm:$0xff] }
  0x39   : > { %908 = vmatpush.bf16.msrb.mxu1 %v3472_v14  ;;  %1578 = vmatpush.bf16.msrb.mxu0 %v3504_v15  ;;  %561 = vst [vmem:[#allocation2 + $0x108] sm:$0xff] %v3606_v41  ;;  %v660_v58 = vld [vmem:[#allocation2 + $0x21] sm:$0xff]  ;;  %v702_v63 = vpack.c.bf16 %v685_v56, %v684_v55  ;;  %v1470_v56 = vld [vmem:[#allocation2 + $0x4b] sm:$0xff] }
  0x3a   : > { %v661_v59 = vld [vmem:[#allocation2 + $0x29] sm:$0xff]  ;;  %v3762_v25 = vld [vmem:[%s3899_s16] sm:$0xff] }
  0x3b   : > { %1111 = vmatpush.bf16.msrb.mxu2 %v3487_v17  ;;  %v690_v0 = vpack.c.bf16 %v661_v59, %v660_v58  ;;  %v670_v6 = vld [vmem:[#allocation2 + $0x71] sm:$0xff]  ;;  %v671_v7 = vld [vmem:[#allocation2 + $0x79] sm:$0xff]  ;;  %v995_v19 = vld [vmem:[#allocation2 + $0x2] sm:$0xff] }
  0x3c   : > { %1345 = vmatpush.bf16.msrb.mxu3 %v3495_v18  ;;  %v678_v8 = vld [vmem:[#allocation2 + $0xb1] sm:$0xff]  ;;  %v679_v9 = vld [vmem:[#allocation2 + $0xb9] sm:$0xff]  ;;  %v695_v15 = vpack.c.bf16 %v671_v7, %v670_v6  ;;  %v3520_v48 = vld [vmem:[%s4517_s2 + $0x1a8] sm:$0xff] }
  0x3d   : > { %909 = vmatpush.bf16.msrb.mxu1 %v3471_v23  ;;  %1579 = vmatpush.bf16.msrb.mxu0 %v3503_v26  ;;  %v686_v10 = vld [vmem:[#allocation2 + $0xf1] sm:$0xff]  ;;  %v699_v16 = vpack.c.bf16 %v679_v9, %v678_v8  ;;  %v1027_v26 = vpack.c.bf16 %v996_v20, %v995_v19  ;;  %v3528_v49 = vld [vmem:[%s4517_s2 + $0x1e8] sm:$0xff]  ;;  %v3519_v6 = vld [vmem:[%s4517_s2 + $0x1a0] sm:$0xff] }
  0x3e   : > { %802 = vmatmul.bf16.gmra.mxu1 %v693_v33  ;;  %822 = vmatmul.bf16.gmra.mxu2 %v697_v34  ;;  %v687_v12 = vld [vmem:[#allocation2 + $0xf9] sm:$0xff]  ;;  %v3537_v33 = vld [vmem:[%s4517_s2 + $0x230] sm:$0xff]  ;;  %v1231_v34 = vld [vmem:[#allocation2 + $0x22] sm:$0xff] }
  0x3f   : > { %1112 = vmatpush.bf16.msrb.mxu2 %v3486_v31  ;;  %842 = vmatmul.bf16.gmra.mxu3 %v701_v35  ;;  %v662_v13 = vld [vmem:[#allocation2 + $0x31] sm:$0xff]  ;;  %v663_v14 = vld [vmem:[#allocation2 + $0x39] sm:$0xff]  ;;  %v703_v17 = vpack.c.bf16 %v687_v12, %v686_v10  ;;  %v3512_v51 = vld [vmem:[%s4517_s2 + $0x168] sm:$0xff] }
  0x40   : > { %1346 = vmatpush.bf16.msrb.mxu3 %v3494_v32  ;;  %782 = vmatmul.bf16.gmra.mxu0 %v689_v36  ;;  %v691_v18 = vpack.c.bf16 %v663_v14, %v662_v13  ;;  %v1463_v23 = vld [vmem:[#allocation2 + $0x13] sm:$0xff]  ;;  %v1232_v35 = vld [vmem:[#allocation2 + $0x2a] sm:$0xff]  ;;  %v3527_v7 = vld [vmem:[%s4517_s2 + $0x1e0] sm:$0xff] }
  0x41   : > { %910 = vmatpush.bf16.msrb.mxu1 %v3470_v37  ;;  %1580 = vmatpush.bf16.msrb.mxu0 %v3502_v38  ;;  %v1495_v29 = vpack.c.bf16 %v1464_v24, %v1463_v23  ;;  %v3529_v31 = vld [vmem:[%s4517_s2 + $0x1f0] sm:$0xff]  ;;  %v1465_v36 = vld [vmem:[#allocation2 + $0x23] sm:$0xff]  ;;  %v3765_v58 = vld [vmem:[%s3899_s16 + $0x18] sm:$0xff] }
  0x42   : > { %v3513_v32 = vld [vmem:[%s4517_s2 + $0x170] sm:$0xff]  ;;  %v3763_v38 = vld [vmem:[%s3899_s16 + $0x8] sm:$0xff]  ;;  %v3511_v10 = vld [vmem:[%s4517_s2 + $0x160] sm:$0xff] }
  0x43   : > { %1113 = vmatpush.bf16.msrb.mxu2 %v3485_v39  ;;  %v1466_v37 = vld [vmem:[#allocation2 + $0x2b] sm:$0xff]  ;;  %v1262_v39 = vpack.c.bf16 %v1232_v35, %v1231_v34  ;;  %v1469_v55 = vld [vmem:[#allocation2 + $0x43] sm:$0xff]  ;;  %v1476_v34 = vld [vmem:[#allocation2 + $0x7b] sm:$0xff] }
  0x44   : > { %1347 = vmatpush.bf16.msrb.mxu3 %v3493_v40  ;;  %v1496_v40 = vpack.c.bf16 %v1466_v37, %v1465_v36  ;;  %v1233_v41 = vld [vmem:[#allocation2 + $0x32] sm:$0xff]  ;;  %v3535_v14 = vld [vmem:[%s4517_s2 + $0x220] sm:$0xff]  ;;  %v3767_v21 = vld [vmem:[%s3899_s16 + $0x28] sm:$0xff] }
  0x45   : > { %911 = vmatpush.bf16.msrb.mxu1 %v3469_v42  ;;  %1581 = vmatpush.bf16.msrb.mxu0 %v3501_v45  ;;  %v1234_v42 = vld [vmem:[#allocation2 + $0x3a] sm:$0xff]  ;;  %v3764_v45 = vld [vmem:[%s3899_s16 + $0x10] sm:$0xff] }
  0x46   : > { %v3768_v37 = vld [vmem:[%s3899_s16 + $0x30] sm:$0xff] }
  0x47   : > { %1114 = vmatpush.bf16.msrb.mxu2 %v3484_v43  ;;  %v1467_v43 = vld [vmem:[#allocation2 + $0x33] sm:$0xff] }
  0x48   : > { %1348 = vmatpush.bf16.msrb.mxu3 %v3492_v44  ;;  %v1468_v44 = vld [vmem:[#allocation2 + $0x3b] sm:$0xff] }
  0x49   : > { %912 = vmatpush.bf16.msrb.mxu1 %v3468_v46  ;;  %1582 = vmatpush.bf16.msrb.mxu0 %v3500_v54  ;;  %v1263_v46 = vpack.c.bf16 %v1234_v42, %v1233_v41  ;;  %v1497_v47 = vpack.c.bf16 %v1468_v44, %v1467_v43  ;;  %v1236_v54 = vld [vmem:[#allocation2 + $0x4a] sm:$0xff]  ;;  %v3518_v42 = vld [vmem:[%s4517_s2 + $0x198] sm:$0xff] }
  0x4a   : > { %v3526_v43 = vld [vmem:[%s4517_s2 + $0x1d8] sm:$0xff] }
  0x4b   : > { %1115 = vmatpush.bf16.msrb.mxu2 %v3483_v52  ;;  %v3536_v52 = vld [vmem:[%s4517_s2 + $0x228] sm:$0xff] }
  0x4c   : > { %1349 = vmatpush.bf16.msrb.mxu3 %v3491_v53  ;;  %v1235_v53 = vld [vmem:[#allocation2 + $0x42] sm:$0xff] }
  0x4d   : > { %913 = vmatpush.bf16.msrb.mxu1 %v3467_v60  ;;  %1583 = vmatpush.bf16.msrb.mxu0 %v3499_v1  ;;  %v1264_v59 = vpack.c.bf16 %v1236_v54, %v1235_v53  ;;  %v1498_v60 = vpack.c.bf16 %v1470_v56, %v1469_v55  ;;  %v3766_v1 = vld [vmem:[%s3899_s16 + $0x20] sm:$0xff]  ;;  %v1478_v54 = vld [vmem:[#allocation2 + $0x8b] sm:$0xff] }
  0x4e   : > { %807 = vmatmul.bf16.gmra.mxu1 %v694_v61  ;;  %827 = vmatmul.bf16.gmra.mxu2 %v698_v62  ;;  %v1237_v61 = vld [vmem:[#allocation2 + $0x52] sm:$0xff]  ;;  %v1238_v62 = vld [vmem:[#allocation2 + $0x5a] sm:$0xff]  ;;  %v1477_v53 = vld [vmem:[#allocation2 + $0x83] sm:$0xff] }
  0x4f   : > { %847 = vmatmul.bf16.gmra.mxu3 %v702_v63  ;;  %2044 = vmatpush.bf16.msra.mxu2 %v3522_v2  ;;  %v1471_v63 = vld [vmem:[#allocation2 + $0x53] sm:$0xff] }
  0x50   : > { %787 = vmatmul.bf16.gmra.mxu0 %v690_v0  ;;  %2278 = vmatpush.bf16.msra.mxu3 %v3530_v3  ;;  %v1472_v0 = vld [vmem:[#allocation2 + $0x5b] sm:$0xff]  ;;  %v1265_v3 = vpack.c.bf16 %v1238_v62, %v1237_v61  ;;  %v1502_v61 = vpack.c.bf16 %v1478_v54, %v1477_v53  ;;  %v610_v53 = vld [vmem:[#allocation2 + $0x90] sm:$0xff] }
  0x51   : > { %1810 = vmatpush.bf16.msra.mxu1 %v3514_v4  ;;  %2512 = vmatpush.bf16.msra.mxu0 %v3538_v5  ;;  %v1499_v4 = vpack.c.bf16 %v1472_v0, %v1471_v63  ;;  %v611_v54 = vld [vmem:[#allocation2 + $0x98] sm:$0xff] }
  0x53   : > { %2045 = vmatpush.bf16.msra.mxu2 %v3521_v30 }
  0x54   : > { %2279 = vmatpush.bf16.msra.mxu3 %v3529_v31  ;;  %v1241_v31 = vld [vmem:[#allocation2 + $0x72] sm:$0xff] }
  0x55   : > { %1811 = vmatpush.bf16.msra.mxu1 %v3513_v32  ;;  %2513 = vmatpush.bf16.msra.mxu0 %v3537_v33  ;;  %v1242_v32 = vld [vmem:[#allocation2 + $0x7a] sm:$0xff] }
  0x56   : > { %v1475_v33 = vld [vmem:[#allocation2 + $0x73] sm:$0xff] }
  0x57   : > { %2046 = vmatpush.bf16.msra.mxu2 %v3520_v48  ;;  %v3510_v48 = vld [vmem:[%s4517_s2 + $0x158] sm:$0xff] }
  0x58   : > { %2280 = vmatpush.bf16.msra.mxu3 %v3528_v49  ;;  %v3534_v49 = vld [vmem:[%s4517_s2 + $0x218] sm:$0xff] }
  0x59   : > { %1812 = vmatpush.bf16.msra.mxu1 %v3512_v51  ;;  %2514 = vmatpush.bf16.msra.mxu0 %v3536_v52  ;;  %v1243_v51 = vld [vmem:[#allocation2 + $0x82] sm:$0xff]  ;;  %v1244_v52 = vld [vmem:[#allocation2 + $0x8a] sm:$0xff] }
  0x5b   : > { %2047 = vmatpush.bf16.msra.mxu2 %v3519_v6  ;;  %v609_v6 = vld [vmem:[#allocation2 + $0x88] sm:$0xff] }
  0x5c   : > { %2281 = vmatpush.bf16.msra.mxu3 %v3527_v7  ;;  %v1245_v7 = vld [vmem:[#allocation2 + $0x92] sm:$0xff] }
  0x5d   : > { %1813 = vmatpush.bf16.msra.mxu1 %v3511_v10  ;;  %2515 = vmatpush.bf16.msra.mxu0 %v3535_v14  ;;  %v1246_v10 = vld [vmem:[#allocation2 + $0x9a] sm:$0xff] }
  0x5e   : > { %812 = vmatmul.bf16.gmra.mxu1 %v695_v15  ;;  %832 = vmatmul.bf16.gmra.mxu2 %v699_v16  ;;  %v1239_v15 = vld [vmem:[#allocation2 + $0x62] sm:$0xff]  ;;  %v1240_v16 = vld [vmem:[#allocation2 + $0x6a] sm:$0xff]  ;;  %v1479_v14 = vld [vmem:[#allocation2 + $0x93] sm:$0xff] }
  0x5f   : > { %852 = vmatmul.bf16.gmra.mxu3 %v703_v17  ;;  %v1473_v17 = vld [vmem:[#allocation2 + $0x63] sm:$0xff]  ;;  %v1266_v23 = vpack.c.bf16 %v1240_v16, %v1239_v15  ;;  %2048 = vmatpush.bf16.msra.mxu2 %v3518_v42  ;;  %v1480_v15 = vld [vmem:[#allocation2 + $0x9b] sm:$0xff] }
  0x60   : > { %792 = vmatmul.bf16.gmra.mxu0 %v691_v18  ;;  %v1474_v18 = vld [vmem:[#allocation2 + $0x6b] sm:$0xff]  ;;  %2282 = vmatpush.bf16.msra.mxu3 %v3526_v43 }
  0x61   : > { %v1500_v24 = vpack.c.bf16 %v1474_v18, %v1473_v17  ;;  %1814 = vmatpush.bf16.msra.mxu1 %v3510_v48  ;;  %2516 = vmatpush.bf16.msra.mxu0 %v3534_v49  ;;  %v3509_v49 = vld [vmem:[%s4517_s2 + $0x150] sm:$0xff] }
  0x65   : > { %1815 = vmatpush.bf16.msra.mxu1 %v3509_v49  ;;  %v612_v49 = vld [vmem:[#allocation2 + $0xa0] sm:$0xff] }
  0x6e   : > { %914 = vmatmul.bf16.vlgmr.msrb.gmra.mxu1 %v3762_v25  ;;  %1116 = vmatmul.bf16.vlgmr.msrb.gmra.mxu2 %v1027_v26 }
  0x6f   : > { %1350 = vmatmul.bf16.vlgmr.msrb.gmra.mxu3 %v1261_v27 }
  0x70   : > { %1584 = vmatmul.bf16.vlgmr.msrb.gmra.mxu0 %v1495_v29 }
  0x7e   : > { %919 = vmatmul.bf16.gmra.mxu1 %v3763_v38  ;;  %1121 = vmatmul.bf16.gmra.mxu2 %v1261_v27 }
  0x7f   : > { %1355 = vmatmul.bf16.gmra.mxu3 %v1262_v39 }
  0x80   : > { %1589 = vmatmul.bf16.gmra.mxu0 %v1496_v40  ;;  %v1501_v40 = vpack.c.bf16 %v1476_v34, %v1475_v33  ;;  %v3517_v33 = vld [vmem:[%s4517_s2 + $0x190] sm:$0xff] }
  0x81   : > { %v3525_v34 = vld [vmem:[%s4517_s2 + $0x1d0] sm:$0xff]  ;;  %2049 = vmatpush.bf16.msra.mxu2 %v3517_v33 }
  0x82   : > { %2283 = vmatpush.bf16.msra.mxu3 %v3525_v34 }
  0x86   : > { %2284 = vmatpush.bf16.msra.mxu3 %v3524_v28 }
  0x8e   : > { %924 = vmatmul.bf16.gmra.mxu1 %v3764_v45  ;;  %1126 = vmatmul.bf16.gmra.mxu2 %v1262_v39  ;;  %v1267_v39 = vpack.c.bf16 %v1242_v32, %v1241_v31 }
  0x8f   : > { %1360 = vmatmul.bf16.gmra.mxu3 %v1263_v46 }
  0x90   : > { %1594 = vmatmul.bf16.gmra.mxu0 %v1497_v47 }
  0x9e   : > { %929 = vmatmul.bf16.gmra.mxu1 %v3765_v58  ;;  %1131 = vmatmul.bf16.gmra.mxu2 %v1263_v46  ;;  %v3769_v58 = vld [vmem:[%s3899_s16 + $0x38] sm:$0xff] }
  0x9f   : > { %1365 = vmatmul.bf16.gmra.mxu3 %v1264_v59 }
  0xa0   : > { %1599 = vmatmul.bf16.gmra.mxu0 %v1498_v60  ;;  %v1268_v60 = vpack.c.bf16 %v1244_v52, %v1243_v51  ;;  %v3533_v51 = vld [vmem:[%s4517_s2 + $0x210] sm:$0xff] }
  0xa1   : > { %2517 = vmatpush.bf16.msra.mxu0 %v3533_v51  ;;  %v1249_v51 = vld [vmem:[#allocation2 + $0xb2] sm:$0xff] }
  0xab   : > { %v4127_v2 = vpop.f32.mrf.mxu1 }
  0xad   : > { %v4129_v5 = vpop.f32.mrf.mxu0 }
  0xae   : > { %934 = vmatmul.bf16.gmra.mxu1 %v3766_v1  ;;  %1136 = vmatmul.bf16.gmra.mxu2 %v1264_v59 }
  0xaf   : > { %1370 = vmatmul.bf16.gmra.mxu3 %v1265_v3 }
  0xb0   : > { %1604 = vmatmul.bf16.gmra.mxu0 %v1499_v4  ;;  %v608_v4 = vld [vmem:[#allocation2 + $0x80] sm:$0xff] }
  0xb1   : > { %v4137_v8 = vpop.f32.mrf.mxu2  ;;  %v632_v18 = vpack.c.bf16 %v609_v6, %v608_v4  ;;  %v1482_v4 = vld [vmem:[#allocation2 + $0xab] sm:$0xff] }
  0xb2   : > { %v4139_v9 = vpop.f32.mrf.mxu3 }
  0xb3   : > { %v4144_v12 = vpop.f32.mrf.mxu1 }
  0xb5   : > { %v4146_v13 = vpop.f32.mrf.mxu0 }
  0xb9   : > { %v4151_v19 = vpop.f32.mrf.mxu2 }
  0xba   : > { %v4153_v20 = vpop.f32.mrf.mxu3 }
  0xbb   : > { %v4156_v22 = vpop.f32.mrf.mxu1 }
  0xbd   : > { %v4158_v25 = vpop.f32.mrf.mxu0 }
  0xbe   : > { %939 = vmatmul.bf16.gmra.mxu1 %v3767_v21  ;;  %1141 = vmatmul.bf16.gmra.mxu2 %v1265_v3 }
  0xbf   : > { %1375 = vmatmul.bf16.gmra.mxu3 %v1266_v23 }
  0xc0   : > { %1609 = vmatmul.bf16.gmra.mxu0 %v1500_v24  ;;  %v1503_v24 = vpack.c.bf16 %v1480_v15, %v1479_v14 }
  0xc1   : > { %v4160_v26 = vpop.f32.mrf.mxu2 }
  0xc2   : > { %v4162_v27 = vpop.f32.mrf.mxu3 }
  0xc3   : > { %v4164_v29 = vpop.f32.mrf.mxu1 }
  0xc5   : > { %v4166_v30 = vpop.f32.mrf.mxu0 }
  0xc9   : > { %v4168_v35 = vpop.f32.mrf.mxu2 }
  0xca   : > { %v4170_v36 = vpop.f32.mrf.mxu3 }
  0xcb   : > { %v4173_v38 = vpop.f32.mrf.mxu1 }
  0xcd   : > { %v4175_v41 = vpop.f32.mrf.mxu0 }
  0xce   : > { %944 = vmatmul.bf16.gmra.mxu1 %v3768_v37  ;;  %1146 = vmatmul.bf16.gmra.mxu2 %v1266_v23  ;;  %v1269_v23 = vpack.c.bf16 %v1246_v10, %v1245_v7  ;;  %v633_v10 = vpack.c.bf16 %v611_v54, %v610_v53  ;;  %v1483_v53 = vld [vmem:[#allocation2 + $0xb3] sm:$0xff]  ;;  %v1484_v54 = vld [vmem:[#allocation2 + $0xbb] sm:$0xff] }
  0xcf   : > { %1380 = vmatmul.bf16.gmra.mxu3 %v1267_v39 }
  0xd0   : > { %1614 = vmatmul.bf16.gmra.mxu0 %v1501_v40 }
  0xd1   : > { %v4183_v44 = vpop.f32.mrf.mxu2 }
  0xd2   : > { %v4185_v45 = vpop.f32.mrf.mxu3 }
  0xd3   : > { %v4187_v46 = vpop.f32.mrf.mxu1 }
  0xd5   : > { %v4189_v47 = vpop.f32.mrf.mxu0 }
  0xd9   : > { %v4197_v55 = vpop.f32.mrf.mxu2 }
  0xda   : > { %v4199_v56 = vpop.f32.mrf.mxu3 }
  0xdb   : > { %v4202_v59 = vpop.f32.mrf.mxu1 }
  0xdd   : > { %v4204_v62 = vpop.f32.mrf.mxu0 }
  0xde   : > { %949 = vmatmul.bf16.gmra.mxu1 %v3769_v58  ;;  %1151 = vmatmul.bf16.gmra.mxu2 %v1267_v39  ;;  %v1247_v58 = vld [vmem:[#allocation2 + $0xa2] sm:$0xff] }
  0xdf   : > { %1385 = vmatmul.bf16.gmra.mxu3 %v1268_v60 }
  0xe0   : > { %1619 = vmatmul.bf16.gmra.mxu0 %v1502_v61  ;;  %v1481_v61 = vld [vmem:[#allocation2 + $0xa3] sm:$0xff] }
  0xe1   : > { %v4206_v63 = vpop.f32.mrf.mxu2 }
  0xe2   : > { %v4208_v0 = vpop.f32.mrf.mxu3 }
  0xe3   : > { %v4210_v1 = vpop.f32.mrf.mxu1 }
  0xe5   : > { %v4212_v3 = vpop.f32.mrf.mxu0 }
  0xe9   : > { %v4214_v16 = vpop.f32.mrf.mxu2 }
  0xea   : > { %v4216_v17 = vpop.f32.mrf.mxu3 }
  0xeb   : > { %v915_v21 = vpop.f32.mrf.mxu1 }
  0xec   : > { %v916_v31 = vadd.f32 %v915_v21, %v4129_v5 }
  0xed   : > { %v1585_v32 = vpop.f32.mrf.mxu0 }
  0xee   : > { %954 = vmatmul.bf16.gmra.mxu1 %v632_v18  ;;  %1156 = vmatmul.bf16.gmra.mxu2 %v1268_v60  ;;  %v1248_v60 = vld [vmem:[#allocation2 + $0xaa] sm:$0xff]  ;;  %v1504_v18 = vpack.c.bf16 %v1482_v4, %v1481_v61 }
  0xef   : > { %1390 = vmatmul.bf16.gmra.mxu3 %v1269_v23  ;;  %v1270_v15 = vpack.c.bf16 %v1248_v60, %v1247_v58  ;;  %v634_v60 = vpack.c.bf16 %v3582_v57, %v612_v49  ;;  %v1486_v49 = vld [vmem:[#allocation2 + $0xcb] sm:$0xff] }
  0xf0   : > { %1624 = vmatmul.bf16.gmra.mxu0 %v1503_v24 }
  0xf1   : > { %v1117_v37 = vpop.f32.mrf.mxu2 }
  0xf2   : > { %v1197_v39 = vadd.f32 %v1117_v37, %v916_v31  ;;  %v1351_v40 = vpop.f32.mrf.mxu3 }
  0xf3   : > { %v917_v42 = vpop.f32.mrf.mxu1 }
  0xf4   : > { %v1431_v5 = vadd.f32 %v1351_v40, %v1197_v39  ;;  %v918_v43 = vadd.f32 %v917_v42, %v4146_v13 }
  0xf5   : > { %v1587_v48 = vpop.f32.mrf.mxu0 }
  0xf6   : > { %v4232_v52 = vadd.f32 %v1585_v32, %v1431_v5 }
  0xf9   : > { %v1119_v13 = vpop.f32.mrf.mxu2 }
  0xfa   : > { %v1198_v6 = vadd.f32 %v1119_v13, %v918_v43  ;;  %v1353_v7 = vpop.f32.mrf.mxu3  ;;  %v1505_v13 = vpack.c.bf16 %v1484_v54, %v1483_v53 }
  0xfb   : > { %v920_v14 = vpop.f32.mrf.mxu1 }
  0xfc   : > { %v1432_v21 = vadd.f32 %v1353_v7, %v1198_v6  ;;  %v921_v24 = vadd.f32 %v920_v14, %v4158_v25  ;;  %v1250_v25 = vld [vmem:[#allocation2 + $0xba] sm:$0xff]  ;;  %v3516_v14 = vld [vmem:[%s4517_s2 + $0x188] sm:$0xff] }
  0xfd   : > { %v1590_v31 = vpop.f32.mrf.mxu0  ;;  %v1271_v4 = vpack.c.bf16 %v1250_v25, %v1249_v51  ;;  %2050 = vmatpush.bf16.msra.mxu2 %v3516_v14 }
  0xfe   : > { %959 = vmatmul.bf16.gmra.mxu1 %v633_v10  ;;  %1161 = vmatmul.bf16.gmra.mxu2 %v1269_v23  ;;  %v4235_v32 = vadd.f32 %v1587_v48, %v1432_v21 }
  0xff   : > { %1395 = vmatmul.bf16.gmra.mxu3 %v1270_v15 }
 0x100   : > { %1629 = vmatmul.bf16.gmra.mxu0 %v1504_v18 }
 0x101   : > { %v1122_v33 = vpop.f32.mrf.mxu2 }
 0x102   : > { %v1199_v34 = vadd.f32 %v1122_v33, %v921_v24  ;;  %v1356_v37 = vpop.f32.mrf.mxu3  ;;  %v3508_v33 = vld [vmem:[%s4517_s2 + $0x148] sm:$0xff] }
 0x103   : > { %v922_v39 = vpop.f32.mrf.mxu1  ;;  %1816 = vmatpush.bf16.msra.mxu1 %v3508_v33 }
 0x104   : > { %v1433_v40 = vadd.f32 %v1356_v37, %v1199_v34  ;;  %v923_v42 = vadd.f32 %v922_v39, %v4166_v30  ;;  %v3532_v34 = vld [vmem:[%s4517_s2 + $0x208] sm:$0xff]  ;;  %v614_v39 = vld [vmem:[#allocation2 + $0xb0] sm:$0xff] }
 0x105   : > { %v1592_v5 = vpop.f32.mrf.mxu0  ;;  %2518 = vmatpush.bf16.msra.mxu0 %v3532_v34  ;;  %v635_v53 = vpack.c.bf16 %v3586_v11, %v614_v39 }
 0x106   : > { %v4238_v43 = vadd.f32 %v1590_v31, %v1433_v40  ;;  %v1251_v40 = vld [vmem:[#allocation2 + $0xc2] sm:$0xff] }
 0x109   : > { %v1124_v23 = vpop.f32.mrf.mxu2 }
 0x10a   : > { %v1200_v48 = vadd.f32 %v1124_v23, %v923_v42  ;;  %v1358_v58 = vpop.f32.mrf.mxu3  ;;  %v1252_v42 = vld [vmem:[#allocation2 + $0xca] sm:$0xff] }
 0x10b   : > { %v925_v61 = vpop.f32.mrf.mxu1  ;;  %v1272_v23 = vpack.c.bf16 %v1252_v42, %v1251_v40 }
 0x10c   : > { %v1434_v6 = vadd.f32 %v1358_v58, %v1200_v48  ;;  %v926_v30 = vadd.f32 %v925_v61, %v4175_v41 }
 0x10d   : > { %v1595_v7 = vpop.f32.mrf.mxu0 }
 0x10e   : > { %964 = vmatmul.bf16.gmra.mxu1 %v634_v60  ;;  %1166 = vmatmul.bf16.gmra.mxu2 %v1270_v15  ;;  %v4243_v10 = vadd.f32 %v1592_v5, %v1434_v6  ;;  %v1485_v5 = vld [vmem:[#allocation2 + $0xc3] sm:$0xff] }
 0x10f   : > { %1400 = vmatmul.bf16.gmra.mxu3 %v1271_v4  ;;  %v1506_v48 = vpack.c.bf16 %v1486_v49, %v1485_v5 }
 0x110   : > { %1634 = vmatmul.bf16.gmra.mxu0 %v1505_v13 }
 0x111   : > { %v1127_v57 = vpop.f32.mrf.mxu2 }
 0x112   : > { %v1201_v18 = vadd.f32 %v1127_v57, %v926_v30  ;;  %v1361_v41 = vpop.f32.mrf.mxu3 }
 0x113   : > { %v927_v21 = vpop.f32.mrf.mxu1 }
 0x114   : > { %v1435_v24 = vadd.f32 %v1361_v41, %v1201_v18  ;;  %v928_v15 = vadd.f32 %v927_v21, %v4189_v47  ;;  %v616_v18 = vld [vmem:[#allocation2 + $0xc0] sm:$0xff]  ;;  %v617_v41 = vld [vmem:[#allocation2 + $0xc8] sm:$0xff] }
 0x115   : > { %v1597_v31 = vpop.f32.mrf.mxu0  ;;  %v1254_v21 = vld [vmem:[#allocation2 + $0xda] sm:$0xff]  ;;  %v636_v34 = vpack.c.bf16 %v617_v41, %v616_v18  ;;  %v1256_v18 = vld [vmem:[#allocation2 + $0xea] sm:$0xff] }
 0x116   : > { %v4258_v37 = vadd.f32 %v1595_v7, %v1435_v24  ;;  %v1487_v24 = vld [vmem:[#allocation2 + $0xd3] sm:$0xff]  ;;  %v1489_v41 = vld [vmem:[#allocation2 + $0xe3] sm:$0xff] }
 0x119   : > { %v1129_v51 = vpop.f32.mrf.mxu2 }
 0x11a   : > { %v1202_v47 = vadd.f32 %v1129_v51, %v928_v15  ;;  %v1363_v25 = vpop.f32.mrf.mxu3  ;;  %v3515_v51 = vld [vmem:[%s4517_s2 + $0x180] sm:$0xff] }
 0x11b   : > { %v930_v54 = vpop.f32.mrf.mxu1  ;;  %2051 = vmatpush.bf16.msra.mxu2 %v3515_v51 }
 0x11c   : > { %v1436_v58 = vadd.f32 %v1363_v25, %v1202_v47  ;;  %v931_v60 = vadd.f32 %v930_v54, %v4204_v62  ;;  %v1253_v62 = vld [vmem:[#allocation2 + $0xd2] sm:$0xff]  ;;  %v3523_v47 = vld [vmem:[%s4517_s2 + $0x1c0] sm:$0xff] }
 0x11d   : > { %v1600_v61 = vpop.f32.mrf.mxu0  ;;  %v1273_v40 = vpack.c.bf16 %v1254_v21, %v1253_v62  ;;  %2285 = vmatpush.bf16.msra.mxu3 %v3523_v47  ;;  %v1490_v62 = vld [vmem:[#allocation2 + $0xeb] sm:$0xff] }
 0x11e   : > { %969 = vmatmul.bf16.gmra.mxu1 %v635_v53  ;;  %1171 = vmatmul.bf16.gmra.mxu2 %v1271_v4  ;;  %v4263_v13 = vadd.f32 %v1597_v31, %v1436_v58  ;;  %v1488_v4 = vld [vmem:[#allocation2 + $0xdb] sm:$0xff] }
 0x11f   : > { %1405 = vmatmul.bf16.gmra.mxu3 %v1272_v23  ;;  %v1507_v42 = vpack.c.bf16 %v1488_v4, %v1487_v24 }
 0x120   : > { %1639 = vmatmul.bf16.gmra.mxu0 %v1506_v48 }
 0x121   : > { %v1132_v6 = vpop.f32.mrf.mxu2 }
 0x122   : > { %v1203_v30 = vadd.f32 %v1132_v6, %v931_v60  ;;  %v1366_v7 = vpop.f32.mrf.mxu3 }
 0x123   : > { %v932_v14 = vpop.f32.mrf.mxu1 }
 0x124   : > { %v1437_v28 = vadd.f32 %v1366_v7, %v1203_v30  ;;  %v933_v50 = vadd.f32 %v932_v14, %v4212_v3  ;;  %v3507_v30 = vld [vmem:[%s4517_s2 + $0x140] sm:$0xff]  ;;  %v618_v14 = vld [vmem:[#allocation2 + $0xd0] sm:$0xff] }
 0x125   : > { %v1602_v11 = vpop.f32.mrf.mxu0  ;;  %v3531_v7 = vld [vmem:[%s4517_s2 + $0x200] sm:$0xff]  ;;  %1817 = vmatpush.bf16.msra.mxu1 %v3507_v30 }
 0x126   : > { %v4266_v57 = vadd.f32 %v1600_v61, %v1437_v28  ;;  %2519 = vmatpush.bf16.msra.mxu0 %v3531_v7  ;;  %v619_v28 = vld [vmem:[#allocation2 + $0xd8] sm:$0xff] }
 0x127   : > { %v1492_v30 = vld [vmem:[#allocation2 + $0xfb] sm:$0xff] }
 0x129   : > { %v1134_v15 = vpop.f32.mrf.mxu2 }
 0x12a   : > { %v1204_v31 = vadd.f32 %v1134_v15, %v933_v50  ;;  %v1368_v33 = vpop.f32.mrf.mxu3  ;;  %v1255_v50 = vld [vmem:[#allocation2 + $0xe2] sm:$0xff]  ;;  %v637_v15 = vpack.c.bf16 %v619_v28, %v618_v14 }
 0x12b   : > { %v935_v39 = vpop.f32.mrf.mxu1 }
 0x12c   : > { %v1438_v5 = vadd.f32 %v1368_v33, %v1204_v31  ;;  %v936_v25 = vadd.f32 %v935_v39, %v4127_v2  ;;  %v1274_v33 = vpack.c.bf16 %v1256_v18, %v1255_v50 }
 0x12d   : > { %v1605_v49 = vpop.f32.mrf.mxu0 }
 0x12e   : > { %974 = vmatmul.bf16.gmra.mxu1 %v636_v34  ;;  %1176 = vmatmul.bf16.gmra.mxu2 %v1272_v23  ;;  %v4268_v3 = vadd.f32 %v1602_v11, %v1438_v5  ;;  %v3682_v23 = vld [vmem:[%s4007_s14 + $0x8] sm:$0xff]   ;;  %v1508_v34 = vpack.c.bf16 %v1490_v62, %v1489_v41 }
 0x12f   : > { %1410 = vmatmul.bf16.gmra.mxu3 %v1273_v40  ;;  %v3609_v60 = vunpack.c.l.bf16 %v3682_v23  ;;  %v620_v23 = vld [vmem:[#allocation2 + $0xe0] sm:$0xff] }
 0x130   : > { %1644 = vmatmul.bf16.gmra.mxu0 %v1507_v42 }
 0x131   : > { %v1137_v53 = vpop.f32.mrf.mxu2  ;;  %562 = vst [vmem:[#allocation2 + $0x110] sm:$0xff] %v3609_v60  ;;  %v1257_v60 = vld [vmem:[#allocation2 + $0xf2] sm:$0xff] }
 0x132   : > { %v1205_v54 = vadd.f32 %v1137_v53, %v936_v25  ;;  %v1371_v48 = vpop.f32.mrf.mxu3 }
 0x133   : > { %v937_v58 = vpop.f32.mrf.mxu1 }
 0x134   : > { %v1439_v61 = vadd.f32 %v1371_v48, %v1205_v54  ;;  %v938_v11 = vadd.f32 %v937_v58, %v4144_v12  ;;  %v621_v58 = vld [vmem:[#allocation2 + $0xe8] sm:$0xff] }
 0x135   : > { %v1607_v6 = vpop.f32.mrf.mxu0 }
 0x136   : > { %v4284_v2 = vadd.f32 %v1605_v49, %v1439_v61 }
 0x139   : > { %v1139_v21 = vpop.f32.mrf.mxu2 }
 0x13a   : > { %v1206_v24 = vadd.f32 %v1139_v21, %v938_v11  ;;  %v1373_v4 = vpop.f32.mrf.mxu3 }
 0x13b   : > { %v940_v31 = vpop.f32.mrf.mxu1 }
 0x13c   : > { %v1440_v39 = vadd.f32 %v1373_v4, %v1206_v24  ;;  %v941_v12 = vadd.f32 %v940_v31, %v4156_v22  ;;  %v638_v22 = vpack.c.bf16 %v621_v58, %v620_v23 }
 0x13d   : > { %v1610_v42 = vpop.f32.mrf.mxu0 }
 0x13e   : > { %979 = vmatmul.bf16.gmra.mxu1 %v637_v15  ;;  %1181 = vmatmul.bf16.gmra.mxu2 %v1273_v40  ;;  %v4287_v5 = vadd.f32 %v1607_v6, %v1440_v39  ;;  %v1258_v40 = vld [vmem:[#allocation2 + $0xfa] sm:$0xff] }
 0x13f   : > { %1415 = vmatmul.bf16.gmra.mxu3 %v1274_v33  ;;  %v1491_v6 = vld [vmem:[#allocation2 + $0xf3] sm:$0xff]  ;;  %v1275_v11 = vpack.c.bf16 %v1258_v40, %v1257_v60 }
 0x140   : > { %1649 = vmatmul.bf16.gmra.mxu0 %v1508_v34  ;;  %v1509_v18 = vpack.c.bf16 %v1492_v30, %v1491_v6 }
 0x141   : > { %v1142_v49 = vpop.f32.mrf.mxu2 }
 0x142   : > { %v1207_v51 = vadd.f32 %v1142_v49, %v941_v12  ;;  %v1376_v47 = vpop.f32.mrf.mxu3  ;;  %v622_v12 = vld [vmem:[#allocation2 + $0xf0] sm:$0xff]  ;;  %v623_v49 = vld [vmem:[#allocation2 + $0xf8] sm:$0xff] }
 0x143   : > { %v942_v25 = vpop.f32.mrf.mxu1 }
 0x144   : > { %v1441_v53 = vadd.f32 %v1376_v47, %v1207_v51  ;;  %v943_v61 = vadd.f32 %v942_v25, %v4164_v29  ;;  %v1259_v51 = vld [vmem:[#allocation2 + $0x102] sm:$0xff] }
 0x145   : > { %v1612_v54 = vpop.f32.mrf.mxu0  ;;  %v1493_v25 = vld [vmem:[#allocation2 + $0x103] sm:$0xff] }
 0x146   : > { %v4290_v48 = vadd.f32 %v1610_v42, %v1441_v53  ;;  %v1494_v53 = vld [vmem:[#allocation2 + $0x10b] sm:$0xff] }
 0x147   : > { %v1510_v40 = vpack.c.bf16 %v1494_v53, %v1493_v25 }
 0x149   : > { %v1144_v7 = vpop.f32.mrf.mxu2 }
 0x14a   : > { %v1208_v14 = vadd.f32 %v1144_v7, %v943_v61  ;;  %v1378_v28 = vpop.f32.mrf.mxu3 }
 0x14b   : > { %v945_v50 = vpop.f32.mrf.mxu1 }
 0x14c   : > { %v1442_v41 = vadd.f32 %v1378_v28, %v1208_v14  ;;  %v946_v29 = vadd.f32 %v945_v50, %v4173_v38  ;;  %v639_v38 = vpack.c.bf16 %v623_v49, %v622_v12  ;;  %v2400_v12 = vld [vmem:[#allocation2 + $0x2e] sm:$0xff] }
 0x14d   : > { %v1615_v62 = vpop.f32.mrf.mxu0 }
 0x14e   : > { %984 = vmatmul.bf16.gmra.mxu1 %v638_v22  ;;  %1186 = vmatmul.bf16.gmra.mxu2 %v1274_v33  ;;  %v4293_v21 = vadd.f32 %v1612_v54, %v1442_v41  ;;  %v1260_v33 = vld [vmem:[#allocation2 + $0x10a] sm:$0xff] }
 0x14f   : > { %1420 = vmatmul.bf16.gmra.mxu3 %v1275_v11  ;;  %v1276_v61 = vpack.c.bf16 %v1260_v33, %v1259_v51 }
 0x150   : > { %1654 = vmatmul.bf16.gmra.mxu0 %v1509_v18 }
 0x151   : > { %v1147_v24 = vpop.f32.mrf.mxu2 }
 0x152   : > { %v1209_v4 = vadd.f32 %v1147_v24, %v946_v29  ;;  %v1381_v15 = vpop.f32.mrf.mxu3  ;;  %v1698_v29 = vld [vmem:[#allocation2 + $0x1c] sm:$0xff] }
 0x153   : > { %v947_v31 = vpop.f32.mrf.mxu1 }
 0x154   : > { %v1443_v34 = vadd.f32 %v1381_v15, %v1209_v4  ;;  %v948_v47 = vadd.f32 %v947_v31, %v4187_v46  ;;  %v1931_v4 = vld [vmem:[#allocation2 + $0x24] sm:$0xff]  ;;  %v1932_v15 = vld [vmem:[#allocation2 + $0x2c] sm:$0xff] }
 0x155   : > { %v1617_v39 = vpop.f32.mrf.mxu0  ;;  %v2165_v31 = vld [vmem:[#allocation2 + $0x25] sm:$0xff]  ;;  %v1963_v33 = vpack.c.bf16 %v1932_v15, %v1931_v4 }
 0x156   : > { %v4296_v42 = vadd.f32 %v1615_v62, %v1443_v34  ;;  %v1697_v62 = vld [vmem:[#allocation2 + $0x14] sm:$0xff] }
 0x157   : > { %v2166_v34 = vld [vmem:[#allocation2 + $0x2d] sm:$0xff] }
 0x158   : > { %v2197_v53 = vpack.c.bf16 %v2166_v34, %v2165_v31 }
 0x159   : > { %v1149_v54 = vpop.f32.mrf.mxu2 }
 0x15a   : > { %v1210_v23 = vadd.f32 %v1149_v54, %v948_v47  ;;  %v1383_v58 = vpop.f32.mrf.mxu3  ;;  %v1729_v47 = vpack.c.bf16 %v1698_v29, %v1697_v62  ;;  %v2168_v62 = vld [vmem:[#allocation2 + $0x3d] sm:$0xff] }
 0x15b   : > { %v950_v60 = vpop.f32.mrf.mxu1  ;;  %v2402_v29 = vld [vmem:[#allocation2 + $0x3e] sm:$0xff] }
 0x15c   : > { %v1444_v6 = vadd.f32 %v1383_v58, %v1210_v23  ;;  %v951_v46 = vadd.f32 %v950_v60, %v4202_v59 }
 0x15d   : > { %v1620_v30 = vpop.f32.mrf.mxu0 }
 0x15e   : > { %989 = vmatmul.bf16.gmra.mxu1 %v639_v38  ;;  %1191 = vmatmul.bf16.gmra.mxu2 %v1275_v11  ;;  %v4299_v7 = vadd.f32 %v1617_v39, %v1444_v6  ;;  %v2399_v39 = vld [vmem:[#allocation2 + $0x26] sm:$0xff] }
 0x15f   : > { %1425 = vmatmul.bf16.gmra.mxu3 %v1276_v61  ;;  %v2431_v54 = vpack.c.bf16 %v2400_v12, %v2399_v39 }
 0x160   : > { %1659 = vmatmul.bf16.gmra.mxu0 %v1510_v40 }
 0x161   : > { %v1152_v14 = vpop.f32.mrf.mxu2 }
 0x162   : > { %v1211_v28 = vadd.f32 %v1152_v14, %v951_v46  ;;  %v1386_v22 = vpop.f32.mrf.mxu3 }
 0x163   : > { %v952_v50 = vpop.f32.mrf.mxu1 }
 0x164   : > { %v1445_v18 = vadd.f32 %v1386_v22, %v1211_v28  ;;  %v953_v11 = vadd.f32 %v952_v50, %v4210_v1  ;;  %v1933_v28 = vld [vmem:[#allocation2 + $0x34] sm:$0xff]  ;;  %v1934_v22 = vld [vmem:[#allocation2 + $0x3c] sm:$0xff] }
 0x165   : > { %v1622_v41 = vpop.f32.mrf.mxu0  ;;  %v2167_v50 = vld [vmem:[#allocation2 + $0x35] sm:$0xff] }
 0x166   : > { %v4302_v24 = vadd.f32 %v1620_v30, %v1445_v18  ;;  %v2198_v34 = vpack.c.bf16 %v2168_v62, %v2167_v50 }
 0x169   : > { %v1154_v49 = vpop.f32.mrf.mxu2 }
 0x16a   : > { %v1212_v59 = vadd.f32 %v1154_v49, %v953_v11  ;;  %v1388_v51 = vpop.f32.mrf.mxu3 }
 0x16b   : > { %v955_v25 = vpop.f32.mrf.mxu1 }
 0x16c   : > { %v1446_v23 = vadd.f32 %v1388_v51, %v1212_v59  ;;  %v956_v1 = vadd.f32 %v955_v25, %v4137_v8  ;;  %v1964_v8 = vpack.c.bf16 %v1934_v22, %v1933_v28 }
 0x16d   : > { %v1625_v58 = vpop.f32.mrf.mxu0 }
 0x16e   : > { %1818 = vmatmul.bf16.vlgmr.msra.gmra.mxu1 %v1729_v47  ;;  %2052 = vmatmul.bf16.vlgmr.msra.gmra.mxu2 %v1963_v33  ;;  %v4305_v38 = vadd.f32 %v1622_v41, %v1446_v23  ;;  %v2401_v41 = vld [vmem:[#allocation2 + $0x36] sm:$0xff] }
 0x16f   : > { %2286 = vmatmul.bf16.vlgmr.msra.gmra.mxu3 %v2197_v53  ;;  %v2432_v39 = vpack.c.bf16 %v2402_v29, %v2401_v41 }
 0x170   : > { %2520 = vmatmul.bf16.vlgmr.msra.gmra.mxu0 %v2431_v54 }
 0x171   : > { %v1157_v60 = vpop.f32.mrf.mxu2 }
 0x172   : > { %v1213_v61 = vadd.f32 %v1157_v60, %v956_v1  ;;  %v1391_v40 = vpop.f32.mrf.mxu3  ;;  %v1935_v1 = vld [vmem:[#allocation2 + $0x44] sm:$0xff]  ;;  %v1936_v60 = vld [vmem:[#allocation2 + $0x4c] sm:$0xff] }
 0x173   : > { %v957_v6 = vpop.f32.mrf.mxu1 }
 0x174   : > { %v1447_v30 = vadd.f32 %v1391_v40, %v1213_v61  ;;  %v958_v18 = vadd.f32 %v957_v6, %v4151_v19  ;;  %v2169_v61 = vld [vmem:[#allocation2 + $0x45] sm:$0xff]  ;;  %v2170_v40 = vld [vmem:[#allocation2 + $0x4d] sm:$0xff] }
 0x175   : > { %v1627_v46 = vpop.f32.mrf.mxu0  ;;  %v2403_v6 = vld [vmem:[#allocation2 + $0x46] sm:$0xff] }
 0x176   : > { %v4308_v14 = vadd.f32 %v1625_v58, %v1447_v30  ;;  %v2404_v30 = vld [vmem:[#allocation2 + $0x4e] sm:$0xff] }
 0x177   : > { %v2433_v62 = vpack.c.bf16 %v2404_v30, %v2403_v6 }
 0x179   : > { %v1159_v4 = vpop.f32.mrf.mxu2 }
 0x17a   : > { %v1214_v15 = vadd.f32 %v1159_v4, %v958_v18  ;;  %v1393_v31 = vpop.f32.mrf.mxu3  ;;  %v2199_v18 = vpack.c.bf16 %v2170_v40, %v2169_v61 }
 0x17b   : > { %v960_v11 = vpop.f32.mrf.mxu1 }
 0x17c   : > { %v1448_v12 = vadd.f32 %v1393_v31, %v1214_v15  ;;  %v961_v19 = vadd.f32 %v960_v11, %v4160_v26  ;;  %v1965_v26 = vpack.c.bf16 %v1936_v60, %v1935_v1 }
 0x17d   : > { %v1630_v49 = vpop.f32.mrf.mxu0 }
 0x17e   : > { %1823 = vmatmul.bf16.gmra.mxu1 %v1963_v33  ;;  %2057 = vmatmul.bf16.gmra.mxu2 %v1964_v8  ;;  %v4311_v59 = vadd.f32 %v1627_v46, %v1448_v12 }
 0x17f   : > { %2291 = vmatmul.bf16.gmra.mxu3 %v2198_v34 }
 0x180   : > { %2525 = vmatmul.bf16.gmra.mxu0 %v2432_v39 }
 0x181   : > { %v1162_v51 = vpop.f32.mrf.mxu2 }
 0x182   : > { %v1215_v47 = vadd.f32 %v1162_v51, %v961_v19  ;;  %v1396_v25 = vpop.f32.mrf.mxu3  ;;  %v1937_v19 = vld [vmem:[#allocation2 + $0x54] sm:$0xff]  ;;  %v1938_v51 = vld [vmem:[#allocation2 + $0x5c] sm:$0xff] }
 0x183   : > { %v962_v53 = vpop.f32.mrf.mxu1 }
 0x184   : > { %v1449_v54 = vadd.f32 %v1396_v25, %v1215_v47  ;;  %v963_v33 = vadd.f32 %v962_v53, %v4168_v35  ;;  %v2171_v47 = vld [vmem:[#allocation2 + $0x55] sm:$0xff]  ;;  %v2172_v25 = vld [vmem:[#allocation2 + $0x5d] sm:$0xff] }
 0x185   : > { %v1632_v23 = vpop.f32.mrf.mxu0  ;;  %v2405_v53 = vld [vmem:[#allocation2 + $0x56] sm:$0xff] }
 0x186   : > { %v4314_v58 = vadd.f32 %v1630_v49, %v1449_v54  ;;  %v2406_v54 = vld [vmem:[#allocation2 + $0x5e] sm:$0xff] }
 0x187   : > { %v2434_v40 = vpack.c.bf16 %v2406_v54, %v2405_v53 }
 0x189   : > { %v1164_v46 = vpop.f32.mrf.mxu2 }
 0x18a   : > { %v1216_v28 = vadd.f32 %v1164_v46, %v963_v33  ;;  %v1398_v22 = vpop.f32.mrf.mxu3  ;;  %v2200_v33 = vpack.c.bf16 %v2172_v25, %v2171_v47 }
 0x18b   : > { %v965_v50 = vpop.f32.mrf.mxu1 }
 0x18c   : > { %v1450_v41 = vadd.f32 %v1398_v22, %v1216_v28  ;;  %v966_v35 = vadd.f32 %v965_v50, %v4183_v44  ;;  %v1966_v44 = vpack.c.bf16 %v1938_v51, %v1937_v19 }
 0x18d   : > { %v1635_v29 = vpop.f32.mrf.mxu0 }
 0x18e   : > { %1828 = vmatmul.bf16.gmra.mxu1 %v1964_v8  ;;  %2062 = vmatmul.bf16.gmra.mxu2 %v1965_v26  ;;  %v4317_v4 = vadd.f32 %v1632_v23, %v1450_v41 }
 0x18f   : > { %2296 = vmatmul.bf16.gmra.mxu3 %v2199_v18 }
 0x190   : > { %2530 = vmatmul.bf16.gmra.mxu0 %v2433_v62 }
 0x191   : > { %v1167_v15 = vpop.f32.mrf.mxu2 }
 0x192   : > { %v1217_v31 = vadd.f32 %v1167_v15, %v966_v35  ;;  %v1401_v11 = vpop.f32.mrf.mxu3  ;;  %v1939_v35 = vld [vmem:[#allocation2 + $0x64] sm:$0xff]  ;;  %v1940_v15 = vld [vmem:[#allocation2 + $0x6c] sm:$0xff] }
 0x193   : > { %v967_v34 = vpop.f32.mrf.mxu1 }
 0x194   : > { %v1451_v39 = vadd.f32 %v1401_v11, %v1217_v31  ;;  %v968_v8 = vadd.f32 %v967_v34, %v4197_v55  ;;  %v2173_v31 = vld [vmem:[#allocation2 + $0x65] sm:$0xff]  ;;  %v2174_v11 = vld [vmem:[#allocation2 + $0x6d] sm:$0xff] }
 0x195   : > { %v1637_v12 = vpop.f32.mrf.mxu0  ;;  %v2407_v34 = vld [vmem:[#allocation2 + $0x66] sm:$0xff] }
 0x196   : > { %v4320_v49 = vadd.f32 %v1635_v29, %v1451_v39  ;;  %v2408_v39 = vld [vmem:[#allocation2 + $0x6e] sm:$0xff] }
 0x197   : > { %v2435_v25 = vpack.c.bf16 %v2408_v39, %v2407_v34 }
 0x199   : > { %v1169_v23 = vpop.f32.mrf.mxu2 }
 0x19a   : > { %v1218_v1 = vadd.f32 %v1169_v23, %v968_v8  ;;  %v1403_v60 = vpop.f32.mrf.mxu3  ;;  %v2201_v8 = vpack.c.bf16 %v2174_v11, %v2173_v31 }
 0x19b   : > { %v970_v61 = vpop.f32.mrf.mxu1 }
 0x19c   : > { %v1452_v6 = vadd.f32 %v1403_v60, %v1218_v1  ;;  %v971_v55 = vadd.f32 %v970_v61, %v4206_v63  ;;  %v1967_v63 = vpack.c.bf16 %v1940_v15, %v1939_v35 }
 0x19d   : > { %v1640_v30 = vpop.f32.mrf.mxu0 }
 0x19e   : > { %1833 = vmatmul.bf16.gmra.mxu1 %v1965_v26  ;;  %2067 = vmatmul.bf16.gmra.mxu2 %v1966_v44  ;;  %v4323_v46 = vadd.f32 %v1637_v12, %v1452_v6 }
 0x19f   : > { %2301 = vmatmul.bf16.gmra.mxu3 %v2200_v33 }
 0x1a0   : > { %2535 = vmatmul.bf16.gmra.mxu0 %v2434_v40 }
 0x1a1   : > { %v1172_v28 = vpop.f32.mrf.mxu2 }
 0x1a2   : > { %v1219_v22 = vadd.f32 %v1172_v28, %v971_v55  ;;  %v1406_v50 = vpop.f32.mrf.mxu3  ;;  %v1941_v55 = vld [vmem:[#allocation2 + $0x74] sm:$0xff]  ;;  %v1942_v28 = vld [vmem:[#allocation2 + $0x7c] sm:$0xff] }
 0x1a3   : > { %v972_v18 = vpop.f32.mrf.mxu1 }
 0x1a4   : > { %v1453_v62 = vadd.f32 %v1406_v50, %v1219_v22  ;;  %v973_v26 = vadd.f32 %v972_v18, %v4214_v16  ;;  %v2175_v22 = vld [vmem:[#allocation2 + $0x75] sm:$0xff]  ;;  %v2176_v50 = vld [vmem:[#allocation2 + $0x7d] sm:$0xff] }
 0x1a5   : > { %v1642_v41 = vpop.f32.mrf.mxu0  ;;  %v2409_v18 = vld [vmem:[#allocation2 + $0x76] sm:$0xff] }
 0x1a6   : > { %v4326_v29 = vadd.f32 %v1640_v30, %v1453_v62  ;;  %v2410_v62 = vld [vmem:[#allocation2 + $0x7e] sm:$0xff] }
 0x1a7   : > { %v2436_v11 = vpack.c.bf16 %v2410_v62, %v2409_v18 }
 0x1a9   : > { %v1174_v12 = vpop.f32.mrf.mxu2 }
 0x1aa   : > { %v1220_v19 = vadd.f32 %v1174_v12, %v973_v26  ;;  %v1408_v51 = vpop.f32.mrf.mxu3  ;;  %v2202_v26 = vpack.c.bf16 %v2176_v50, %v2175_v22 }
 0x1ab   : > { %v975_v47 = vpop.f32.mrf.mxu1 }
 0x1ac   : > { %v1454_v53 = vadd.f32 %v1408_v51, %v1220_v19  ;;  %v976_v16 = vadd.f32 %v975_v47, %v4139_v9  ;;  %v1968_v9 = vpack.c.bf16 %v1942_v28, %v1941_v55 }
 0x1ad   : > { %v1645_v54 = vpop.f32.mrf.mxu0 }
 0x1ae   : > { %1838 = vmatmul.bf16.gmra.mxu1 %v1966_v44  ;;  %2072 = vmatmul.bf16.gmra.mxu2 %v1967_v63  ;;  %v4329_v23 = vadd.f32 %v1642_v41, %v1454_v53 }
 0x1af   : > { %2306 = vmatmul.bf16.gmra.mxu3 %v2201_v8 }
 0x1b0   : > { %2540 = vmatmul.bf16.gmra.mxu0 %v2435_v25 }
 0x1b1   : > { %v1177_v1 = vpop.f32.mrf.mxu2 }
 0x1b2   : > { %v1221_v60 = vadd.f32 %v1177_v1, %v976_v16  ;;  %v1411_v61 = vpop.f32.mrf.mxu3  ;;  %v1943_v16 = vld [vmem:[#allocation2 + $0x84] sm:$0xff]  ;;  %v1944_v1 = vld [vmem:[#allocation2 + $0x8c] sm:$0xff] }
 0x1b3   : > { %v977_v33 = vpop.f32.mrf.mxu1 }
 0x1b4   : > { %v1455_v40 = vadd.f32 %v1411_v61, %v1221_v60  ;;  %v978_v44 = vadd.f32 %v977_v33, %v4153_v20  ;;  %v2177_v60 = vld [vmem:[#allocation2 + $0x85] sm:$0xff]  ;;  %v2178_v61 = vld [vmem:[#allocation2 + $0x8d] sm:$0xff] }
 0x1b5   : > { %v1647_v6 = vpop.f32.mrf.mxu0  ;;  %v2411_v33 = vld [vmem:[#allocation2 + $0x86] sm:$0xff] }
 0x1b6   : > { %v4332_v30 = vadd.f32 %v1645_v54, %v1455_v40  ;;  %v2412_v40 = vld [vmem:[#allocation2 + $0x8e] sm:$0xff] }
 0x1b7   : > { %v2437_v50 = vpack.c.bf16 %v2412_v40, %v2411_v33 }
 0x1b9   : > { %v1179_v41 = vpop.f32.mrf.mxu2 }
 0x1ba   : > { %v1222_v35 = vadd.f32 %v1179_v41, %v978_v44  ;;  %v1413_v15 = vpop.f32.mrf.mxu3  ;;  %v2203_v44 = vpack.c.bf16 %v2178_v61, %v2177_v60 }
 0x1bb   : > { %v980_v31 = vpop.f32.mrf.mxu1 }
 0x1bc   : > { %v1456_v34 = vadd.f32 %v1413_v15, %v1222_v35  ;;  %v981_v20 = vadd.f32 %v980_v31, %v4162_v27  ;;  %v1969_v27 = vpack.c.bf16 %v1944_v1, %v1943_v16 }
 0x1bd   : > { %v1650_v39 = vpop.f32.mrf.mxu0 }
 0x1be   : > { %1843 = vmatmul.bf16.gmra.mxu1 %v1967_v63  ;;  %2077 = vmatmul.bf16.gmra.mxu2 %v1968_v9  ;;  %v4335_v12 = vadd.f32 %v1647_v6, %v1456_v34 }
 0x1bf   : > { %2311 = vmatmul.bf16.gmra.mxu3 %v2202_v26 }
 0x1c0   : > { %2545 = vmatmul.bf16.gmra.mxu0 %v2436_v11 }
 0x1c1   : > { %v1182_v19 = vpop.f32.mrf.mxu2 }
 0x1c2   : > { %v1223_v51 = vadd.f32 %v1182_v19, %v981_v20  ;;  %v1416_v47 = vpop.f32.mrf.mxu3  ;;  %v1945_v20 = vld [vmem:[#allocation2 + $0x94] sm:$0xff]  ;;  %v1946_v19 = vld [vmem:[#allocation2 + $0x9c] sm:$0xff] }
 0x1c3   : > { %v982_v8 = vpop.f32.mrf.mxu1 }
 0x1c4   : > { %v1457_v25 = vadd.f32 %v1416_v47, %v1223_v51  ;;  %v983_v63 = vadd.f32 %v982_v8, %v4170_v36  ;;  %v2179_v51 = vld [vmem:[#allocation2 + $0x95] sm:$0xff]  ;;  %v2180_v47 = vld [vmem:[#allocation2 + $0x9d] sm:$0xff] }
 0x1c5   : > { %v1652_v53 = vpop.f32.mrf.mxu0  ;;  %v2413_v8 = vld [vmem:[#allocation2 + $0x96] sm:$0xff] }
 0x1c6   : > { %v4338_v54 = vadd.f32 %v1650_v39, %v1457_v25  ;;  %v2414_v25 = vld [vmem:[#allocation2 + $0x9e] sm:$0xff] }
 0x1c7   : > { %v2438_v61 = vpack.c.bf16 %v2414_v25, %v2413_v8 }
 0x1c9   : > { %v1184_v6 = vpop.f32.mrf.mxu2 }
 0x1ca   : > { %v1224_v55 = vadd.f32 %v1184_v6, %v983_v63  ;;  %v1418_v28 = vpop.f32.mrf.mxu3  ;;  %v2204_v63 = vpack.c.bf16 %v2180_v47, %v2179_v51 }
 0x1cb   : > { %v985_v22 = vpop.f32.mrf.mxu1 }
 0x1cc   : > { %v1458_v18 = vadd.f32 %v1418_v28, %v1224_v55  ;;  %v986_v36 = vadd.f32 %v985_v22, %v4185_v45  ;;  %v1970_v45 = vpack.c.bf16 %v1946_v19, %v1945_v20 }
 0x1cd   : > { %v1655_v62 = vpop.f32.mrf.mxu0 }
 0x1ce   : > { %1848 = vmatmul.bf16.gmra.mxu1 %v1968_v9  ;;  %2082 = vmatmul.bf16.gmra.mxu2 %v1969_v27  ;;  %v4341_v41 = vadd.f32 %v1652_v53, %v1458_v18 }
 0x1cf   : > { %2316 = vmatmul.bf16.gmra.mxu3 %v2203_v44 }
 0x1d0   : > { %2550 = vmatmul.bf16.gmra.mxu0 %v2437_v50 }
 0x1d1   : > { %v1187_v35 = vpop.f32.mrf.mxu2 }
 0x1d2   : > { %v1225_v15 = vadd.f32 %v1187_v35, %v986_v36  ;;  %v1421_v31 = vpop.f32.mrf.mxu3  ;;  %v1947_v36 = vld [vmem:[#allocation2 + $0xa4] sm:$0xff]  ;;  %v1948_v35 = vld [vmem:[#allocation2 + $0xac] sm:$0xff] }
 0x1d3   : > { %v987_v26 = vpop.f32.mrf.mxu1 }
 0x1d4   : > { %v1459_v11 = vadd.f32 %v1421_v31, %v1225_v15  ;;  %v988_v9 = vadd.f32 %v987_v26, %v4199_v56  ;;  %v2181_v15 = vld [vmem:[#allocation2 + $0xa5] sm:$0xff]  ;;  %v2182_v31 = vld [vmem:[#allocation2 + $0xad] sm:$0xff] }
 0x1d5   : > { %v1657_v34 = vpop.f32.mrf.mxu0  ;;  %v2415_v26 = vld [vmem:[#allocation2 + $0xa6] sm:$0xff] }
 0x1d6   : > { %v4344_v39 = vadd.f32 %v1655_v62, %v1459_v11  ;;  %v2416_v11 = vld [vmem:[#allocation2 + $0xae] sm:$0xff] }
 0x1d7   : > { %v2439_v47 = vpack.c.bf16 %v2416_v11, %v2415_v26 }
 0x1d9   : > { %v1189_v53 = vpop.f32.mrf.mxu2 }
 0x1da   : > { %v1226_v16 = vadd.f32 %v1189_v53, %v988_v9  ;;  %v1423_v1 = vpop.f32.mrf.mxu3  ;;  %v2205_v9 = vpack.c.bf16 %v2182_v31, %v2181_v15  ;;  %v2765_v15 = vld [vmem:[%s4365_s9] sm:$0xff] }
 0x1db   : > { %v990_v60 = vpop.f32.mrf.mxu1 }
 0x1dc   : > { %v1460_v33 = vadd.f32 %v1423_v1, %v1226_v16  ;;  %v991_v56 = vadd.f32 %v990_v60, %v4208_v0  ;;  %v1971_v0 = vpack.c.bf16 %v1948_v35, %v1947_v36 }
 0x1dd   : > { %v1660_v40 = vpop.f32.mrf.mxu0 }
 0x1de   : > { %1853 = vmatmul.bf16.gmra.mxu1 %v1969_v27  ;;  %2087 = vmatmul.bf16.gmra.mxu2 %v1970_v45  ;;  %v4347_v6 = vadd.f32 %v1657_v34, %v1460_v33  ;;  %v4360_v33 = vld [vmem:[%s4518_s3] ss:$0 sm:$0xff] }
 0x1df   : > { %2321 = vmatmul.bf16.gmra.mxu3 %v2204_v63 }
 0x1e0   : > { %2555 = vmatmul.bf16.gmra.mxu0 %v2438_v61 }
 0x1e1   : > { %v1192_v55 = vpop.f32.mrf.mxu2 }
 0x1e2   : > { %v1227_v28 = vadd.f32 %v1192_v55, %v991_v56  ;;  %v1426_v22 = vpop.f32.mrf.mxu3  ;;  %v1950_v56 = vld [vmem:[#allocation2 + $0xbc] sm:$0xff] }
 0x1e3   : > { %v992_v44 = vpop.f32.mrf.mxu1  ;;  %v2183_v55 = vld [vmem:[#allocation2 + $0xb5] sm:$0xff] }
 0x1e4   : > { %v1461_v50 = vadd.f32 %v1426_v22, %v1227_v28  ;;  %v993_v27 = vadd.f32 %v992_v44, %v4216_v17  ;;  %v2184_v44 = vld [vmem:[#allocation2 + $0xbd] sm:$0xff] }
 0x1e5   : > { %v1662_v18 = vpop.f32.mrf.mxu0 }
 0x1e6   : > { %v4350_v62 = vadd.f32 %v1660_v40, %v1461_v50  ;;  %v2417_v50 = vld [vmem:[#allocation2 + $0xb6] sm:$0xff] }
 0x1e9   : > { %v1194_v34 = vpop.f32.mrf.mxu2 }
 0x1ea   : > { %v1228_v20 = vadd.f32 %v1194_v34, %v993_v27  ;;  %v1428_v19 = vpop.f32.mrf.mxu3  ;;  %v2206_v34 = vpack.c.bf16 %v2184_v44, %v2183_v55  ;;  %v1951_v55 = vld [vmem:[#allocation2 + $0xc4] sm:$0xff] }
 0x1eb   : > { %v1819_v51 = vpop.f32.mrf.mxu1 }
 0x1ec   : > { %v1462_v8 = vadd.f32 %v1428_v19, %v1228_v20  ;;  %v1899_v17 = vadd.f32 %v1819_v51, %v4232_v52  ;;  %v1949_v52 = vld [vmem:[#allocation2 + $0xb4] sm:$0xff] }
 0x1ed   : > { %v2521_v25 = vpop.f32.mrf.mxu0  ;;  %v1972_v26 = vpack.c.bf16 %v1950_v56, %v1949_v52 }
 0x1ee   : > { %1858 = vmatmul.bf16.gmra.mxu1 %v1970_v45  ;;  %2092 = vmatmul.bf16.gmra.mxu2 %v1971_v0  ;;  %v4353_v53 = vadd.f32 %v1662_v18, %v1462_v8  ;;  %v2418_v18 = vld [vmem:[#allocation2 + $0xbe] sm:$0xff] }
 0x1ef   : > { %2326 = vmatmul.bf16.gmra.mxu3 %v2205_v9  ;;  %v2440_v20 = vpack.c.bf16 %v2418_v18, %v2417_v50  ;;  %v2186_v50 = vld [vmem:[#allocation2 + $0xcd] sm:$0xff] }
 0x1f0   : > { %2560 = vmatmul.bf16.gmra.mxu0 %v2439_v47  ;;  %v2419_v18 = vld [vmem:[#allocation2 + $0xc6] sm:$0xff] }
 0x1f1   : > { %v2053_v16 = vpop.f32.mrf.mxu2 }
 0x1f2   : > { %v2133_v1 = vadd.f32 %v2053_v16, %v1899_v17  ;;  %v2287_v60 = vpop.f32.mrf.mxu3 }
 0x1f3   : > { %v1821_v63 = vpop.f32.mrf.mxu1 }
 0x1f4   : > { %v2367_v61 = vadd.f32 %v2287_v60, %v2133_v1  ;;  %v1900_v22 = vadd.f32 %v1821_v63, %v4235_v32  ;;  %v2766_v1 = vld [vmem:[%s4365_s9 + $0x8] sm:$0xff] }
 0x1f5   : > { %v2523_v40 = vpop.f32.mrf.mxu0 }
 0x1f6   : > { %v2601_v45 = vadd.f32 %v2521_v25, %v2367_v61 }
 0x1f8   : > { %v2637_v28 = vadd.f32 %v4360_v33, %v2601_v45 }
 0x1f9   : > { %v2055_v36 = vpop.f32.mrf.mxu2 }
 0x1fa   : > { %vm2669_vm0 = vcmp.gt.f32.partialorder %v2637_v28, 0.0  ;;  %v2701_v35 = vmul.f32 0.1, %v2637_v28  ;;  %v2134_v27 = vadd.f32 %v2055_v36, %v1900_v22  ;;  %v2289_v31 = vpop.f32.mrf.mxu3  ;;  %v2185_v22 = vld [vmem:[#allocation2 + $0xc5] sm:$0xff]  ;;  %v2420_v36 = vld [vmem:[#allocation2 + $0xce] sm:$0xff] }
 0x1fb   : > { %v1824_v11 = vpop.f32.mrf.mxu1 }
 0x1fc   : > { %v2733_v32 = vsel %vm2669_vm0, %v2637_v28, %v2701_v35  ;;  %v2368_v19 = vadd.f32 %v2289_v31, %v2134_v27  ;;  %v1901_v25 = vadd.f32 %v1824_v11, %v4238_v43  ;;  %v1952_v28 = vld [vmem:[#allocation2 + $0xcc] sm:$0xff] }
 0x1fd   : > { %v2526_v51 = vpop.f32.mrf.mxu0  ;;  %v2797_v9 = vadd.f32 %v2765_v15, %v2733_v32  ;;  %v2767_v27 = vld [vmem:[%s4365_s9 + $0x10] sm:$0xff]  ;;  %v2207_v32 = vpack.c.bf16 %v2186_v50, %v2185_v22 }
 0x1fe   : > { %v2602_v47 = vadd.f32 %v2523_v40, %v2368_v19  ;;  %1863 = vmatmul.bf16.gmra.mxu1 %v1971_v0  ;;  %2097 = vmatmul.bf16.gmra.mxu2 %v1972_v26  ;;  %v2441_v19 = vpack.c.bf16 %v2420_v36, %v2419_v18  ;;  %v2187_v22 = vld [vmem:[#allocation2 + $0xd5] sm:$0xff]  ;;  %v2422_v18 = vld [vmem:[#allocation2 + $0xde] sm:$0xff] }
 0x1ff   : > { %2829 = vst [vmem:[%s4373_s11] sm:$0xff] %v2797_v9  ;;  %2331 = vmatmul.bf16.gmra.mxu3 %v2206_v34  ;;  %v1973_v34 = vpack.c.bf16 %v1952_v28, %v1951_v55  ;;  %v1953_v55 = vld [vmem:[#allocation2 + $0xd4] sm:$0xff]  ;;  %v1954_v28 = vld [vmem:[#allocation2 + $0xdc] sm:$0xff] }
 0x200   : > { %2565 = vmatmul.bf16.gmra.mxu0 %v2440_v20  ;;  %v2638_v8 = vadd.f32 %v4360_v33, %v2602_v47  ;;  %v2421_v50 = vld [vmem:[#allocation2 + $0xd6] sm:$0xff] }
 0x201   : > { %v2058_v17 = vpop.f32.mrf.mxu2 }
 0x202   : > { %vm2670_vm1 = vcmp.gt.f32.partialorder %v2638_v8, 0.0  ;;  %v2702_v16 = vmul.f32 0.1, %v2638_v8  ;;  %v2135_v60 = vadd.f32 %v2058_v17, %v1901_v25  ;;  %v2292_v63 = vpop.f32.mrf.mxu3 }
 0x203   : > { %v1826_v61 = vpop.f32.mrf.mxu1 }
 0x204   : > { %v2734_v45 = vsel %vm2670_vm1, %v2638_v8, %v2702_v16  ;;  %v2369_v52 = vadd.f32 %v2292_v63, %v2135_v60  ;;  %v1902_v43 = vadd.f32 %v1826_v61, %v4243_v10  ;;  %v2768_v60 = vld [vmem:[%s4365_s9 + $0x18] sm:$0xff] }
 0x205   : > { %v2528_v0 = vpop.f32.mrf.mxu0  ;;  %v2798_v40 = vadd.f32 %v2766_v1, %v2734_v45 }
 0x206   : > { %v2603_v56 = vadd.f32 %v2526_v51, %v2369_v52 }
 0x207   : > { %2830 = vst [vmem:[%s4373_s11 + $0x8] sm:$0xff] %v2798_v40 }
 0x208   : > { %v2639_v44 = vadd.f32 %v4360_v33, %v2603_v56 }
 0x209   : > { %v2060_v35 = vpop.f32.mrf.mxu2 }
 0x20a   : > { %vm2671_vm2 = vcmp.gt.f32.partialorder %v2639_v44, 0.0  ;;  %v2703_v15 = vmul.f32 0.1, %v2639_v44  ;;  %v2136_v31 = vadd.f32 %v2060_v35, %v1902_v43  ;;  %v2294_v11 = vpop.f32.mrf.mxu3  ;;  %v2188_v43 = vld [vmem:[#allocation2 + $0xdd] sm:$0xff] }
 0x20b   : > { %v1829_v20 = vpop.f32.mrf.mxu1 }
 0x20c   : > { %v2735_v51 = vsel %vm2671_vm2, %v2639_v44, %v2703_v15  ;;  %v2370_v9 = vadd.f32 %v2294_v11, %v2136_v31  ;;  %v1903_v17 = vadd.f32 %v1829_v20, %v4258_v37  ;;  %v2769_v15 = vld [vmem:[%s4365_s9 + $0x20] sm:$0xff]  ;;  %v1974_v11 = vpack.c.bf16 %v1954_v28, %v1953_v55 }
 0x20d   : > { %v2531_v47 = vpop.f32.mrf.mxu0  ;;  %v2799_v8 = vadd.f32 %v2767_v27, %v2735_v51  ;;  %v2189_v55 = vld [vmem:[#allocation2 + $0xe5] sm:$0xff] }
 0x20e   : > { %v2604_v10 = vadd.f32 %v2528_v0, %v2370_v9  ;;  %1868 = vmatmul.bf16.gmra.mxu1 %v1972_v26  ;;  %2102 = vmatmul.bf16.gmra.mxu2 %v1973_v34 }
 0x20f   : > { %2831 = vst [vmem:[%s4373_s11 + $0x10] sm:$0xff] %v2799_v8  ;;  %2336 = vmatmul.bf16.gmra.mxu3 %v2207_v32  ;;  %v2208_v32 = vpack.c.bf16 %v2188_v43, %v2187_v22  ;;  %v2190_v22 = vld [vmem:[#allocation2 + $0xed] sm:$0xff] }
 0x210   : > { %2570 = vmatmul.bf16.gmra.mxu0 %v2441_v19  ;;  %v2640_v25 = vadd.f32 %v4360_v33, %v2604_v10  ;;  %v2442_v19 = vpack.c.bf16 %v2422_v18, %v2421_v50  ;;  %v2771_v18 = vld [vmem:[%s4365_s9 + $0x30] sm:$0xff] }
 0x211   : > { %v2063_v16 = vpop.f32.mrf.mxu2 }
 0x212   : > { %vm2672_vm3 = vcmp.gt.f32.partialorder %v2640_v25, 0.0  ;;  %v2704_v1 = vmul.f32 0.1, %v2640_v25  ;;  %v2137_v63 = vadd.f32 %v2063_v16, %v1903_v17  ;;  %v2297_v61 = vpop.f32.mrf.mxu3 }
 0x213   : > { %v1831_v45 = vpop.f32.mrf.mxu1 }
 0x214   : > { %v2736_v52 = vsel %vm2672_vm3, %v2640_v25, %v2704_v1  ;;  %v2371_v40 = vadd.f32 %v2297_v61, %v2137_v63  ;;  %v1904_v37 = vadd.f32 %v1831_v45, %v4263_v13  ;;  %v2770_v1 = vld [vmem:[%s4365_s9 + $0x28] sm:$0xff] }
 0x215   : > { %v2533_v26 = vpop.f32.mrf.mxu0  ;;  %v2800_v0 = vadd.f32 %v2768_v60, %v2736_v52 }
 0x216   : > { %v2605_v56 = vadd.f32 %v2531_v47, %v2371_v40 }
 0x217   : > { %2832 = vst [vmem:[%s4373_s11 + $0x18] sm:$0xff] %v2800_v0  ;;  %v1955_v0 = vld [vmem:[#allocation2 + $0xe4] sm:$0xff] }
 0x218   : > { %v2641_v44 = vadd.f32 %v4360_v33, %v2605_v56  ;;  %v1956_v56 = vld [vmem:[#allocation2 + $0xec] sm:$0xff] }
 0x219   : > { %v2065_v36 = vpop.f32.mrf.mxu2 }
 0x21a   : > { %vm2673_vm4 = vcmp.gt.f32.partialorder %v2641_v44, 0.0  ;;  %v2705_v35 = vmul.f32 0.1, %v2641_v44  ;;  %v2138_v27 = vadd.f32 %v2065_v36, %v1904_v37  ;;  %v2299_v31 = vpop.f32.mrf.mxu3  ;;  %v2424_v37 = vld [vmem:[#allocation2 + $0xee] sm:$0xff] }
 0x21b   : > { %v1834_v20 = vpop.f32.mrf.mxu1 }
 0x21c   : > { %v2737_v51 = vsel %vm2673_vm4, %v2641_v44, %v2705_v35  ;;  %v2372_v9 = vadd.f32 %v2299_v31, %v2138_v27  ;;  %v1905_v25 = vadd.f32 %v1834_v20, %v4266_v57  ;;  %v2423_v44 = vld [vmem:[#allocation2 + $0xe6] sm:$0xff]  ;;  %v2209_v31 = vpack.c.bf16 %v2190_v22, %v2189_v55  ;;  %v2425_v22 = vld [vmem:[#allocation2 + $0xf6] sm:$0xff] }
 0x21d   : > { %v2536_v47 = vpop.f32.mrf.mxu0  ;;  %v2801_v8 = vadd.f32 %v2769_v15, %v2737_v51  ;;  %v1975_v15 = vpack.c.bf16 %v1956_v56, %v1955_v0  ;;  %v2443_v20 = vpack.c.bf16 %v2424_v37, %v2423_v44  ;;  %v1958_v0 = vld [vmem:[#allocation2 + $0xfc] sm:$0xff] }
 0x21e   : > { %v2606_v13 = vadd.f32 %v2533_v26, %v2372_v9  ;;  %1873 = vmatmul.bf16.gmra.mxu1 %v1973_v34  ;;  %2107 = vmatmul.bf16.gmra.mxu2 %v1974_v11  ;;  %v2191_v56 = vld [vmem:[#allocation2 + $0xf5] sm:$0xff]  ;;  %v2426_v44 = vld [vmem:[#allocation2 + $0xfe] sm:$0xff] }
 0x21f   : > { %2833 = vst [vmem:[%s4373_s11 + $0x20] sm:$0xff] %v2801_v8  ;;  %2341 = vmatmul.bf16.gmra.mxu3 %v2208_v32 }
 0x220   : > { %2575 = vmatmul.bf16.gmra.mxu0 %v2442_v19  ;;  %v2642_v10 = vadd.f32 %v4360_v33, %v2606_v13 }
 0x221   : > { %v2068_v17 = vpop.f32.mrf.mxu2 }
 0x222   : > { %vm2674_vm5 = vcmp.gt.f32.partialorder %v2642_v10, 0.0  ;;  %v2706_v16 = vmul.f32 0.1, %v2642_v10  ;;  %v2139_v60 = vadd.f32 %v2068_v17, %v1905_v25  ;;  %v2302_v63 = vpop.f32.mrf.mxu3  ;;  %v2772_v25 = vld [vmem:[%s4365_s9 + $0x38] sm:$0xff] }
 0x223   : > { %v1836_v61 = vpop.f32.mrf.mxu1 }
 0x224   : > { %v2738_v45 = vsel %vm2674_vm5, %v2642_v10, %v2706_v16  ;;  %v2373_v52 = vadd.f32 %v2302_v63, %v2139_v60  ;;  %v1906_v57 = vadd.f32 %v1836_v61, %v4268_v3  ;;  %v3771_v63 = vld [vmem:[%s4007_s14 + $0x8] sm:$0xff]  }
 0x225   : > { %v2538_v34 = vpop.f32.mrf.mxu0  ;;  %v2802_v40 = vadd.f32 %v2770_v1, %v2738_v45  ;;  %v3683_v1 = vld [vmem:[%s4007_s14 + $0x10] sm:$0xff]   ;;  %v3610_v61 = vunpack.c.h.bf16 %v3771_v63 }
 0x226   : > { %v2607_v26 = vadd.f32 %v2536_v47, %v2373_v52 }
 0x227   : > { %2834 = vst [vmem:[%s4373_s11 + $0x28] sm:$0xff] %v2802_v40 }
 0x228   : > { %v2643_v28 = vadd.f32 %v4360_v33, %v2607_v26  ;;  %563 = vst [vmem:[#allocation2 + $0x118] sm:$0xff] %v3610_v61 }
 0x229   : > { %v2070_v43 = vpop.f32.mrf.mxu2 }
 0x22a   : > { %vm2675_vm6 = vcmp.gt.f32.partialorder %v2643_v28, 0.0  ;;  %v2707_v50 = vmul.f32 0.1, %v2643_v28  ;;  %v2140_v36 = vadd.f32 %v2070_v43, %v1906_v57  ;;  %v2304_v35 = vpop.f32.mrf.mxu3  ;;  %v2192_v57 = vld [vmem:[#allocation2 + $0xfd] sm:$0xff] }
 0x22b   : > { %v1839_v27 = vpop.f32.mrf.mxu1 }
 0x22c   : > { %v2739_v32 = vsel %vm2675_vm6, %v2643_v28, %v2707_v50  ;;  %v2374_v19 = vadd.f32 %v2304_v35, %v2140_v36  ;;  %v1907_v8 = vadd.f32 %v1839_v27, %v4284_v2  ;;  %v1957_v2 = vld [vmem:[#allocation2 + $0xf4] sm:$0xff]  ;;  %v2773_v50 = vld [vmem:[%s4365_s9 + $0x40] sm:$0xff] }
 0x22d   : > { %v2541_v51 = vpop.f32.mrf.mxu0  ;;  %v2803_v3 = vadd.f32 %v2771_v18, %v2739_v32  ;;  %v1976_v35 = vpack.c.bf16 %v1958_v0, %v1957_v2  ;;  %v2428_v2 = vld [vmem:[#allocation2 + $0x10e] sm:$0xff] }
 0x22e   : > { %v2608_v9 = vadd.f32 %v2538_v34, %v2374_v19  ;;  %1878 = vmatmul.bf16.gmra.mxu1 %v1974_v11  ;;  %2112 = vmatmul.bf16.gmra.mxu2 %v1975_v15  ;;  %v3613_v11 = vunpack.c.l.bf16 %v3683_v1 }
 0x22f   : > { %2835 = vst [vmem:[%s4373_s11 + $0x30] sm:$0xff] %v2803_v3  ;;  %2346 = vmatmul.bf16.gmra.mxu3 %v2209_v31  ;;  %v2210_v31 = vpack.c.bf16 %v2192_v57, %v2191_v56 }
 0x230   : > { %2580 = vmatmul.bf16.gmra.mxu0 %v2443_v20  ;;  %v2644_v47 = vadd.f32 %v4360_v33, %v2608_v9  ;;  %564 = vst [vmem:[#allocation2 + $0x120] sm:$0xff] %v3613_v11  ;;  %v2444_v20 = vpack.c.bf16 %v2426_v44, %v2425_v22  ;;  %v1959_v11 = vld [vmem:[#allocation2 + $0x104] sm:$0xff] }
 0x231   : > { %v2073_v13 = vpop.f32.mrf.mxu2 }
 0x232   : > { %vm2676_vm7 = vcmp.gt.f32.partialorder %v2644_v47, 0.0  ;;  %v2708_v10 = vmul.f32 0.1, %v2644_v47  ;;  %v2141_v17 = vadd.f32 %v2073_v13, %v1907_v8  ;;  %v2307_v16 = vpop.f32.mrf.mxu3 }
 0x233   : > { %v1841_v60 = vpop.f32.mrf.mxu1 }
 0x234   : > { %v2740_v45 = vsel %vm2676_vm7, %v2644_v47, %v2708_v10  ;;  %v2375_v52 = vadd.f32 %v2307_v16, %v2141_v17  ;;  %v1908_v28 = vadd.f32 %v1841_v60, %v4287_v5  ;;  %v2774_v10 = vld [vmem:[%s4365_s9 + $0x48] sm:$0xff] }
 0x235   : > { %v2543_v34 = vpop.f32.mrf.mxu0  ;;  %v2804_v40 = vadd.f32 %v2772_v25, %v2740_v45  ;;  %v1960_v45 = vld [vmem:[#allocation2 + $0x10c] sm:$0xff] }
 0x236   : > { %v2609_v26 = vadd.f32 %v2541_v51, %v2375_v52  ;;  %v2193_v52 = vld [vmem:[#allocation2 + $0x105] sm:$0xff]  ;;  %v1977_v22 = vpack.c.bf16 %v1960_v45, %v1959_v11 }
 0x237   : > { %2836 = vst [vmem:[%s4373_s11 + $0x38] sm:$0xff] %v2804_v40  ;;  %v2194_v40 = vld [vmem:[#allocation2 + $0x10d] sm:$0xff]  ;;  %v2777_v45 = vld [vmem:[%s4365_s9 + $0x60] sm:$0xff] }
 0x238   : > { %v2645_v55 = vadd.f32 %v4360_v33, %v2609_v26  ;;  %v2427_v26 = vld [vmem:[#allocation2 + $0x106] sm:$0xff] }
 0x239   : > { %v2075_v37 = vpop.f32.mrf.mxu2 }
 0x23a   : > { %vm2677_vm8 = vcmp.gt.f32.partialorder %v2645_v55, 0.0  ;;  %v2709_v43 = vmul.f32 0.1, %v2645_v55  ;;  %v2142_v18 = vadd.f32 %v2075_v37, %v1908_v28  ;;  %v2309_v36 = vpop.f32.mrf.mxu3  ;;  %v2211_v37 = vpack.c.bf16 %v2194_v40, %v2193_v52 }
 0x23b   : > { %v1844_v27 = vpop.f32.mrf.mxu1 }
 0x23c   : > { %v2741_v32 = vsel %vm2677_vm8, %v2645_v55, %v2709_v43  ;;  %v2376_v19 = vadd.f32 %v2309_v36, %v2142_v18  ;;  %v1909_v47 = vadd.f32 %v1844_v27, %v4290_v48  ;;  %v2775_v55 = vld [vmem:[%s4365_s9 + $0x50] sm:$0xff]  ;;  %v2445_v43 = vpack.c.bf16 %v2428_v2, %v2427_v26 }
 0x23d   : > { %v2546_v51 = vpop.f32.mrf.mxu0  ;;  %v2805_v3 = vadd.f32 %v2773_v50, %v2741_v32 }
 0x23e   : > { %v2610_v5 = vadd.f32 %v2543_v34, %v2376_v19  ;;  %1883 = vmatmul.bf16.gmra.mxu1 %v1975_v15  ;;  %2117 = vmatmul.bf16.gmra.mxu2 %v1976_v35 }
 0x23f   : > { %2837 = vst [vmem:[%s4373_s11 + $0x40] sm:$0xff] %v2805_v3  ;;  %2351 = vmatmul.bf16.gmra.mxu3 %v2210_v31 }
 0x240   : > { %2585 = vmatmul.bf16.gmra.mxu0 %v2444_v20  ;;  %v2646_v9 = vadd.f32 %v4360_v33, %v2610_v5 }
 0x241   : > { %v2078_v8 = vpop.f32.mrf.mxu2 }
 0x242   : > { %vm2678_vm9 = vcmp.gt.f32.partialorder %v2646_v9, 0.0  ;;  %v2710_v13 = vmul.f32 0.1, %v2646_v9  ;;  %v2143_v25 = vadd.f32 %v2078_v8, %v1909_v47  ;;  %v2312_v17 = vpop.f32.mrf.mxu3 }
 0x243   : > { %v1846_v16 = vpop.f32.mrf.mxu1 }
 0x244   : > { %v2742_v1 = vsel %vm2678_vm9, %v2646_v9, %v2710_v13  ;;  %v2377_v60 = vadd.f32 %v2312_v17, %v2143_v25  ;;  %v1910_v48 = vadd.f32 %v1846_v16, %v4293_v21  ;;  %v1961_v25 = vld [vmem:[#allocation2 + $0x114] sm:$0xff]  ;;  %v1962_v17 = vld [vmem:[#allocation2 + $0x11c] sm:$0xff] }
 0x245   : > { %v2548_v15 = vpop.f32.mrf.mxu0  ;;  %v2806_v63 = vadd.f32 %v2774_v10, %v2742_v1  ;;  %v2195_v16 = vld [vmem:[#allocation2 + $0x115] sm:$0xff] }
 0x246   : > { %v2611_v61 = vadd.f32 %v2546_v51, %v2377_v60  ;;  %v2776_v51 = vld [vmem:[%s4365_s9 + $0x58] sm:$0xff] }
 0x247   : > { %2838 = vst [vmem:[%s4373_s11 + $0x48] sm:$0xff] %v2806_v63  ;;  %v2196_v60 = vld [vmem:[#allocation2 + $0x11d] sm:$0xff] }
 0x248   : > { %v2647_v34 = vadd.f32 %v4360_v33, %v2611_v61  ;;  %v2430_v63 = vld [vmem:[#allocation2 + $0x11e] sm:$0xff]  ;;  %v2212_v26 = vpack.c.bf16 %v2196_v60, %v2195_v16 }
 0x249   : > { %v2080_v0 = vpop.f32.mrf.mxu2  ;;  %v2780_v60 = vld [vmem:[%s4365_s9 + $0x78] sm:$0xff] }
 0x24a   : > { %vm2679_vm10 = vcmp.gt.f32.partialorder %v2647_v34, 0.0  ;;  %v2711_v56 = vmul.f32 0.1, %v2647_v34  ;;  %v2144_v28 = vadd.f32 %v2080_v0, %v1910_v48  ;;  %v2314_v57 = vpop.f32.mrf.mxu3  ;;  %v1978_v48 = vpack.c.bf16 %v1962_v17, %v1961_v25 }
 0x24b   : > { %v1849_v44 = vpop.f32.mrf.mxu1 }
 0x24c   : > { %v2743_v50 = vsel %vm2679_vm10, %v2647_v34, %v2711_v56  ;;  %v2378_v18 = vadd.f32 %v2314_v57, %v2144_v28  ;;  %v1911_v20 = vadd.f32 %v1849_v44, %v4296_v42 }
 0x24d   : > { %v2551_v36 = vpop.f32.mrf.mxu0  ;;  %v2807_v27 = vadd.f32 %v2775_v55, %v2743_v50  ;;  %v2778_v50 = vld [vmem:[%s4365_s9 + $0x68] sm:$0xff] }
 0x24e   : > { %v2612_v21 = vadd.f32 %v2548_v15, %v2378_v18  ;;  %1888 = vmatmul.bf16.gmra.mxu1 %v1976_v35  ;;  %2122 = vmatmul.bf16.gmra.mxu2 %v1977_v22  ;;  %v2429_v15 = vld [vmem:[#allocation2 + $0x116] sm:$0xff] }
 0x24f   : > { %2839 = vst [vmem:[%s4373_s11 + $0x50] sm:$0xff] %v2807_v27  ;;  %2356 = vmatmul.bf16.gmra.mxu3 %v2211_v37  ;;  %v2446_v2 = vpack.c.bf16 %v2430_v63, %v2429_v15 }
 0x250   : > { %2590 = vmatmul.bf16.gmra.mxu0 %v2445_v43  ;;  %v2648_v31 = vadd.f32 %v4360_v33, %v2612_v21 }
 0x251   : > { %v2083_v32 = vpop.f32.mrf.mxu2 }
 0x252   : > { %vm2680_vm11 = vcmp.gt.f32.partialorder %v2648_v31, 0.0  ;;  %v2712_v19 = vmul.f32 0.1, %v2648_v31  ;;  %v2145_v3 = vadd.f32 %v2083_v32, %v1911_v20  ;;  %v2317_v5 = vpop.f32.mrf.mxu3 }
 0x253   : > { %v1851_v9 = vpop.f32.mrf.mxu1 }
 0x254   : > { %v2744_v47 = vsel %vm2680_vm11, %v2648_v31, %v2712_v19  ;;  %v2379_v8 = vadd.f32 %v2317_v5, %v2145_v3  ;;  %v1912_v42 = vadd.f32 %v1851_v9, %v4299_v7  ;;  %v2779_v5 = vld [vmem:[%s4365_s9 + $0x70] sm:$0xff] }
 0x255   : > { %v2553_v35 = vpop.f32.mrf.mxu0  ;;  %v2808_v13 = vadd.f32 %v2776_v51, %v2744_v47 }
 0x256   : > { %v2613_v10 = vadd.f32 %v2551_v36, %v2379_v8 }
 0x257   : > { %2840 = vst [vmem:[%s4373_s11 + $0x58] sm:$0xff] %v2808_v13 }
 0x258   : > { %v2649_v1 = vadd.f32 %v4360_v33, %v2613_v10 }
 0x259   : > { %v2085_v61 = vpop.f32.mrf.mxu2 }
 0x25a   : > { %vm2681_vm12 = vcmp.gt.f32.partialorder %v2649_v1, 0.0  ;;  %v2713_v11 = vmul.f32 0.1, %v2649_v1  ;;  %v2146_v52 = vadd.f32 %v2085_v61, %v1912_v42  ;;  %v2319_v34 = vpop.f32.mrf.mxu3 }
 0x25b   : > { %v1854_v40 = vpop.f32.mrf.mxu1 }
 0x25c   : > { %v2745_v0 = vsel %vm2681_vm12, %v2649_v1, %v2713_v11  ;;  %v2380_v56 = vadd.f32 %v2319_v34, %v2146_v52  ;;  %v1913_v44 = vadd.f32 %v1854_v40, %v4302_v24 }
 0x25d   : > { %v2556_v55 = vpop.f32.mrf.mxu0  ;;  %v2809_v28 = vadd.f32 %v2777_v45, %v2745_v0  ;;  %v2781_v0 = vld [vmem:[%s4365_s9 + $0x80] sm:$0xff] }
 0x25e   : > { %v2614_v7 = vadd.f32 %v2553_v35, %v2380_v56  ;;  %1893 = vmatmul.bf16.gmra.mxu1 %v1977_v22  ;;  %2127 = vmatmul.bf16.gmra.mxu2 %v1978_v48 }
 0x25f   : > { %2841 = vst [vmem:[%s4373_s11 + $0x60] sm:$0xff] %v2809_v28  ;;  %2361 = vmatmul.bf16.gmra.mxu3 %v2212_v26 }
 0x260   : > { %2595 = vmatmul.bf16.gmra.mxu0 %v2446_v2  ;;  %v2650_v57 = vadd.f32 %v4360_v33, %v2614_v7 }
 0x261   : > { %v2088_v37 = vpop.f32.mrf.mxu2 }
 0x262   : > { %vm2682_vm13 = vcmp.gt.f32.partialorder %v2650_v57, 0.0  ;;  %v2714_v43 = vmul.f32 0.1, %v2650_v57  ;;  %v2147_v18 = vadd.f32 %v2088_v37, %v1913_v44  ;;  %v2322_v36 = vpop.f32.mrf.mxu3 }
 0x263   : > { %v1856_v27 = vpop.f32.mrf.mxu1 }
 0x264   : > { %v2746_v21 = vsel %vm2682_vm13, %v2650_v57, %v2714_v43  ;;  %v2381_v31 = vadd.f32 %v2322_v36, %v2147_v18  ;;  %v1914_v51 = vadd.f32 %v1856_v27, %v4305_v38  ;;  %v2782_v27 = vld [vmem:[%s4365_s9 + $0x88] sm:$0xff] }
 0x265   : > { %v2558_v22 = vpop.f32.mrf.mxu0  ;;  %v2810_v20 = vadd.f32 %v2778_v50, %v2746_v21 }
 0x266   : > { %v2615_v32 = vadd.f32 %v2556_v55, %v2381_v31 }
 0x267   : > { %2842 = vst [vmem:[%s4373_s11 + $0x68] sm:$0xff] %v2810_v20 }
 0x268   : > { %v2651_v19 = vadd.f32 %v4360_v33, %v2615_v32 }
 0x269   : > { %v2090_v24 = vpop.f32.mrf.mxu2 }
 0x26a   : > { %vm2683_vm14 = vcmp.gt.f32.partialorder %v2651_v19, 0.0  ;;  %v2715_v3 = vmul.f32 0.1, %v2651_v19  ;;  %v2148_v9 = vadd.f32 %v2090_v24, %v1914_v51  ;;  %v2324_v47 = vpop.f32.mrf.mxu3 }
 0x26b   : > { %v1859_v8 = vpop.f32.mrf.mxu1 }
 0x26c   : > { %v2747_v35 = vsel %vm2683_vm14, %v2651_v19, %v2715_v3  ;;  %v2382_v13 = vadd.f32 %v2324_v47, %v2148_v9  ;;  %v1915_v1 = vadd.f32 %v1859_v8, %v4308_v14  ;;  %v2783_v47 = vld [vmem:[%s4365_s9 + $0x90] sm:$0xff] }
 0x26d   : > { %v2561_v10 = vpop.f32.mrf.mxu0  ;;  %v2811_v25 = vadd.f32 %v2779_v5, %v2747_v35 }
 0x26e   : > { %v2616_v17 = vadd.f32 %v2558_v22, %v2382_v13 }
 0x26f   : > { %2843 = vst [vmem:[%s4373_s11 + $0x70] sm:$0xff] %v2811_v25 }
 0x270   : > { %v2652_v16 = vadd.f32 %v4360_v33, %v2616_v17 }
 0x271   : > { %v2093_v38 = vpop.f32.mrf.mxu2 }
 0x272   : > { %vm2684_vm15 = vcmp.gt.f32.partialorder %v2652_v16, 0.0  ;;  %v2716_v42 = vmul.f32 0.1, %v2652_v16  ;;  %v2149_v15 = vadd.f32 %v2093_v38, %v1915_v1  ;;  %v2327_v63 = vpop.f32.mrf.mxu3 }
 0x273   : > { %v1861_v61 = vpop.f32.mrf.mxu1 }
 0x274   : > { %v2748_v11 = vsel %vm2684_vm15, %v2652_v16, %v2716_v42  ;;  %v2383_v45 = vadd.f32 %v2327_v63, %v2149_v15  ;;  %v1916_v26 = vadd.f32 %v1861_v61, %v4311_v59  ;;  %v2784_v15 = vld [vmem:[%s4365_s9 + $0x98] sm:$0xff] }
 0x275   : > { %v2563_v52 = vpop.f32.mrf.mxu0  ;;  %v2812_v34 = vadd.f32 %v2780_v60, %v2748_v11 }
 0x276   : > { %v2617_v48 = vadd.f32 %v2561_v10, %v2383_v45 }
 0x277   : > { %2844 = vst [vmem:[%s4373_s11 + $0x78] sm:$0xff] %v2812_v34 }
 0x278   : > { %v2653_v40 = vadd.f32 %v4360_v33, %v2617_v48 }
 0x279   : > { %v2095_v14 = vpop.f32.mrf.mxu2 }
 0x27a   : > { %vm2685_vm0 = vcmp.gt.f32.partialorder %v2653_v40, 0.0  ;;  %v2717_v2 = vmul.f32 0.1, %v2653_v40  ;;  %v2150_v56 = vadd.f32 %v2095_v14, %v1916_v26  ;;  %v2329_v55 = vpop.f32.mrf.mxu3 }
 0x27b   : > { %v1864_v28 = vpop.f32.mrf.mxu1 }
 0x27c   : > { %v2749_v7 = vsel %vm2685_vm0, %v2653_v40, %v2717_v2  ;;  %v2384_v57 = vadd.f32 %v2329_v55, %v2150_v56  ;;  %v1917_v18 = vadd.f32 %v1864_v28, %v4314_v58 }
 0x27d   : > { %v2566_v44 = vpop.f32.mrf.mxu0  ;;  %v2813_v37 = vadd.f32 %v2781_v0, %v2749_v7  ;;  %v2785_v0 = vld [vmem:[%s4365_s9 + $0xa0] sm:$0xff] }
 0x27e   : > { %v2618_v43 = vadd.f32 %v2563_v52, %v2384_v57 }
 0x27f   : > { %2845 = vst [vmem:[%s4373_s11 + $0x80] sm:$0xff] %v2813_v37 }
 0x280   : > { %v2654_v50 = vadd.f32 %v4360_v33, %v2618_v43 }
 0x281   : > { %v2098_v59 = vpop.f32.mrf.mxu2 }
 0x282   : > { %vm2686_vm1 = vcmp.gt.f32.partialorder %v2654_v50, 0.0  ;;  %v2718_v36 = vmul.f32 0.1, %v2654_v50  ;;  %v2151_v21 = vadd.f32 %v2098_v59, %v1917_v18  ;;  %v2332_v31 = vpop.f32.mrf.mxu3 }
 0x283   : > { %v1866_v22 = vpop.f32.mrf.mxu1 }
 0x284   : > { %v2750_v20 = vsel %vm2686_vm1, %v2654_v50, %v2718_v36  ;;  %v2385_v32 = vadd.f32 %v2332_v31, %v2151_v21  ;;  %v1918_v5 = vadd.f32 %v1866_v22, %v4317_v4  ;;  %v2786_v36 = vld [vmem:[%s4365_s9 + $0xa8] sm:$0xff] }
 0x285   : > { %v2568_v19 = vpop.f32.mrf.mxu0  ;;  %v2814_v51 = vadd.f32 %v2782_v27, %v2750_v20 }
 0x286   : > { %v2619_v24 = vadd.f32 %v2566_v44, %v2385_v32 }
 0x287   : > { %2846 = vst [vmem:[%s4373_s11 + $0x88] sm:$0xff] %v2814_v51 }
 0x288   : > { %v2655_v3 = vadd.f32 %v4360_v33, %v2619_v24 }
 0x289   : > { %v2100_v58 = vpop.f32.mrf.mxu2 }
 0x28a   : > { %vm2687_vm2 = vcmp.gt.f32.partialorder %v2655_v3, 0.0  ;;  %v2719_v9 = vmul.f32 0.1, %v2655_v3  ;;  %v2152_v8 = vadd.f32 %v2100_v58, %v1918_v5  ;;  %v2334_v35 = vpop.f32.mrf.mxu3  ;;  %v2787_v58 = vld [vmem:[%s4365_s9 + $0xb0] sm:$0xff] }
 0x28b   : > { %v1869_v13 = vpop.f32.mrf.mxu1 }
 0x28c   : > { %v2751_v10 = vsel %vm2687_vm2, %v2655_v3, %v2719_v9  ;;  %v2386_v25 = vadd.f32 %v2334_v35, %v2152_v8  ;;  %v1919_v42 = vadd.f32 %v1869_v13, %v4320_v49 }
 0x28d   : > { %v2571_v17 = vpop.f32.mrf.mxu0  ;;  %v2815_v16 = vadd.f32 %v2783_v47, %v2751_v10 }
 0x28e   : > { %v2620_v1 = vadd.f32 %v2568_v19, %v2386_v25 }
 0x28f   : > { %2847 = vst [vmem:[%s4373_s11 + $0x90] sm:$0xff] %v2815_v16 }
 0x290   : > { %v2656_v38 = vadd.f32 %v4360_v33, %v2620_v1 }
 0x291   : > { %v2103_v4 = vpop.f32.mrf.mxu2 }
 0x292   : > { %vm2688_vm3 = vcmp.gt.f32.partialorder %v2656_v38, 0.0  ;;  %v2720_v60 = vmul.f32 0.1, %v2656_v38  ;;  %v2153_v63 = vadd.f32 %v2103_v4, %v1919_v42  ;;  %v2337_v61 = vpop.f32.mrf.mxu3  ;;  %v2788_v42 = vld [vmem:[%s4365_s9 + $0xb8] sm:$0xff] }
 0x293   : > { %v1871_v11 = vpop.f32.mrf.mxu1 }
 0x294   : > { %v2752_v45 = vsel %vm2688_vm3, %v2656_v38, %v2720_v60  ;;  %v2387_v52 = vadd.f32 %v2337_v61, %v2153_v63  ;;  %v1920_v14 = vadd.f32 %v1871_v11, %v4323_v46 }
 0x295   : > { %v2573_v34 = vpop.f32.mrf.mxu0  ;;  %v2816_v48 = vadd.f32 %v2784_v15, %v2752_v45 }
 0x296   : > { %v2621_v40 = vadd.f32 %v2571_v17, %v2387_v52 }
 0x297   : > { %2848 = vst [vmem:[%s4373_s11 + $0x98] sm:$0xff] %v2816_v48 }
 0x298   : > { %v2657_v26 = vadd.f32 %v4360_v33, %v2621_v40 }
 0x299   : > { %v2105_v49 = vpop.f32.mrf.mxu2 }
 0x29a   : > { %vm2689_vm4 = vcmp.gt.f32.partialorder %v2657_v26, 0.0  ;;  %v2721_v2 = vmul.f32 0.1, %v2657_v26  ;;  %v2154_v56 = vadd.f32 %v2105_v49, %v1920_v14  ;;  %v2339_v55 = vpop.f32.mrf.mxu3 }
 0x29b   : > { %v1874_v28 = vpop.f32.mrf.mxu1 }
 0x29c   : > { %v2753_v7 = vsel %vm2689_vm4, %v2657_v26, %v2721_v2  ;;  %v2388_v57 = vadd.f32 %v2339_v55, %v2154_v56  ;;  %v1921_v18 = vadd.f32 %v1874_v28, %v4326_v29  ;;  %v2789_v26 = vld [vmem:[%s4365_s9 + $0xc0] sm:$0xff] }
 0x29d   : > { %v2576_v44 = vpop.f32.mrf.mxu0  ;;  %v2817_v37 = vadd.f32 %v2785_v0, %v2753_v7 }
 0x29e   : > { %v2622_v43 = vadd.f32 %v2573_v34, %v2388_v57 }
 0x29f   : > { %2849 = vst [vmem:[%s4373_s11 + $0xa0] sm:$0xff] %v2817_v37 }
 0x2a0   : > { %v2658_v50 = vadd.f32 %v4360_v33, %v2622_v43  ;;  %v2790_v43 = vld [vmem:[%s4365_s9 + $0xc8] sm:$0xff] }
 0x2a1   : > { %v2108_v46 = vpop.f32.mrf.mxu2 }
 0x2a2   : > { %vm2690_vm5 = vcmp.gt.f32.partialorder %v2658_v50, 0.0  ;;  %v2722_v59 = vmul.f32 0.1, %v2658_v50  ;;  %v2155_v27 = vadd.f32 %v2108_v46, %v1921_v18  ;;  %v2342_v21 = vpop.f32.mrf.mxu3 }
 0x2a3   : > { %v1876_v31 = vpop.f32.mrf.mxu1 }
 0x2a4   : > { %v2754_v22 = vsel %vm2690_vm5, %v2658_v50, %v2722_v59  ;;  %v2389_v20 = vadd.f32 %v2342_v21, %v2155_v27  ;;  %v1922_v3 = vadd.f32 %v1876_v31, %v4329_v23 }
 0x2a5   : > { %v2578_v32 = vpop.f32.mrf.mxu0  ;;  %v2818_v19 = vadd.f32 %v2786_v36, %v2754_v22 }
 0x2a6   : > { %v2623_v51 = vadd.f32 %v2576_v44, %v2389_v20 }
 0x2a7   : > { %2850 = vst [vmem:[%s4373_s11 + $0xa8] sm:$0xff] %v2818_v19  ;;  %v2791_v19 = vld [vmem:[%s4365_s9 + $0xd0] sm:$0xff] }
 0x2a8   : > { %v2659_v24 = vadd.f32 %v4360_v33, %v2623_v51 }
 0x2a9   : > { %v2110_v29 = vpop.f32.mrf.mxu2 }
 0x2aa   : > { %vm2691_vm6 = vcmp.gt.f32.partialorder %v2659_v24, 0.0  ;;  %v2723_v5 = vmul.f32 0.1, %v2659_v24  ;;  %v2156_v9 = vadd.f32 %v2110_v29, %v1922_v3  ;;  %v2344_v47 = vpop.f32.mrf.mxu3 }
 0x2ab   : > { %v1879_v8 = vpop.f32.mrf.mxu1 }
 0x2ac   : > { %v2755_v35 = vsel %vm2691_vm6, %v2659_v24, %v2723_v5  ;;  %v2390_v13 = vadd.f32 %v2344_v47, %v2156_v9  ;;  %v1923_v1 = vadd.f32 %v1879_v8, %v4332_v30 }
 0x2ad   : > { %v2581_v10 = vpop.f32.mrf.mxu0  ;;  %v2819_v25 = vadd.f32 %v2787_v58, %v2755_v35 }
 0x2ae   : > { %v2624_v17 = vadd.f32 %v2578_v32, %v2390_v13 }
 0x2af   : > { %2851 = vst [vmem:[%s4373_s11 + $0xb0] sm:$0xff] %v2819_v25 }
 0x2b0   : > { %v2660_v16 = vadd.f32 %v4360_v33, %v2624_v17 }
 0x2b1   : > { %v2113_v23 = vpop.f32.mrf.mxu2 }
 0x2b2   : > { %vm2692_vm7 = vcmp.gt.f32.partialorder %v2660_v16, 0.0  ;;  %v2724_v38 = vmul.f32 0.1, %v2660_v16  ;;  %v2157_v4 = vadd.f32 %v2113_v23, %v1923_v1  ;;  %v2347_v60 = vpop.f32.mrf.mxu3 }
 0x2b3   : > { %v1881_v15 = vpop.f32.mrf.mxu1 }
 0x2b4   : > { %v2756_v63 = vsel %vm2692_vm7, %v2660_v16, %v2724_v38  ;;  %v2391_v61 = vadd.f32 %v2347_v60, %v2157_v4  ;;  %v1924_v48 = vadd.f32 %v1881_v15, %v4335_v12 }
 0x2b5   : > { %v2583_v11 = vpop.f32.mrf.mxu0  ;;  %v2820_v45 = vadd.f32 %v2788_v42, %v2756_v63 }
 0x2b6   : > { %v2625_v52 = vadd.f32 %v2581_v10, %v2391_v61  ;;  %v2792_v10 = vld [vmem:[%s4365_s9 + $0xd8] sm:$0xff]  ;;  %v2793_v61 = vld [vmem:[%s4365_s9 + $0xe0] sm:$0xff] }
 0x2b7   : > { %2852 = vst [vmem:[%s4373_s11 + $0xb8] sm:$0xff] %v2820_v45 }
 0x2b8   : > { %v2661_v34 = vadd.f32 %v4360_v33, %v2625_v52 }
 0x2b9   : > { %v2115_v30 = vpop.f32.mrf.mxu2 }
 0x2ba   : > { %vm2693_vm8 = vcmp.gt.f32.partialorder %v2661_v34, 0.0  ;;  %v2725_v40 = vmul.f32 0.1, %v2661_v34  ;;  %v2158_v14 = vadd.f32 %v2115_v30, %v1924_v48  ;;  %v2349_v49 = vpop.f32.mrf.mxu3 }
 0x2bb   : > { %v1884_v2 = vpop.f32.mrf.mxu1 }
 0x2bc   : > { %v2757_v0 = vsel %vm2693_vm8, %v2661_v34, %v2725_v40  ;;  %v2392_v56 = vadd.f32 %v2349_v49, %v2158_v14  ;;  %v1925_v44 = vadd.f32 %v1884_v2, %v4338_v54  ;;  %v2794_v2 = vld [vmem:[%s4365_s9 + $0xe8] sm:$0xff] }
 0x2bd   : > { %v2586_v55 = vpop.f32.mrf.mxu0  ;;  %v2821_v28 = vadd.f32 %v2789_v26, %v2757_v0 }
 0x2be   : > { %v2626_v7 = vadd.f32 %v2583_v11, %v2392_v56 }
 0x2bf   : > { %2853 = vst [vmem:[%s4373_s11 + $0xc0] sm:$0xff] %v2821_v28 }
 0x2c0   : > { %v2662_v57 = vadd.f32 %v4360_v33, %v2626_v7 }
 0x2c1   : > { %v2118_v12 = vpop.f32.mrf.mxu2 }
 0x2c2   : > { %vm2694_vm9 = vcmp.gt.f32.partialorder %v2662_v57, 0.0  ;;  %v2726_v37 = vmul.f32 0.1, %v2662_v57  ;;  %v2159_v50 = vadd.f32 %v2118_v12, %v1925_v44  ;;  %v2352_v18 = vpop.f32.mrf.mxu3 }
 0x2c3   : > { %v1886_v46 = vpop.f32.mrf.mxu1 }
 0x2c4   : > { %v2758_v59 = vsel %vm2694_vm9, %v2662_v57, %v2726_v37  ;;  %v2393_v36 = vadd.f32 %v2352_v18, %v2159_v50  ;;  %v1926_v20 = vadd.f32 %v1886_v46, %v4341_v41  ;;  %v2795_v18 = vld [vmem:[%s4365_s9 + $0xf0] sm:$0xff] }
 0x2c5   : > { %v2822_v27 = vadd.f32 %v2790_v43, %v2758_v59  ;;  %v2588_v21 = vpop.f32.mrf.mxu0 }
 0x2c6   : > { %v2627_v31 = vadd.f32 %v2586_v55, %v2393_v36 }
 0x2c7   : > { %2854 = vst [vmem:[%s4373_s11 + $0xc8] sm:$0xff] %v2822_v27 }
 0x2c8   : > { %v2663_v22 = vadd.f32 %v4360_v33, %v2627_v31 }
 0x2c9   : > { %v2120_v54 = vpop.f32.mrf.mxu2 }
 0x2ca   : > { %vm2695_vm10 = vcmp.gt.f32.partialorder %v2663_v22, 0.0  ;;  %v2727_v32 = vmul.f32 0.1, %v2663_v22  ;;  %v2160_v51 = vadd.f32 %v2120_v54, %v1926_v20  ;;  %v2354_v24 = vpop.f32.mrf.mxu3 }
 0x2cb   : > { %v1889_v3 = vpop.f32.mrf.mxu1 }
 0x2cc   : > { %v2759_v29 = vsel %vm2695_vm10, %v2663_v22, %v2727_v32  ;;  %v2394_v5 = vadd.f32 %v2354_v24, %v2160_v51  ;;  %v1927_v35 = vadd.f32 %v1889_v3, %v4344_v39  ;;  %v2796_v32 = vld [vmem:[%s4365_s9 + $0xf8] sm:$0xff] }
 0x2cd   : > { %v2823_v58 = vadd.f32 %v2791_v19, %v2759_v29  ;;  %v2591_v47 = vpop.f32.mrf.mxu0 }
 0x2ce   : > { %v2628_v9 = vadd.f32 %v2588_v21, %v2394_v5 }
 0x2cf   : > { %2855 = vst [vmem:[%s4373_s11 + $0xd0] sm:$0xff] %v2823_v58 }
 0x2d0   : > { %v2664_v8 = vadd.f32 %v4360_v33, %v2628_v9  ;;  %v3772_v33 = vld [vmem:[%s4518_s3] ss:$0 sm:$0xff] }
 0x2d1   : > { %v2123_v41 = vpop.f32.mrf.mxu2 }
 0x2d2   : > { %vm2696_vm11 = vcmp.gt.f32.partialorder %v2664_v8, 0.0  ;;  %v2728_v13 = vmul.f32 0.1, %v2664_v8  ;;  %v2161_v25 = vadd.f32 %v2123_v41, %v1927_v35  ;;  %v2357_v17 = vpop.f32.mrf.mxu3 }
 0x2d3   : > { %v1891_v16 = vpop.f32.mrf.mxu1 }
 0x2d4   : > { %v2760_v1 = vsel %vm2696_vm11, %v2664_v8, %v2728_v13  ;;  %v2395_v23 = vadd.f32 %v2357_v17, %v2161_v25  ;;  %v1928_v39 = vadd.f32 %v1891_v16, %v4347_v6 }
 0x2d5   : > { %v2824_v38 = vadd.f32 %v2792_v10, %v2760_v1  ;;  %v2593_v60 = vpop.f32.mrf.mxu0 }
 0x2d6   : > { %v2629_v42 = vadd.f32 %v2591_v47, %v2395_v23 }
 0x2d7   : > { %2856 = vst [vmem:[%s4373_s11 + $0xd8] sm:$0xff] %v2824_v38 }
 0x2d8   : > { %v2665_v4 = vadd.f32 %v3772_v33, %v2629_v42 }
 0x2d9   : > { %v2125_v15 = vpop.f32.mrf.mxu2 }
 0x2da   : > { %vm2697_vm12 = vcmp.gt.f32.partialorder %v2665_v4, 0.0  ;;  %v2729_v63 = vmul.f32 0.1, %v2665_v4  ;;  %v2162_v11 = vadd.f32 %v2125_v15, %v1928_v39  ;;  %v2359_v45 = vpop.f32.mrf.mxu3 }
 0x2db   : > { %v1894_v52 = vpop.f32.mrf.mxu1 }
 0x2dc   : > { %v2761_v34 = vsel %vm2697_vm12, %v2665_v4, %v2729_v63  ;;  %v2396_v48 = vadd.f32 %v2359_v45, %v2162_v11  ;;  %v1929_v14 = vadd.f32 %v1894_v52, %v4350_v62 }
 0x2dd   : > { %v2825_v30 = vadd.f32 %v2793_v61, %v2761_v34  ;;  %v2596_v55 = vpop.f32.mrf.mxu0 }
 0x2de   : > { %v2630_v40 = vadd.f32 %v2593_v60, %v2396_v48 }
 0x2df   : > { %2857 = vst [vmem:[%s4373_s11 + $0xe0] sm:$0xff] %v2825_v30 }
 0x2e0   : > { %v2666_v26 = vadd.f32 %v3772_v33, %v2630_v40 }
 0x2e1   : > { %v2128_v49 = vpop.f32.mrf.mxu2 }
 0x2e2   : > { %vm2698_vm13 = vcmp.gt.f32.partialorder %v2666_v26, 0.0  ;;  %v2730_v6 = vmul.f32 0.1, %v2666_v26  ;;  %v2163_v0 = vadd.f32 %v2128_v49, %v1929_v14  ;;  %v2362_v56 = vpop.f32.mrf.mxu3 }
 0x2e3   : > { %v1896_v44 = vpop.f32.mrf.mxu1 }
 0x2e4   : > { %v2762_v28 = vsel %vm2698_vm13, %v2666_v26, %v2730_v6  ;;  %v2397_v7 = vadd.f32 %v2362_v56, %v2163_v0  ;;  %v1930_v43 = vadd.f32 %v1896_v44, %v4353_v53 }
 0x2e5   : > { %v2826_v57 = vadd.f32 %v2794_v2, %v2762_v28  ;;  %v2598_v31 = vpop.f32.mrf.mxu0 }
 0x2e6   : > { %v2631_v12 = vadd.f32 %v2596_v55, %v2397_v7 }
 0x2e7   : > { %2858 = vst [vmem:[%s4373_s11 + $0xe8] sm:$0xff] %v2826_v57 }
 0x2e8   : > { %v2667_v37 = vadd.f32 %v3772_v33, %v2631_v12 }
 0x2e9   : > { %v2130_v62 = vpop.f32.mrf.mxu2 }
 0x2ea   : > { %vm2699_vm14 = vcmp.gt.f32.partialorder %v2667_v37, 0.0  ;;  %v2731_v50 = vmul.f32 0.1, %v2667_v37  ;;  %v2164_v46 = vadd.f32 %v2130_v62, %v1930_v43  ;;  %v2364_v59 = vpop.f32.mrf.mxu3 }
 0x2ec   : > { %v2763_v36 = vsel %vm2699_vm14, %v2667_v37, %v2731_v50  ;;  %v2398_v27 = vadd.f32 %v2364_v59, %v2164_v46 }
 0x2ed   : > { %v2827_v21 = vadd.f32 %v2795_v18, %v2763_v36 }
 0x2ee   : > { %v2632_v22 = vadd.f32 %v2598_v31, %v2398_v27 }
 0x2ef   : > { %2859 = vst [vmem:[%s4373_s11 + $0xf0] sm:$0xff] %v2827_v21 }
 0x2f0   : > { %v2668_v20 = vadd.f32 %v3772_v33, %v2632_v22 }
 0x2f2   : > { %vm2700_vm15 = vcmp.gt.f32.partialorder %v2668_v20, 0.0  ;;  %v2732_v54 = vmul.f32 0.1, %v2668_v20 }
 0x2f4   : > { %v2764_v19 = vsel %vm2700_vm15, %v2668_v20, %v2732_v54 }
 0x2f5   : > { %v2828_v53 = vadd.f32 %v2796_v32, %v2764_v19 }
 0x2f7   : > { %2860 = vst [vmem:[%s4373_s11 + $0xf8] sm:$0xff] %v2828_v53 }
 0x2f8 PF: > { %s15_s22 = sadd.s32 1, %s3811_s22   ;;  %s4522_s18 = smov %s3803_s20 }
 0x2f9   : > { %p12_p9 = scmp.ge.s32.totalorder %s15_s22, 6   ;;  %s4523_s19 = smov %s3807_s21 }
 0x2fa   : > { %s4524_s20 = smov %s4527_s23  ;;  %s4525_s21 = smov %s4531_s24 }
 0x2fb   :  { %14 = sbr.rel (!%p12_p9) target bundleno = 3 (0x3), region = 90 }

</bundles_post_ra>
